<compile_context>
chip_gen: v5e
topology: v5e:2x2
jax: 0.10.0
libtpu: 0.0.40
codegen_flags: <defaults>
</compile_context>

<pallas_src>
import functools
import math

import jax
import jax.numpy as jnp
from jax.experimental import pallas as pl
from jax.experimental.pallas import tpu as pltpu

_SQRT_HALF = 0.7071067811865476


# ----------------------------- in-kernel math helpers -----------------------------
def _sigmoid(x):
    # Exact logistic (kept exact for GLU gates / final output parity with PyTorch).
    return 1.0 / (1.0 + jnp.exp(-x))


def _erf(x):
    # Abramowitz & Stegun 7.1.26 (|abs err| < 1.5e-7): Mosaic-safe erf for exact GELU.
    p = 0.3275911
    a1, a2, a3, a4, a5 = (0.254829592, -0.284496736, 1.421413741,
                          -1.453152027, 1.061405429)
    sgn = jnp.where(x >= 0.0, 1.0, -1.0)
    ax = jnp.abs(x)
    t = 1.0 / (1.0 + p * ax)
    poly = ((((a5 * t + a4) * t + a3) * t + a2) * t + a1) * t
    return sgn * (1.0 - poly * jnp.exp(-ax * ax))


def _gelu(x):
    # nn.GELU() default = exact (erf-based) formulation.
    return 0.5 * x * (1.0 + _erf(x * _SQRT_HALF))


def _layernorm_rows(x, g, b, eps=1e-5):
    # LayerNorm over the last (lane) axis; g/b are (1, E) rows.
    mu = jnp.mean(x, axis=-1, keepdims=True)
    d = x - mu
    var = jnp.mean(d * d, axis=-1, keepdims=True)
    return d * jax.lax.rsqrt(var + eps) * g + b


# ------------------- encoder: Conv1d + GLU + LayerNorm (in-kernel helper) ----------
def _encode_stream(x, w_flat, b_row, g_full, beta_full, im2_ref):
    """One TipFormer encoder stream, batched over the whole batch.

    x         : (B, L, Cin) batch-first input (exactly what TipFormer.forward receives).
    w_flat    : (3*Cin, hidden) conv weight with tap-major row blocks; b_row: (1, hidden).
    g_full    : (B*Lh, 1) LayerNorm gamma tiled over the batch (beta_full likewise).
    im2_ref   : (B*L, 3*Cin) VMEM scratch used to stage the im2col slab.
    Returns the post-permute encoder output in flat (B*Lh, hidden) layout.
    """
    Bz, L, Cin = x.shape
    Cout = w_flat.shape[1]
    Lh = L // 2
    N = Bz * L
    xf = x.reshape(N, Cin)                                          # row r = (b, l)

    # Position of each flat row inside its length-L sequence (for the padding=1 taps).
    l_idx = jax.lax.broadcasted_iota(jnp.int32, (Bz, L, 1), 1).reshape(N, 1)

    # im2col row r = [x[r-1] | x[r] | x[r+1]] with zero neighbours at sequence
    # boundaries (Conv1d padding=1).  Staged through VMEM scratch so the three taps
    # collapse into a single MXU matmul with contraction K = 3*Cin.
    im2_ref[...] = jnp.zeros((N, 3 * Cin), jnp.float32)
    im2_ref[:, Cin:2 * Cin] = xf
    im2_ref[1:N, 0:Cin] = jnp.where(l_idx[0:N - 1] == L - 1, 0.0, xf[0:N - 1])
    im2_ref[0:N - 1, 2 * Cin:3 * Cin] = jnp.where(l_idx[1:N] == 0, 0.0, xf[1:N])

    y = jnp.dot(im2_ref[...], w_flat, preferred_element_type=jnp.float32) + b_row

    # nn.GLU() defaults to dim=-1: on the (B, hidden, L) conv layout that is the
    # *length* axis, i.e. axis 1 of our (B, L, hidden) layout.
    y3 = y.reshape(Bz, L, Cout)
    glu = y3[:, :Lh, :] * _sigmoid(y3[:, Lh:, :])                   # (B, Lh, hidden)

    # LayerNorm(hidden) then normalizes the length axis (model requires Lh == hidden).
    mu = jnp.mean(glu, axis=1, keepdims=True)
    d = glu - mu
    var = jnp.mean(d * d, axis=1, keepdims=True)
    norm = (d * jax.lax.rsqrt(var + 1e-5)).reshape(Bz * Lh, Cout)
    return norm * g_full + beta_full                                # (B*Lh, hidden)


# ----------------------------- fully fused forward kernel --------------------------
def _tipformer_kernel(
        chem_ref, prot_ref,
        cw_ref, cb_ref, cg_ref, cbeta_ref,
        pw_ref, pb_ref, pg_ref, pbeta_ref,
        wq_ref, bq_ref, wkv_ref, bkv_ref, wo_ref, bo_ref,
        seg_ref, segT_ref,
        lng_ref, lnb_ref, wf1_ref, bf1_ref, wf2_ref, bf2_ref,
        wp1_ref, bp1_ref, lpg_ref, lpb_ref, wp2_ref, bp2_ref,
        o_ref,
        chem_im2_ref, prot_im2_ref):
    B, L, _ = chem_ref.shape
    S = L // 2                     # MHA "batch" axis (== hidden, by model construction)
    E = seg_ref.shape[0]           # embed dim (hidden)
    H = seg_ref.shape[1]           # num_heads
    scale = 1.0 / math.sqrt(E // H)

    # ---- encoders: Conv1d(k=3, pad=1) -> GLU(dim=-1) -> LayerNorm, batched over B ----
    xq = _encode_stream(chem_ref[...], cw_ref[...], cb_ref[...],
                        cg_ref[...], cbeta_ref[...], chem_im2_ref)      # (B*S, E)
    xc = _encode_stream(prot_ref[...], pw_ref[...], pb_ref[...],
                        pg_ref[...], pbeta_ref[...], prot_im2_ref)      # (B*S, E)

    # ---- cross attention (nn.MultiheadAttention, batch_first=False) ------------------
    # The MHA sequence axis is the true batch B; its batch axis is S = L/2.
    seg = seg_ref[...]             # (E, H): sums the lanes belonging to one head
    segT = segT_ref[...]           # (H, E): broadcasts one per-head scalar to its lanes
    q = jnp.dot(xq, wq_ref[...], preferred_element_type=jnp.float32) + bq_ref[...]
    kv = jnp.dot(xc, wkv_ref[...], preferred_element_type=jnp.float32) + bkv_ref[...]
    k, v = kv[:, :E], kv[:, E:]

    # Per-head logits, batched over every (query position i, MHA batch n) row; only the
    # tiny loop over the Lk (== B) key positions remains.
    s_list = []
    for j in range(B):
        kj = jnp.concatenate([k[j * S:(j + 1) * S, :]] * B, axis=0)     # (B*S, E)
        s_list.append(
            jnp.dot(q * kj, seg, preferred_element_type=jnp.float32) * scale)
    m = functools.reduce(jnp.maximum, s_list)                           # (B*S, H)
    e_list = [jnp.exp(s - m) for s in s_list]
    # Single softmax reciprocal on the (otherwise idle) EUP slot.
    inv = pl.reciprocal(functools.reduce(jnp.add, e_list), approx=True)

    attn = jnp.zeros_like(q)
    for j in range(B):
        probs = jnp.dot(e_list[j] * inv, segT, preferred_element_type=jnp.float32)
        vj = jnp.concatenate([v[j * S:(j + 1) * S, :]] * B, axis=0)     # (B*S, E)
        attn = attn + probs * vj
    attn = jnp.dot(attn, wo_ref[...], preferred_element_type=jnp.float32) + bo_ref[...]

    # ---- residual + shared LayerNorm + feed-forward (CrossAttention.forward) ---------
    lng, lnb = lng_ref[...], lnb_ref[...]
    x1 = _layernorm_rows(xq + attn, lng, lnb)
    h = _gelu(jnp.dot(x1, wf1_ref[...], preferred_element_type=jnp.float32) + bf1_ref[...])
    ff = jnp.dot(h, wf2_ref[...], preferred_element_type=jnp.float32) + bf2_ref[...]
    x2 = _layernorm_rows(x1 + ff, lng, lnb)        # the SAME nn.LayerNorm is reused (spec)

    # ---- mean-pool over dim=1 and predictor head --------------------------------------
    pooled = jnp.mean(x2.reshape(B, S, E), axis=1)                      # (B, E)
    h1 = jnp.dot(pooled, wp1_ref[...], preferred_element_type=jnp.float32) + bp1_ref[...]
    # TODO(synk): nn.Dropout(0.2) is treated as eval-mode identity (no stochastic drop).
    h1 = _gelu(_layernorm_rows(h1, lpg_ref[...], lpb_ref[...]))
    logits = jnp.sum(h1 * wp2_ref[...], axis=-1, keepdims=True) + bp2_ref[...]
    o_ref[...] = _sigmoid(logits)                                       # (B, 1)


# ----------------------------- wrapper ---------------------------------------------
def tipformer_forward(chem_emb, protein_emb, p):
    """Packs the parameters into kernel-friendly layouts and runs the fused kernel."""
    B, L, Cc = chem_emb.shape
    Bp, Lp, Cp = protein_emb.shape
    assert (B, L) == (Bp, Lp), "chem and protein streams must share (batch, length)"
    E = p["chem_conv_w"].shape[0]          # hidden_dim
    Lh = L // 2
    assert Lh == E, ("nn.GLU() halves the conv length axis and LayerNorm(hidden) then "
                     "normalizes over it, so TipFormer requires L // 2 == hidden_dim")

    def conv_flat(w):                      # (Cout, Cin, 3) -> (3*Cin, Cout), tap-major rows
        cout, cin, _ = w.shape
        return jnp.transpose(w, (2, 1, 0)).reshape(3 * cin, cout)

    def tile_col(vec):                     # (Lh,) -> (B*Lh, 1) encoder-LN affine, batch-tiled
        return jnp.tile(vec.reshape(Lh, 1), (B, 1))

    seg = p["seg"]                         # (E, H) head-segment-sum matrix

    args = (
        chem_emb, protein_emb,
        conv_flat(p["chem_conv_w"]), p["chem_conv_b"].reshape(1, E),
        tile_col(p["chem_ln_g"]), tile_col(p["chem_ln_b"]),
        conv_flat(p["prot_conv_w"]), p["prot_conv_b"].reshape(1, E),
        tile_col(p["prot_ln_g"]), tile_col(p["prot_ln_b"]),
        p["wq"].T, p["bq"].reshape(1, E),
        jnp.concatenate([p["wk"].T, p["wv"].T], axis=1),                 # fused [K|V] proj
        jnp.concatenate([p["bk"], p["bv"]]).reshape(1, 2 * E),
        p["wo"].T, p["bo"].reshape(1, E),
        seg, seg.T,
        p["ca_ln_g"].reshape(1, E), p["ca_ln_b"].reshape(1, E),
        p["ff_w1"].T, p["ff_b1"].reshape(1, E),
        p["ff_w2"].T, p["ff_b2"].reshape(1, E),
        p["pred_w1"].T, p["pred_b1"].reshape(1, E),
        p["pred_ln_g"].reshape(1, E), p["pred_ln_b"].reshape(1, E),
        p["pred_w2"].reshape(1, E), p["pred_b2"].reshape(1, 1),
    )
    # Whole-problem blocks: every operand fits comfortably in VMEM at these sizes, so a
    # single gridless invocation avoids per-step pipeline overhead and keeps all
    # intermediate activations (encoder outputs, attention, FF) out of HBM entirely.
    # (For production-size batches one would reintroduce a parallel grid for megacore.)
    return pl.pallas_call(
        _tipformer_kernel,
        out_shape=jax.ShapeDtypeStruct((B, 1), jnp.float32),
        scratch_shapes=[
            pltpu.VMEM((B * L, 3 * Cc), jnp.float32),   # chem im2col staging
            pltpu.VMEM((B * L, 3 * Cp), jnp.float32),   # protein im2col staging
        ],
    )(*args)


# ----------------------------- parameter init --------------------------------------
def _init_params(key, chem_dim, prot_dim, hidden, num_heads):
    ks = iter(jax.random.split(key, 32))

    def uni(shape, fan_in):
        bound = 1.0 / math.sqrt(fan_in)
        return jax.random.uniform(next(ks), shape, jnp.float32, -bound, bound)

    p = {}
    # encoders: Conv1d(Cin, hidden, 3, padding=1) + GLU(dim=-1) + LayerNorm(hidden)
    p["chem_conv_w"] = uni((hidden, chem_dim, 3), chem_dim * 3)
    p["chem_conv_b"] = uni((hidden,), chem_dim * 3)
    p["chem_ln_g"] = jnp.ones((hidden,), jnp.float32)
    p["chem_ln_b"] = jnp.zeros((hidden,), jnp.float32)
    p["prot_conv_w"] = uni((hidden, prot_dim, 3), prot_dim * 3)
    p["prot_conv_b"] = uni((hidden,), prot_dim * 3)
    p["prot_ln_g"] = jnp.ones((hidden,), jnp.float32)
    p["prot_ln_b"] = jnp.zeros((hidden,), jnp.float32)
    # nn.MultiheadAttention(hidden, num_heads): in_proj splits into q/k/v, plus out_proj
    for name in ("wq", "wk", "wv", "wo"):
        p[name] = uni((hidden, hidden), hidden)
    for name in ("bq", "bk", "bv", "bo"):
        p[name] = uni((hidden,), hidden)
    p["ca_ln_g"] = jnp.ones((hidden,), jnp.float32)
    p["ca_ln_b"] = jnp.zeros((hidden,), jnp.float32)
    p["ff_w1"] = uni((hidden, hidden), hidden)
    p["ff_b1"] = uni((hidden,), hidden)
    p["ff_w2"] = uni((hidden, hidden), hidden)
    p["ff_b2"] = uni((hidden,), hidden)
    # predictor: Linear -> Dropout -> LayerNorm -> GELU -> Linear(hidden, 1) -> Sigmoid
    p["pred_w1"] = uni((hidden, hidden), hidden)
    p["pred_b1"] = uni((hidden,), hidden)
    p["pred_ln_g"] = jnp.ones((hidden,), jnp.float32)
    p["pred_ln_b"] = jnp.zeros((hidden,), jnp.float32)
    p["pred_w2"] = uni((1, hidden), hidden)
    p["pred_b2"] = uni((1,), hidden)
    # Head-segment-sum matrix used by the in-kernel per-head score reduction.
    p["seg"] = jnp.repeat(jnp.eye(num_heads, dtype=jnp.float32),
                          hidden // num_heads, axis=0)        # (hidden, num_heads)
    return p


if __name__ == "__main__":
    B = 2
    CHEM_DIM = 16      # reduced from 384 for a small synthetic run
    PROT_DIM = 32      # reduced from 1024
    HIDDEN = 32
    HEADS = 8
    L = 2 * HIDDEN     # GLU(dim=-1) halves L; LayerNorm(hidden) requires L // 2 == HIDDEN

    key = jax.random.PRNGKey(0)
    k_chem, k_prot, k_param = jax.random.split(key, 3)
    chem_emb = jax.random.normal(k_chem, (B, L, CHEM_DIM), jnp.float32)
    protein_emb = jax.random.normal(k_prot, (B, L, PROT_DIM), jnp.float32)
    params = _init_params(k_param, CHEM_DIM, PROT_DIM, HIDDEN, HEADS)

    forward = jax.jit(tipformer_forward)
    out = jax.block_until_ready(forward(chem_emb, protein_emb, params))
    assert out.shape == (B, 1), out.shape
    assert bool(jnp.all(jnp.isfinite(out)))
    print("KERNEL_OK")
</pallas_src>

<mosaic_0001>
module attributes {stable_mosaic.version = 11 : i64} {
  func.func @_tipformer_kernel(%arg0: memref<2x64x16xf32, #tpu.memory_space<vmem>>, %arg1: memref<2x64x32xf32, #tpu.memory_space<vmem>>, %arg2: memref<48x32xf32, #tpu.memory_space<vmem>>, %arg3: memref<1x32xf32, #tpu.memory_space<vmem>>, %arg4: memref<64x1xf32, #tpu.memory_space<vmem>>, %arg5: memref<64x1xf32, #tpu.memory_space<vmem>>, %arg6: memref<96x32xf32, #tpu.memory_space<vmem>>, %arg7: memref<1x32xf32, #tpu.memory_space<vmem>>, %arg8: memref<64x1xf32, #tpu.memory_space<vmem>>, %arg9: memref<64x1xf32, #tpu.memory_space<vmem>>, %arg10: memref<32x32xf32, #tpu.memory_space<vmem>>, %arg11: memref<1x32xf32, #tpu.memory_space<vmem>>, %arg12: memref<32x64xf32, #tpu.memory_space<vmem>>, %arg13: memref<1x64xf32, #tpu.memory_space<vmem>>, %arg14: memref<32x32xf32, #tpu.memory_space<vmem>>, %arg15: memref<1x32xf32, #tpu.memory_space<vmem>>, %arg16: memref<32x8xf32, #tpu.memory_space<vmem>>, %arg17: memref<8x32xf32, #tpu.memory_space<vmem>>, %arg18: memref<1x32xf32, #tpu.memory_space<vmem>>, %arg19: memref<1x32xf32, #tpu.memory_space<vmem>>, %arg20: memref<32x32xf32, #tpu.memory_space<vmem>>, %arg21: memref<1x32xf32, #tpu.memory_space<vmem>>, %arg22: memref<32x32xf32, #tpu.memory_space<vmem>>, %arg23: memref<1x32xf32, #tpu.memory_space<vmem>>, %arg24: memref<32x32xf32, #tpu.memory_space<vmem>>, %arg25: memref<1x32xf32, #tpu.memory_space<vmem>>, %arg26: memref<1x32xf32, #tpu.memory_space<vmem>>, %arg27: memref<1x32xf32, #tpu.memory_space<vmem>>, %arg28: memref<1x32xf32, #tpu.memory_space<vmem>>, %arg29: memref<1x1xf32, #tpu.memory_space<vmem>>, %arg30: memref<2x1xf32, #tpu.memory_space<vmem>>, %arg31: memref<128x48xf32, #tpu.memory_space<vmem>>, %arg32: memref<128x96xf32, #tpu.memory_space<vmem>>) attributes {dimension_semantics = [], scalar_prefetch = 0 : i64, scratch_operands = 2 : i64, tpu.core_type = #tpu.core_type<tc>} {
    %c0 = arith.constant 0 : index
    %c0_0 = arith.constant 0 : index
    %c0_1 = arith.constant 0 : index
    %0 = vector.load %arg0[%c0, %c0_0, %c0_1] : memref<2x64x16xf32, #tpu.memory_space<vmem>>, vector<2x64x16xf32>
    %c0_2 = arith.constant 0 : index
    %c0_3 = arith.constant 0 : index
    %1 = vector.load %arg2[%c0_2, %c0_3] : memref<48x32xf32, #tpu.memory_space<vmem>>, vector<48x32xf32>
    %c0_4 = arith.constant 0 : index
    %c0_5 = arith.constant 0 : index
    %2 = vector.load %arg3[%c0_4, %c0_5] : memref<1x32xf32, #tpu.memory_space<vmem>>, vector<1x32xf32>
    %c0_6 = arith.constant 0 : index
    %c0_7 = arith.constant 0 : index
    %3 = vector.load %arg4[%c0_6, %c0_7] : memref<64x1xf32, #tpu.memory_space<vmem>>, vector<64x1xf32>
    %c0_8 = arith.constant 0 : index
    %c0_9 = arith.constant 0 : index
    %4 = vector.load %arg5[%c0_8, %c0_9] : memref<64x1xf32, #tpu.memory_space<vmem>>, vector<64x1xf32>
    %5 = vector.shape_cast %0 : vector<2x64x16xf32> to vector<128x16xf32>
    %6 = tpu.iota {dimensions = array<i32: 1>} : vector<2x64x1xi32>
    %7 = vector.shape_cast %6 : vector<2x64x1xi32> to vector<128x1xi32>
    %cst = arith.constant 0.000000e+00 : f32
    %8 = vector.broadcast %cst : f32 to vector<128x48xf32>
    %c0_10 = arith.constant 0 : index
    %c0_11 = arith.constant 0 : index
    %9 = vector.load %arg31[%c0_10, %c0_11] : memref<128x48xf32, #tpu.memory_space<vmem>>, vector<128x48xf32>
    tpu.vector_store %arg31[%c0_10, %c0_11], %8 {strides = array<i32>} : memref<128x48xf32, #tpu.memory_space<vmem>>, vector<128x48xf32>,
    %c0_12 = arith.constant 0 : index
    %c16 = arith.constant 16 : index
    %10 = vector.load %arg31[%c0_12, %c16] : memref<128x48xf32, #tpu.memory_space<vmem>>, vector<128x16xf32>
    tpu.vector_store %arg31[%c0_12, %c16], %5 {strides = array<i32>} : memref<128x48xf32, #tpu.memory_space<vmem>>, vector<128x16xf32>,
    %11 = vector.extract_strided_slice %7 {offsets = [0, 0], sizes = [127, 1], strides = [1, 1]} : vector<128x1xi32> to vector<127x1xi32>
    %c63_i32 = arith.constant 63 : i32
    %12 = vector.broadcast %c63_i32 : i32 to vector<127x1xi32>
    %13 = arith.cmpi eq, %11, %12 : vector<127x1xi32>
    %14 = vector.extract_strided_slice %5 {offsets = [0, 0], sizes = [127, 16], strides = [1, 1]} : vector<128x16xf32> to vector<127x16xf32>
    %cst_13 = arith.constant 0.000000e+00 : f32
    %15 = vector.shape_cast %13 : vector<127x1xi1> to vector<127x1xi1>
    %16 = vector.broadcast %15 : vector<127x1xi1> to vector<127x16xi1>
    %17 = vector.broadcast %cst_13 : f32 to vector<127x16xf32>
    %18 = arith.select %16, %17, %14 : vector<127x16xi1>, vector<127x16xf32>
    %c1 = arith.constant 1 : index
    %c0_14 = arith.constant 0 : index
    %19 = vector.load %arg31[%c1, %c0_14] : memref<128x48xf32, #tpu.memory_space<vmem>>, vector<127x16xf32>
    tpu.vector_store %arg31[%c1, %c0_14], %18 {strides = array<i32>} : memref<128x48xf32, #tpu.memory_space<vmem>>, vector<127x16xf32>,
    %20 = vector.extract_strided_slice %7 {offsets = [1, 0], sizes = [127, 1], strides = [1, 1]} : vector<128x1xi32> to vector<127x1xi32>
    %c0_i32 = arith.constant 0 : i32
    %21 = vector.broadcast %c0_i32 : i32 to vector<127x1xi32>
    %22 = arith.cmpi eq, %20, %21 : vector<127x1xi32>
    %23 = vector.extract_strided_slice %5 {offsets = [1, 0], sizes = [127, 16], strides = [1, 1]} : vector<128x16xf32> to vector<127x16xf32>
    %cst_15 = arith.constant 0.000000e+00 : f32
    %24 = vector.shape_cast %22 : vector<127x1xi1> to vector<127x1xi1>
    %25 = vector.broadcast %24 : vector<127x1xi1> to vector<127x16xi1>
    %26 = vector.broadcast %cst_15 : f32 to vector<127x16xf32>
    %27 = arith.select %25, %26, %23 : vector<127x16xi1>, vector<127x16xf32>
    %c0_16 = arith.constant 0 : index
    %c32 = arith.constant 32 : index
    %28 = vector.load %arg31[%c0_16, %c32] : memref<128x48xf32, #tpu.memory_space<vmem>>, vector<127x16xf32>
    tpu.vector_store %arg31[%c0_16, %c32], %27 {strides = array<i32>} : memref<128x48xf32, #tpu.memory_space<vmem>>, vector<127x16xf32>,
    %c0_17 = arith.constant 0 : index
    %c0_18 = arith.constant 0 : index
    %29 = vector.load %arg31[%c0_17, %c0_18] : memref<128x48xf32, #tpu.memory_space<vmem>>, vector<128x48xf32>
    %cst_19 = arith.constant dense<0.000000e+00> : vector<128x32xf32>
    %30 = tpu.matmul %29, %1, %cst_19 {dimension_numbers = #tpu.dot_dimension_numbers<[1], [0], [0], [1], [0, 0, 1, 1], [], []>} : vector<128x48xf32>, vector<48x32xf32>, vector<128x32xf32> -> vector<128x32xf32>
    %31 = vector.broadcast %2 : vector<1x32xf32> to vector<128x32xf32>
    %32 = arith.addf %30, %31 : vector<128x32xf32>
    %33 = vector.shape_cast %32 : vector<128x32xf32> to vector<2x64x32xf32>
    %34 = vector.extract_strided_slice %33 {offsets = [0, 0, 0], sizes = [2, 32, 32], strides = [1, 1, 1]} : vector<2x64x32xf32> to vector<2x32x32xf32>
    %35 = vector.extract_strided_slice %33 {offsets = [0, 32, 0], sizes = [2, 32, 32], strides = [1, 1, 1]} : vector<2x64x32xf32> to vector<2x32x32xf32>
    %cst_20 = arith.constant 0.000000e+00 : f32
    %36 = vector.broadcast %cst_20 : f32 to vector<2x32x32xf32>
    %37 = arith.subf %36, %35 : vector<2x32x32xf32>
    %38 = math.exp %37 : vector<2x32x32xf32>
    %cst_21 = arith.constant 1.000000e+00 : f32
    %39 = vector.broadcast %cst_21 : f32 to vector<2x32x32xf32>
    %40 = arith.addf %39, %38 : vector<2x32x32xf32>
    %cst_22 = arith.constant 1.000000e+00 : f32
    %41 = vector.broadcast %cst_22 : f32 to vector<2x32x32xf32>
    %42 = arith.divf %41, %40 : vector<2x32x32xf32>
    %43 = arith.mulf %34, %42 : vector<2x32x32xf32>
    %cst_23 = arith.constant dense<0.000000e+00> : vector<2x32xf32>
    %44 = vector.multi_reduction <add>, %43, %cst_23 [1] : vector<2x32x32xf32> to vector<2x32xf32>
    %45 = vector.shape_cast %44 : vector<2x32xf32> to vector<2x1x32xf32>
    %cst_24 = arith.constant 3.200000e+01 : f32
    %46 = vector.broadcast %cst_24 : f32 to vector<2x1x32xf32>
    %47 = arith.divf %45, %46 : vector<2x1x32xf32>
    %48 = vector.broadcast %47 : vector<2x1x32xf32> to vector<2x32x32xf32>
    %49 = arith.subf %43, %48 : vector<2x32x32xf32>
    %50 = arith.mulf %49, %49 : vector<2x32x32xf32>
    %cst_25 = arith.constant dense<0.000000e+00> : vector<2x32xf32>
    %51 = vector.multi_reduction <add>, %50, %cst_25 [1] : vector<2x32x32xf32> to vector<2x32xf32>
    %52 = vector.shape_cast %51 : vector<2x32xf32> to vector<2x1x32xf32>
    %cst_26 = arith.constant 3.200000e+01 : f32
    %53 = vector.broadcast %cst_26 : f32 to vector<2x1x32xf32>
    %54 = arith.divf %52, %53 : vector<2x1x32xf32>
    %cst_27 = arith.constant 9.99999974E-6 : f32
    %55 = vector.broadcast %cst_27 : f32 to vector<2x1x32xf32>
    %56 = arith.addf %54, %55 : vector<2x1x32xf32>
    %57 = math.rsqrt %56 : vector<2x1x32xf32>
    %58 = vector.broadcast %57 : vector<2x1x32xf32> to vector<2x32x32xf32>
    %59 = arith.mulf %49, %58 : vector<2x32x32xf32>
    %60 = vector.shape_cast %59 : vector<2x32x32xf32> to vector<64x32xf32>
    %61 = vector.broadcast %3 : vector<64x1xf32> to vector<64x32xf32>
    %62 = arith.mulf %60, %61 : vector<64x32xf32>
    %63 = vector.broadcast %4 : vector<64x1xf32> to vector<64x32xf32>
    %64 = arith.addf %62, %63 : vector<64x32xf32>
    %c0_28 = arith.constant 0 : index
    %c0_29 = arith.constant 0 : index
    %c0_30 = arith.constant 0 : index
    %65 = vector.load %arg1[%c0_28, %c0_29, %c0_30] : memref<2x64x32xf32, #tpu.memory_space<vmem>>, vector<2x64x32xf32>
    %c0_31 = arith.constant 0 : index
    %c0_32 = arith.constant 0 : index
    %66 = vector.load %arg6[%c0_31, %c0_32] : memref<96x32xf32, #tpu.memory_space<vmem>>, vector<96x32xf32>
    %c0_33 = arith.constant 0 : index
    %c0_34 = arith.constant 0 : index
    %67 = vector.load %arg7[%c0_33, %c0_34] : memref<1x32xf32, #tpu.memory_space<vmem>>, vector<1x32xf32>
    %c0_35 = arith.constant 0 : index
    %c0_36 = arith.constant 0 : index
    %68 = vector.load %arg8[%c0_35, %c0_36] : memref<64x1xf32, #tpu.memory_space<vmem>>, vector<64x1xf32>
    %c0_37 = arith.constant 0 : index
    %c0_38 = arith.constant 0 : index
    %69 = vector.load %arg9[%c0_37, %c0_38] : memref<64x1xf32, #tpu.memory_space<vmem>>, vector<64x1xf32>
    %70 = vector.shape_cast %65 : vector<2x64x32xf32> to vector<128x32xf32>
    %71 = tpu.iota {dimensions = array<i32: 1>} : vector<2x64x1xi32>
    %72 = vector.shape_cast %71 : vector<2x64x1xi32> to vector<128x1xi32>
    %cst_39 = arith.constant 0.000000e+00 : f32
    %73 = vector.broadcast %cst_39 : f32 to vector<128x96xf32>
    %c0_40 = arith.constant 0 : index
    %c0_41 = arith.constant 0 : index
    %74 = vector.load %arg32[%c0_40, %c0_41] : memref<128x96xf32, #tpu.memory_space<vmem>>, vector<128x96xf32>
    tpu.vector_store %arg32[%c0_40, %c0_41], %73 {strides = array<i32>} : memref<128x96xf32, #tpu.memory_space<vmem>>, vector<128x96xf32>,
    %c0_42 = arith.constant 0 : index
    %c32_43 = arith.constant 32 : index
    %75 = vector.load %arg32[%c0_42, %c32_43] : memref<128x96xf32, #tpu.memory_space<vmem>>, vector<128x32xf32>
    tpu.vector_store %arg32[%c0_42, %c32_43], %70 {strides = array<i32>} : memref<128x96xf32, #tpu.memory_space<vmem>>, vector<128x32xf32>,
    %76 = vector.extract_strided_slice %72 {offsets = [0, 0], sizes = [127, 1], strides = [1, 1]} : vector<128x1xi32> to vector<127x1xi32>
    %c63_i32_44 = arith.constant 63 : i32
    %77 = vector.broadcast %c63_i32_44 : i32 to vector<127x1xi32>
    %78 = arith.cmpi eq, %76, %77 : vector<127x1xi32>
    %79 = vector.extract_strided_slice %70 {offsets = [0, 0], sizes = [127, 32], strides = [1, 1]} : vector<128x32xf32> to vector<127x32xf32>
    %cst_45 = arith.constant 0.000000e+00 : f32
    %80 = vector.shape_cast %78 : vector<127x1xi1> to vector<127x1xi1>
    %81 = vector.broadcast %80 : vector<127x1xi1> to vector<127x32xi1>
    %82 = vector.broadcast %cst_45 : f32 to vector<127x32xf32>
    %83 = arith.select %81, %82, %79 : vector<127x32xi1>, vector<127x32xf32>
    %c1_46 = arith.constant 1 : index
    %c0_47 = arith.constant 0 : index
    %84 = vector.load %arg32[%c1_46, %c0_47] : memref<128x96xf32, #tpu.memory_space<vmem>>, vector<127x32xf32>
    tpu.vector_store %arg32[%c1_46, %c0_47], %83 {strides = array<i32>} : memref<128x96xf32, #tpu.memory_space<vmem>>, vector<127x32xf32>,
    %85 = vector.extract_strided_slice %72 {offsets = [1, 0], sizes = [127, 1], strides = [1, 1]} : vector<128x1xi32> to vector<127x1xi32>
    %c0_i32_48 = arith.constant 0 : i32
    %86 = vector.broadcast %c0_i32_48 : i32 to vector<127x1xi32>
    %87 = arith.cmpi eq, %85, %86 : vector<127x1xi32>
    %88 = vector.extract_strided_slice %70 {offsets = [1, 0], sizes = [127, 32], strides = [1, 1]} : vector<128x32xf32> to vector<127x32xf32>
    %cst_49 = arith.constant 0.000000e+00 : f32
    %89 = vector.shape_cast %87 : vector<127x1xi1> to vector<127x1xi1>
    %90 = vector.broadcast %89 : vector<127x1xi1> to vector<127x32xi1>
    %91 = vector.broadcast %cst_49 : f32 to vector<127x32xf32>
    %92 = arith.select %90, %91, %88 : vector<127x32xi1>, vector<127x32xf32>
    %c0_50 = arith.constant 0 : index
    %c64 = arith.constant 64 : index
    %93 = vector.load %arg32[%c0_50, %c64] : memref<128x96xf32, #tpu.memory_space<vmem>>, vector<127x32xf32>
    tpu.vector_store %arg32[%c0_50, %c64], %92 {strides = array<i32>} : memref<128x96xf32, #tpu.memory_space<vmem>>, vector<127x32xf32>,
    %c0_51 = arith.constant 0 : index
    %c0_52 = arith.constant 0 : index
    %94 = vector.load %arg32[%c0_51, %c0_52] : memref<128x96xf32, #tpu.memory_space<vmem>>, vector<128x96xf32>
    %cst_53 = arith.constant dense<0.000000e+00> : vector<128x32xf32>
    %95 = tpu.matmul %94, %66, %cst_53 {dimension_numbers = #tpu.dot_dimension_numbers<[1], [0], [0], [1], [0, 0, 1, 1], [], []>} : vector<128x96xf32>, vector<96x32xf32>, vector<128x32xf32> -> vector<128x32xf32>
    %96 = vector.broadcast %67 : vector<1x32xf32> to vector<128x32xf32>
    %97 = arith.addf %95, %96 : vector<128x32xf32>
    %98 = vector.shape_cast %97 : vector<128x32xf32> to vector<2x64x32xf32>
    %99 = vector.extract_strided_slice %98 {offsets = [0, 0, 0], sizes = [2, 32, 32], strides = [1, 1, 1]} : vector<2x64x32xf32> to vector<2x32x32xf32>
    %100 = vector.extract_strided_slice %98 {offsets = [0, 32, 0], sizes = [2, 32, 32], strides = [1, 1, 1]} : vector<2x64x32xf32> to vector<2x32x32xf32>
    %cst_54 = arith.constant 0.000000e+00 : f32
    %101 = vector.broadcast %cst_54 : f32 to vector<2x32x32xf32>
    %102 = arith.subf %101, %100 : vector<2x32x32xf32>
    %103 = math.exp %102 : vector<2x32x32xf32>
    %cst_55 = arith.constant 1.000000e+00 : f32
    %104 = vector.broadcast %cst_55 : f32 to vector<2x32x32xf32>
    %105 = arith.addf %104, %103 : vector<2x32x32xf32>
    %cst_56 = arith.constant 1.000000e+00 : f32
    %106 = vector.broadcast %cst_56 : f32 to vector<2x32x32xf32>
    %107 = arith.divf %106, %105 : vector<2x32x32xf32>
    %108 = arith.mulf %99, %107 : vector<2x32x32xf32>
    %cst_57 = arith.constant dense<0.000000e+00> : vector<2x32xf32>
    %109 = vector.multi_reduction <add>, %108, %cst_57 [1] : vector<2x32x32xf32> to vector<2x32xf32>
    %110 = vector.shape_cast %109 : vector<2x32xf32> to vector<2x1x32xf32>
    %cst_58 = arith.constant 3.200000e+01 : f32
    %111 = vector.broadcast %cst_58 : f32 to vector<2x1x32xf32>
    %112 = arith.divf %110, %111 : vector<2x1x32xf32>
    %113 = vector.broadcast %112 : vector<2x1x32xf32> to vector<2x32x32xf32>
    %114 = arith.subf %108, %113 : vector<2x32x32xf32>
    %115 = arith.mulf %114, %114 : vector<2x32x32xf32>
    %cst_59 = arith.constant dense<0.000000e+00> : vector<2x32xf32>
    %116 = vector.multi_reduction <add>, %115, %cst_59 [1] : vector<2x32x32xf32> to vector<2x32xf32>
    %117 = vector.shape_cast %116 : vector<2x32xf32> to vector<2x1x32xf32>
    %cst_60 = arith.constant 3.200000e+01 : f32
    %118 = vector.broadcast %cst_60 : f32 to vector<2x1x32xf32>
    %119 = arith.divf %117, %118 : vector<2x1x32xf32>
    %cst_61 = arith.constant 9.99999974E-6 : f32
    %120 = vector.broadcast %cst_61 : f32 to vector<2x1x32xf32>
    %121 = arith.addf %119, %120 : vector<2x1x32xf32>
    %122 = math.rsqrt %121 : vector<2x1x32xf32>
    %123 = vector.broadcast %122 : vector<2x1x32xf32> to vector<2x32x32xf32>
    %124 = arith.mulf %114, %123 : vector<2x32x32xf32>
    %125 = vector.shape_cast %124 : vector<2x32x32xf32> to vector<64x32xf32>
    %126 = vector.broadcast %68 : vector<64x1xf32> to vector<64x32xf32>
    %127 = arith.mulf %125, %126 : vector<64x32xf32>
    %128 = vector.broadcast %69 : vector<64x1xf32> to vector<64x32xf32>
    %129 = arith.addf %127, %128 : vector<64x32xf32>
    %c0_62 = arith.constant 0 : index
    %c0_63 = arith.constant 0 : index
    %130 = vector.load %arg16[%c0_62, %c0_63] : memref<32x8xf32, #tpu.memory_space<vmem>>, vector<32x8xf32>
    %c0_64 = arith.constant 0 : index
    %c0_65 = arith.constant 0 : index
    %131 = vector.load %arg17[%c0_64, %c0_65] : memref<8x32xf32, #tpu.memory_space<vmem>>, vector<8x32xf32>
    %c0_66 = arith.constant 0 : index
    %c0_67 = arith.constant 0 : index
    %132 = vector.load %arg10[%c0_66, %c0_67] : memref<32x32xf32, #tpu.memory_space<vmem>>, vector<32x32xf32>
    %cst_68 = arith.constant dense<0.000000e+00> : vector<64x32xf32>
    %133 = tpu.matmul %64, %132, %cst_68 {dimension_numbers = #tpu.dot_dimension_numbers<[1], [0], [0], [1], [0, 0, 1, 1], [], []>} : vector<64x32xf32>, vector<32x32xf32>, vector<64x32xf32> -> vector<64x32xf32>
    %c0_69 = arith.constant 0 : index
    %c0_70 = arith.constant 0 : index
    %134 = vector.load %arg11[%c0_69, %c0_70] : memref<1x32xf32, #tpu.memory_space<vmem>>, vector<1x32xf32>
    %135 = vector.broadcast %134 : vector<1x32xf32> to vector<64x32xf32>
    %136 = arith.addf %133, %135 : vector<64x32xf32>
    %c0_71 = arith.constant 0 : index
    %c0_72 = arith.constant 0 : index
    %137 = vector.load %arg12[%c0_71, %c0_72] : memref<32x64xf32, #tpu.memory_space<vmem>>, vector<32x64xf32>
    %cst_73 = arith.constant dense<0.000000e+00> : vector<64x64xf32>
    %138 = tpu.matmul %129, %137, %cst_73 {dimension_numbers = #tpu.dot_dimension_numbers<[1], [0], [0], [1], [0, 0, 1, 1], [], []>} : vector<64x32xf32>, vector<32x64xf32>, vector<64x64xf32> -> vector<64x64xf32>
    %c0_74 = arith.constant 0 : index
    %c0_75 = arith.constant 0 : index
    %139 = vector.load %arg13[%c0_74, %c0_75] : memref<1x64xf32, #tpu.memory_space<vmem>>, vector<1x64xf32>
    %140 = vector.broadcast %139 : vector<1x64xf32> to vector<64x64xf32>
    %141 = arith.addf %138, %140 : vector<64x64xf32>
    %142 = vector.extract_strided_slice %141 {offsets = [0, 0], sizes = [64, 32], strides = [1, 1]} : vector<64x64xf32> to vector<64x32xf32>
    %143 = vector.extract_strided_slice %141 {offsets = [0, 32], sizes = [64, 32], strides = [1, 1]} : vector<64x64xf32> to vector<64x32xf32>
    %144 = vector.extract_strided_slice %142 {offsets = [0, 0], sizes = [32, 32], strides = [1, 1]} : vector<64x32xf32> to vector<32x32xf32>
    %145 = tpu.concatenate %144, %144 in 0 : vector<32x32xf32>, vector<32x32xf32> -> vector<64x32xf32>
    %146 = arith.mulf %136, %145 : vector<64x32xf32>
    %cst_76 = arith.constant dense<0.000000e+00> : vector<64x8xf32>
    %147 = tpu.matmul %146, %130, %cst_76 {dimension_numbers = #tpu.dot_dimension_numbers<[1], [0], [0], [1], [0, 0, 1, 1], [], []>} : vector<64x32xf32>, vector<32x8xf32>, vector<64x8xf32> -> vector<64x8xf32>
    %cst_77 = arith.constant 5.000000e-01 : f32
    %148 = vector.broadcast %cst_77 : f32 to vector<64x8xf32>
    %149 = arith.mulf %147, %148 : vector<64x8xf32>
    %150 = vector.extract_strided_slice %142 {offsets = [32, 0], sizes = [32, 32], strides = [1, 1]} : vector<64x32xf32> to vector<32x32xf32>
    %151 = tpu.concatenate %150, %150 in 0 : vector<32x32xf32>, vector<32x32xf32> -> vector<64x32xf32>
    %152 = arith.mulf %136, %151 : vector<64x32xf32>
    %cst_78 = arith.constant dense<0.000000e+00> : vector<64x8xf32>
    %153 = tpu.matmul %152, %130, %cst_78 {dimension_numbers = #tpu.dot_dimension_numbers<[1], [0], [0], [1], [0, 0, 1, 1], [], []>} : vector<64x32xf32>, vector<32x8xf32>, vector<64x8xf32> -> vector<64x8xf32>
    %cst_79 = arith.constant 5.000000e-01 : f32
    %154 = vector.broadcast %cst_79 : f32 to vector<64x8xf32>
    %155 = arith.mulf %153, %154 : vector<64x8xf32>
    %156 = arith.maximumf %149, %155 : vector<64x8xf32>
    %157 = arith.subf %149, %156 : vector<64x8xf32>
    %158 = math.exp %157 : vector<64x8xf32>
    %159 = arith.subf %155, %156 : vector<64x8xf32>
    %160 = math.exp %159 : vector<64x8xf32>
    %161 = arith.addf %158, %160 : vector<64x8xf32>
    %162 = tpu.reciprocal %161 {approx = true} : vector<64x8xf32> -> vector<64x8xf32>
    %cst_80 = arith.constant 0.000000e+00 : f32
    %163 = vector.broadcast %cst_80 : f32 to vector<64x32xf32>
    %164 = arith.mulf %158, %162 : vector<64x8xf32>
    %cst_81 = arith.constant dense<0.000000e+00> : vector<64x32xf32>
    %165 = tpu.matmul %164, %131, %cst_81 {dimension_numbers = #tpu.dot_dimension_numbers<[1], [0], [0], [1], [0, 0, 1, 1], [], []>} : vector<64x8xf32>, vector<8x32xf32>, vector<64x32xf32> -> vector<64x32xf32>
    %166 = vector.extract_strided_slice %143 {offsets = [0, 0], sizes = [32, 32], strides = [1, 1]} : vector<64x32xf32> to vector<32x32xf32>
    %167 = tpu.concatenate %166, %166 in 0 : vector<32x32xf32>, vector<32x32xf32> -> vector<64x32xf32>
    %168 = arith.mulf %165, %167 : vector<64x32xf32>
    %169 = arith.addf %163, %168 : vector<64x32xf32>
    %170 = arith.mulf %160, %162 : vector<64x8xf32>
    %cst_82 = arith.constant dense<0.000000e+00> : vector<64x32xf32>
    %171 = tpu.matmul %170, %131, %cst_82 {dimension_numbers = #tpu.dot_dimension_numbers<[1], [0], [0], [1], [0, 0, 1, 1], [], []>} : vector<64x8xf32>, vector<8x32xf32>, vector<64x32xf32> -> vector<64x32xf32>
    %172 = vector.extract_strided_slice %143 {offsets = [32, 0], sizes = [32, 32], strides = [1, 1]} : vector<64x32xf32> to vector<32x32xf32>
    %173 = tpu.concatenate %172, %172 in 0 : vector<32x32xf32>, vector<32x32xf32> -> vector<64x32xf32>
    %174 = arith.mulf %171, %173 : vector<64x32xf32>
    %175 = arith.addf %169, %174 : vector<64x32xf32>
    %c0_83 = arith.constant 0 : index
    %c0_84 = arith.constant 0 : index
    %176 = vector.load %arg14[%c0_83, %c0_84] : memref<32x32xf32, #tpu.memory_space<vmem>>, vector<32x32xf32>
    %cst_85 = arith.constant dense<0.000000e+00> : vector<64x32xf32>
    %177 = tpu.matmul %175, %176, %cst_85 {dimension_numbers = #tpu.dot_dimension_numbers<[1], [0], [0], [1], [0, 0, 1, 1], [], []>} : vector<64x32xf32>, vector<32x32xf32>, vector<64x32xf32> -> vector<64x32xf32>
    %c0_86 = arith.constant 0 : index
    %c0_87 = arith.constant 0 : index
    %178 = vector.load %arg15[%c0_86, %c0_87] : memref<1x32xf32, #tpu.memory_space<vmem>>, vector<1x32xf32>
    %179 = vector.broadcast %178 : vector<1x32xf32> to vector<64x32xf32>
    %180 = arith.addf %177, %179 : vector<64x32xf32>
    %c0_88 = arith.constant 0 : index
    %c0_89 = arith.constant 0 : index
    %181 = vector.load %arg18[%c0_88, %c0_89] : memref<1x32xf32, #tpu.memory_space<vmem>>, vector<1x32xf32>
    %c0_90 = arith.constant 0 : index
    %c0_91 = arith.constant 0 : index
    %182 = vector.load %arg19[%c0_90, %c0_91] : memref<1x32xf32, #tpu.memory_space<vmem>>, vector<1x32xf32>
    %183 = arith.addf %64, %180 : vector<64x32xf32>
    %cst_92 = arith.constant dense<0.000000e+00> : vector<64xf32>
    %184 = vector.multi_reduction <add>, %183, %cst_92 [1] : vector<64x32xf32> to vector<64xf32>
    %185 = vector.shape_cast %184 : vector<64xf32> to vector<64x1xf32>
    %cst_93 = arith.constant 3.200000e+01 : f32
    %186 = vector.broadcast %cst_93 : f32 to vector<64x1xf32>
    %187 = arith.divf %185, %186 : vector<64x1xf32>
    %188 = vector.broadcast %187 : vector<64x1xf32> to vector<64x32xf32>
    %189 = arith.subf %183, %188 : vector<64x32xf32>
    %190 = arith.mulf %189, %189 : vector<64x32xf32>
    %cst_94 = arith.constant dense<0.000000e+00> : vector<64xf32>
    %191 = vector.multi_reduction <add>, %190, %cst_94 [1] : vector<64x32xf32> to vector<64xf32>
    %192 = vector.shape_cast %191 : vector<64xf32> to vector<64x1xf32>
    %cst_95 = arith.constant 3.200000e+01 : f32
    %193 = vector.broadcast %cst_95 : f32 to vector<64x1xf32>
    %194 = arith.divf %192, %193 : vector<64x1xf32>
    %cst_96 = arith.constant 9.99999974E-6 : f32
    %195 = vector.broadcast %cst_96 : f32 to vector<64x1xf32>
    %196 = arith.addf %194, %195 : vector<64x1xf32>
    %197 = math.rsqrt %196 : vector<64x1xf32>
    %198 = vector.broadcast %197 : vector<64x1xf32> to vector<64x32xf32>
    %199 = arith.mulf %189, %198 : vector<64x32xf32>
    %200 = vector.broadcast %181 : vector<1x32xf32> to vector<64x32xf32>
    %201 = arith.mulf %199, %200 : vector<64x32xf32>
    %202 = vector.broadcast %182 : vector<1x32xf32> to vector<64x32xf32>
    %203 = arith.addf %201, %202 : vector<64x32xf32>
    %c0_97 = arith.constant 0 : index
    %c0_98 = arith.constant 0 : index
    %204 = vector.load %arg20[%c0_97, %c0_98] : memref<32x32xf32, #tpu.memory_space<vmem>>, vector<32x32xf32>
    %cst_99 = arith.constant dense<0.000000e+00> : vector<64x32xf32>
    %205 = tpu.matmul %203, %204, %cst_99 {dimension_numbers = #tpu.dot_dimension_numbers<[1], [0], [0], [1], [0, 0, 1, 1], [], []>} : vector<64x32xf32>, vector<32x32xf32>, vector<64x32xf32> -> vector<64x32xf32>
    %c0_100 = arith.constant 0 : index
    %c0_101 = arith.constant 0 : index
    %206 = vector.load %arg21[%c0_100, %c0_101] : memref<1x32xf32, #tpu.memory_space<vmem>>, vector<1x32xf32>
    %207 = vector.broadcast %206 : vector<1x32xf32> to vector<64x32xf32>
    %208 = arith.addf %205, %207 : vector<64x32xf32>
    %cst_102 = arith.constant 5.000000e-01 : f32
    %209 = vector.broadcast %cst_102 : f32 to vector<64x32xf32>
    %210 = arith.mulf %209, %208 : vector<64x32xf32>
    %cst_103 = arith.constant 0.707106769 : f32
    %211 = vector.broadcast %cst_103 : f32 to vector<64x32xf32>
    %212 = arith.mulf %208, %211 : vector<64x32xf32>
    %cst_104 = arith.constant 0.000000e+00 : f32
    %213 = vector.broadcast %cst_104 : f32 to vector<64x32xf32>
    %214 = arith.cmpf oge, %212, %213 : vector<64x32xf32>
    %cst_105 = arith.constant 1.000000e+00 : f32
    %cst_106 = arith.constant -1.000000e+00 : f32
    %215 = vector.broadcast %cst_105 : f32 to vector<64x32xf32>
    %216 = vector.broadcast %cst_106 : f32 to vector<64x32xf32>
    %217 = arith.select %214, %215, %216 : vector<64x32xi1>, vector<64x32xf32>
    %218 = math.absf %212 : vector<64x32xf32>
    %cst_107 = arith.constant 0.327591091 : f32
    %219 = vector.broadcast %cst_107 : f32 to vector<64x32xf32>
    %220 = arith.mulf %219, %218 : vector<64x32xf32>
    %cst_108 = arith.constant 1.000000e+00 : f32
    %221 = vector.broadcast %cst_108 : f32 to vector<64x32xf32>
    %222 = arith.addf %221, %220 : vector<64x32xf32>
    %cst_109 = arith.constant 1.000000e+00 : f32
    %223 = vector.broadcast %cst_109 : f32 to vector<64x32xf32>
    %224 = arith.divf %223, %222 : vector<64x32xf32>
    %cst_110 = arith.constant 1.06140542 : f32
    %225 = vector.broadcast %cst_110 : f32 to vector<64x32xf32>
    %226 = arith.mulf %225, %224 : vector<64x32xf32>
    %cst_111 = arith.constant -1.45315206 : f32
    %227 = vector.broadcast %cst_111 : f32 to vector<64x32xf32>
    %228 = arith.addf %226, %227 : vector<64x32xf32>
    %229 = arith.mulf %228, %224 : vector<64x32xf32>
    %cst_112 = arith.constant 1.42141378 : f32
    %230 = vector.broadcast %cst_112 : f32 to vector<64x32xf32>
    %231 = arith.addf %229, %230 : vector<64x32xf32>
    %232 = arith.mulf %231, %224 : vector<64x32xf32>
    %cst_113 = arith.constant -0.284496725 : f32
    %233 = vector.broadcast %cst_113 : f32 to vector<64x32xf32>
    %234 = arith.addf %232, %233 : vector<64x32xf32>
    %235 = arith.mulf %234, %224 : vector<64x32xf32>
    %cst_114 = arith.constant 0.254829586 : f32
    %236 = vector.broadcast %cst_114 : f32 to vector<64x32xf32>
    %237 = arith.addf %235, %236 : vector<64x32xf32>
    %238 = arith.mulf %237, %224 : vector<64x32xf32>
    %cst_115 = arith.constant 0.000000e+00 : f32
    %239 = vector.broadcast %cst_115 : f32 to vector<64x32xf32>
    %240 = arith.subf %239, %218 : vector<64x32xf32>
    %241 = arith.mulf %240, %218 : vector<64x32xf32>
    %242 = math.exp %241 : vector<64x32xf32>
    %243 = arith.mulf %238, %242 : vector<64x32xf32>
    %cst_116 = arith.constant 1.000000e+00 : f32
    %244 = vector.broadcast %cst_116 : f32 to vector<64x32xf32>
    %245 = arith.subf %244, %243 : vector<64x32xf32>
    %246 = arith.mulf %217, %245 : vector<64x32xf32>
    %cst_117 = arith.constant 1.000000e+00 : f32
    %247 = vector.broadcast %cst_117 : f32 to vector<64x32xf32>
    %248 = arith.addf %247, %246 : vector<64x32xf32>
    %249 = arith.mulf %210, %248 : vector<64x32xf32>
    %c0_118 = arith.constant 0 : index
    %c0_119 = arith.constant 0 : index
    %250 = vector.load %arg22[%c0_118, %c0_119] : memref<32x32xf32, #tpu.memory_space<vmem>>, vector<32x32xf32>
    %cst_120 = arith.constant dense<0.000000e+00> : vector<64x32xf32>
    %251 = tpu.matmul %249, %250, %cst_120 {dimension_numbers = #tpu.dot_dimension_numbers<[1], [0], [0], [1], [0, 0, 1, 1], [], []>} : vector<64x32xf32>, vector<32x32xf32>, vector<64x32xf32> -> vector<64x32xf32>
    %c0_121 = arith.constant 0 : index
    %c0_122 = arith.constant 0 : index
    %252 = vector.load %arg23[%c0_121, %c0_122] : memref<1x32xf32, #tpu.memory_space<vmem>>, vector<1x32xf32>
    %253 = vector.broadcast %252 : vector<1x32xf32> to vector<64x32xf32>
    %254 = arith.addf %251, %253 : vector<64x32xf32>
    %255 = arith.addf %203, %254 : vector<64x32xf32>
    %cst_123 = arith.constant dense<0.000000e+00> : vector<64xf32>
    %256 = vector.multi_reduction <add>, %255, %cst_123 [1] : vector<64x32xf32> to vector<64xf32>
    %257 = vector.shape_cast %256 : vector<64xf32> to vector<64x1xf32>
    %cst_124 = arith.constant 3.200000e+01 : f32
    %258 = vector.broadcast %cst_124 : f32 to vector<64x1xf32>
    %259 = arith.divf %257, %258 : vector<64x1xf32>
    %260 = vector.broadcast %259 : vector<64x1xf32> to vector<64x32xf32>
    %261 = arith.subf %255, %260 : vector<64x32xf32>
    %262 = arith.mulf %261, %261 : vector<64x32xf32>
    %cst_125 = arith.constant dense<0.000000e+00> : vector<64xf32>
    %263 = vector.multi_reduction <add>, %262, %cst_125 [1] : vector<64x32xf32> to vector<64xf32>
    %264 = vector.shape_cast %263 : vector<64xf32> to vector<64x1xf32>
    %cst_126 = arith.constant 3.200000e+01 : f32
    %265 = vector.broadcast %cst_126 : f32 to vector<64x1xf32>
    %266 = arith.divf %264, %265 : vector<64x1xf32>
    %cst_127 = arith.constant 9.99999974E-6 : f32
    %267 = vector.broadcast %cst_127 : f32 to vector<64x1xf32>
    %268 = arith.addf %266, %267 : vector<64x1xf32>
    %269 = math.rsqrt %268 : vector<64x1xf32>
    %270 = vector.broadcast %269 : vector<64x1xf32> to vector<64x32xf32>
    %271 = arith.mulf %261, %270 : vector<64x32xf32>
    %272 = vector.broadcast %181 : vector<1x32xf32> to vector<64x32xf32>
    %273 = arith.mulf %271, %272 : vector<64x32xf32>
    %274 = vector.broadcast %182 : vector<1x32xf32> to vector<64x32xf32>
    %275 = arith.addf %273, %274 : vector<64x32xf32>
    %276 = vector.shape_cast %275 : vector<64x32xf32> to vector<2x32x32xf32>
    %cst_128 = arith.constant dense<0.000000e+00> : vector<2x32xf32>
    %277 = vector.multi_reduction <add>, %276, %cst_128 [1] : vector<2x32x32xf32> to vector<2x32xf32>
    %cst_129 = arith.constant 3.200000e+01 : f32
    %278 = vector.broadcast %cst_129 : f32 to vector<2x32xf32>
    %279 = arith.divf %277, %278 : vector<2x32xf32>
    %c0_130 = arith.constant 0 : index
    %c0_131 = arith.constant 0 : index
    %280 = vector.load %arg24[%c0_130, %c0_131] : memref<32x32xf32, #tpu.memory_space<vmem>>, vector<32x32xf32>
    %cst_132 = arith.constant dense<0.000000e+00> : vector<2x32xf32>
    %281 = tpu.matmul %279, %280, %cst_132 {dimension_numbers = #tpu.dot_dimension_numbers<[1], [0], [0], [1], [0, 0, 1, 1], [], []>} : vector<2x32xf32>, vector<32x32xf32>, vector<2x32xf32> -> vector<2x32xf32>
    %c0_133 = arith.constant 0 : index
    %c0_134 = arith.constant 0 : index
    %282 = vector.load %arg25[%c0_133, %c0_134] : memref<1x32xf32, #tpu.memory_space<vmem>>, vector<1x32xf32>
    %283 = vector.broadcast %282 : vector<1x32xf32> to vector<2x32xf32>
    %284 = arith.addf %281, %283 : vector<2x32xf32>
    %c0_135 = arith.constant 0 : index
    %c0_136 = arith.constant 0 : index
    %285 = vector.load %arg26[%c0_135, %c0_136] : memref<1x32xf32, #tpu.memory_space<vmem>>, vector<1x32xf32>
    %c0_137 = arith.constant 0 : index
    %c0_138 = arith.constant 0 : index
    %286 = vector.load %arg27[%c0_137, %c0_138] : memref<1x32xf32, #tpu.memory_space<vmem>>, vector<1x32xf32>
    %cst_139 = arith.constant dense<0.000000e+00> : vector<2xf32>
    %287 = vector.multi_reduction <add>, %284, %cst_139 [1] : vector<2x32xf32> to vector<2xf32>
    %288 = vector.shape_cast %287 : vector<2xf32> to vector<2x1xf32>
    %cst_140 = arith.constant 3.200000e+01 : f32
    %289 = vector.broadcast %cst_140 : f32 to vector<2x1xf32>
    %290 = arith.divf %288, %289 : vector<2x1xf32>
    %291 = vector.broadcast %290 : vector<2x1xf32> to vector<2x32xf32>
    %292 = arith.subf %284, %291 : vector<2x32xf32>
    %293 = arith.mulf %292, %292 : vector<2x32xf32>
    %cst_141 = arith.constant dense<0.000000e+00> : vector<2xf32>
    %294 = vector.multi_reduction <add>, %293, %cst_141 [1] : vector<2x32xf32> to vector<2xf32>
    %295 = vector.shape_cast %294 : vector<2xf32> to vector<2x1xf32>
    %cst_142 = arith.constant 3.200000e+01 : f32
    %296 = vector.broadcast %cst_142 : f32 to vector<2x1xf32>
    %297 = arith.divf %295, %296 : vector<2x1xf32>
    %cst_143 = arith.constant 9.99999974E-6 : f32
    %298 = vector.broadcast %cst_143 : f32 to vector<2x1xf32>
    %299 = arith.addf %297, %298 : vector<2x1xf32>
    %300 = math.rsqrt %299 : vector<2x1xf32>
    %301 = vector.broadcast %300 : vector<2x1xf32> to vector<2x32xf32>
    %302 = arith.mulf %292, %301 : vector<2x32xf32>
    %303 = vector.broadcast %285 : vector<1x32xf32> to vector<2x32xf32>
    %304 = arith.mulf %302, %303 : vector<2x32xf32>
    %305 = vector.broadcast %286 : vector<1x32xf32> to vector<2x32xf32>
    %306 = arith.addf %304, %305 : vector<2x32xf32>
    %cst_144 = arith.constant 5.000000e-01 : f32
    %307 = vector.broadcast %cst_144 : f32 to vector<2x32xf32>
    %308 = arith.mulf %307, %306 : vector<2x32xf32>
    %cst_145 = arith.constant 0.707106769 : f32
    %309 = vector.broadcast %cst_145 : f32 to vector<2x32xf32>
    %310 = arith.mulf %306, %309 : vector<2x32xf32>
    %cst_146 = arith.constant 0.000000e+00 : f32
    %311 = vector.broadcast %cst_146 : f32 to vector<2x32xf32>
    %312 = arith.cmpf oge, %310, %311 : vector<2x32xf32>
    %cst_147 = arith.constant 1.000000e+00 : f32
    %cst_148 = arith.constant -1.000000e+00 : f32
    %313 = vector.broadcast %cst_147 : f32 to vector<2x32xf32>
    %314 = vector.broadcast %cst_148 : f32 to vector<2x32xf32>
    %315 = arith.select %312, %313, %314 : vector<2x32xi1>, vector<2x32xf32>
    %316 = math.absf %310 : vector<2x32xf32>
    %cst_149 = arith.constant 0.327591091 : f32
    %317 = vector.broadcast %cst_149 : f32 to vector<2x32xf32>
    %318 = arith.mulf %317, %316 : vector<2x32xf32>
    %cst_150 = arith.constant 1.000000e+00 : f32
    %319 = vector.broadcast %cst_150 : f32 to vector<2x32xf32>
    %320 = arith.addf %319, %318 : vector<2x32xf32>
    %cst_151 = arith.constant 1.000000e+00 : f32
    %321 = vector.broadcast %cst_151 : f32 to vector<2x32xf32>
    %322 = arith.divf %321, %320 : vector<2x32xf32>
    %cst_152 = arith.constant 1.06140542 : f32
    %323 = vector.broadcast %cst_152 : f32 to vector<2x32xf32>
    %324 = arith.mulf %323, %322 : vector<2x32xf32>
    %cst_153 = arith.constant -1.45315206 : f32
    %325 = vector.broadcast %cst_153 : f32 to vector<2x32xf32>
    %326 = arith.addf %324, %325 : vector<2x32xf32>
    %327 = arith.mulf %326, %322 : vector<2x32xf32>
    %cst_154 = arith.constant 1.42141378 : f32
    %328 = vector.broadcast %cst_154 : f32 to vector<2x32xf32>
    %329 = arith.addf %327, %328 : vector<2x32xf32>
    %330 = arith.mulf %329, %322 : vector<2x32xf32>
    %cst_155 = arith.constant -0.284496725 : f32
    %331 = vector.broadcast %cst_155 : f32 to vector<2x32xf32>
    %332 = arith.addf %330, %331 : vector<2x32xf32>
    %333 = arith.mulf %332, %322 : vector<2x32xf32>
    %cst_156 = arith.constant 0.254829586 : f32
    %334 = vector.broadcast %cst_156 : f32 to vector<2x32xf32>
    %335 = arith.addf %333, %334 : vector<2x32xf32>
    %336 = arith.mulf %335, %322 : vector<2x32xf32>
    %cst_157 = arith.constant 0.000000e+00 : f32
    %337 = vector.broadcast %cst_157 : f32 to vector<2x32xf32>
    %338 = arith.subf %337, %316 : vector<2x32xf32>
    %339 = arith.mulf %338, %316 : vector<2x32xf32>
    %340 = math.exp %339 : vector<2x32xf32>
    %341 = arith.mulf %336, %340 : vector<2x32xf32>
    %cst_158 = arith.constant 1.000000e+00 : f32
    %342 = vector.broadcast %cst_158 : f32 to vector<2x32xf32>
    %343 = arith.subf %342, %341 : vector<2x32xf32>
    %344 = arith.mulf %315, %343 : vector<2x32xf32>
    %cst_159 = arith.constant 1.000000e+00 : f32
    %345 = vector.broadcast %cst_159 : f32 to vector<2x32xf32>
    %346 = arith.addf %345, %344 : vector<2x32xf32>
    %347 = arith.mulf %308, %346 : vector<2x32xf32>
    %c0_160 = arith.constant 0 : index
    %c0_161 = arith.constant 0 : index
    %348 = vector.load %arg28[%c0_160, %c0_161] : memref<1x32xf32, #tpu.memory_space<vmem>>, vector<1x32xf32>
    %349 = vector.broadcast %348 : vector<1x32xf32> to vector<2x32xf32>
    %350 = arith.mulf %347, %349 : vector<2x32xf32>
    %cst_162 = arith.constant dense<0.000000e+00> : vector<2xf32>
    %351 = vector.multi_reduction <add>, %350, %cst_162 [1] : vector<2x32xf32> to vector<2xf32>
    %352 = vector.shape_cast %351 : vector<2xf32> to vector<2x1xf32>
    %c0_163 = arith.constant 0 : index
    %c0_164 = arith.constant 0 : index
    %353 = vector.load %arg29[%c0_163, %c0_164] : memref<1x1xf32, #tpu.memory_space<vmem>>, vector<1x1xf32>
    %354 = vector.broadcast %353 : vector<1x1xf32> to vector<2x1xf32>
    %355 = arith.addf %352, %354 : vector<2x1xf32>
    %cst_165 = arith.constant 0.000000e+00 : f32
    %356 = vector.broadcast %cst_165 : f32 to vector<2x1xf32>
    %357 = arith.subf %356, %355 : vector<2x1xf32>
    %358 = math.exp %357 : vector<2x1xf32>
    %cst_166 = arith.constant 1.000000e+00 : f32
    %359 = vector.broadcast %cst_166 : f32 to vector<2x1xf32>
    %360 = arith.addf %359, %358 : vector<2x1xf32>
    %cst_167 = arith.constant 1.000000e+00 : f32
    %361 = vector.broadcast %cst_167 : f32 to vector<2x1xf32>
    %362 = arith.divf %361, %360 : vector<2x1xf32>
    %c0_168 = arith.constant 0 : index
    %c0_169 = arith.constant 0 : index
    %363 = vector.load %arg30[%c0_168, %c0_169] : memref<2x1xf32, #tpu.memory_space<vmem>>, vector<2x1xf32>
    tpu.vector_store %arg30[%c0_168, %c0_169], %362 {strides = array<i32>} : memref<2x1xf32, #tpu.memory_space<vmem>>, vector<2x1xf32>,
    return
  }
}

</mosaic_0001>

<bundles_post_ra>
// kernel: tipformer_forward.1
= control target key start
LH: loop header
LB: loop body
LE: loop exit
PB: predicated region body
PF: predicated region fallthrough
CT: control target
= control target key end

     0   :  { %s3829_s3 = smov 1   ;;  %v167_v0 = vlaneseq  ;;  %s3830_s7 = smov 32   ;;  %vm997_vm1 = vcmask 785408   ;;  %v3834_v26 = vmov 0.0   ;;  %vm1078_vm2 = vcmask 523520   ;;  %s5697_s0 = inlined_call_operand.smem [shape: u32[31], index: -1, kind: input, shape index: {}] }
   0x1   :  { %s3874_s6 = sld [smem:[%s5697_s0 + %s3829_s3]]   ;;  %s3831_s8 = smov 64   ;;  %1000 = vst.msk [vmem:[#allocation3 + $0x10] sm:$0xff] %vm997_vm1, %v3834_v26  ;;  %vm746_vm3 = vcmask 261120   ;;  %vm1210_vm4 = vcmask 785920   ;;  %vm1208_vm5 = vcmask 785921   ;;  %vm176_vm6 = vcmask 392192  }
   0x2   :  { %v3876_v1 = vshrl.u32 %v167_v0, 7  ;;  %s3932_s11 = sld [smem:[%s5697_s0]]   ;;  %s3832_s12 = smov 16   ;;  %998 = vst.msk [vmem:[#allocation3] sm:$0xff] %vm997_vm1, %v3834_v26  ;;  %vm257_vm8 = vcmask 261248   ;;  %vm314_vm9 = vcmask 130048   ;;  %vm436_vm10 = vcmask 392449  }
   0x3   :  { %s3833_s13 = smov 6   ;;  %999 = vst.msk [vmem:[#allocation3 + $0x8] sm:$0xff] %vm997_vm1, %v3834_v26  ;;  %s3835_s17 = smov 7   ;;  %vm438_vm11 = vcmask 392448   ;;  %vm1126_vm12 = vcmask 260096   ;;  %vm330_vm13 = vcmask 129024  }
   0x4   :  { %vm332_vm0 = vcmp.eq.s32.totalorder %v3876_v1, 0  ;;  %s3990_s16 = sld [smem:[%s5697_s0 + %s3833_s13]]   ;;  %1001 = vst.msk [vmem:[#allocation3 + $0x18] sm:$0xff] %vm997_vm1, %v3834_v26  ;;  %s3836_s21 = smov 2  }
   0x5   :  { %1002 = vst.msk [vmem:[#allocation3 + $0x20] sm:$0xff] %vm997_vm1, %v3834_v26  ;;  %s4132_s20 = sld [smem:[%s5697_s0 + %s3835_s17]]   ;;  %s3837_s25 = smov 3  }
   0x6   :  { %1003 = vst.msk [vmem:[#allocation3 + $0x28] sm:$0xff] %vm997_vm1, %v3834_v26  ;;  %s4138_s24 = sld [smem:[%s5697_s0 + %s3836_s21]]   ;;  %s3838_s29 = smov 8  }
   0x7   :  { %v3879_v2 = vld [vmem:[%s3874_s6 + $0x10] sm:$0xff]  ;;  %v3882_v3 = vld [vmem:[%s3874_s6] sm:$0xff]  ;;  %v3889_v4 = vld [vmem:[%s3874_s6 + $0x8] sm:$0xff]  ;;  %1004 = vst.msk [vmem:[#allocation3 + $0x30] sm:$0xff] %vm997_vm1, %v3834_v26  ;;  %s4280_s28 = sld [smem:[%s5697_s0 + %s3837_s25]]   ;;  %s3839_s3 = smov 9  }
   0x8   :  { %1034 = vrot.lane.b32.xlu1 %v3879_v2, %s3830_s7  ;;  %1030 = vrot.lane.b32.xlu0 %v3882_v3, %s3830_s7  ;;  %v1128_v5 = vsel %vm332_vm0, 0.0, %v3882_v3  ;;  %v3898_v6 = vld [vmem:[%s3874_s6 + $0x18] sm:$0xff]  ;;  %v3906_v7 = vld [vmem:[%s3874_s6 + $0x20] sm:$0xff]  ;;  %1005 = vst.msk [vmem:[#allocation3 + $0x38] sm:$0xff] %vm997_vm1, %v3834_v26  ;;  %s4332_s2 = sld [smem:[%s5697_s0 + %s3838_s29]]   ;;  %s3849_s5 = smov 17  }
   0x9   :  { %1162 = vrot.lane.b32.xlu2 %v3889_v4, %s3831_s8  ;;  %v3915_v8 = vld [vmem:[%s3874_s6 + $0x28] sm:$0xff]  ;;  %v3918_v9 = vld [vmem:[%s3874_s6 + $0x30] sm:$0xff]  ;;  %v3927_v10 = vld [vmem:[%s3874_s6 + $0x38] sm:$0xff]  ;;  %1006 = vst.msk [vmem:[#allocation3 + $0x40] sm:$0xff] %vm997_vm1, %v3834_v26  ;;  %s5007_s4 = sld [smem:[%s5697_s0 + %s3832_s12]]   ;;  %s3850_s9 = smov 14  }
   0xa   :  { %v3941_v11 = vld [vmem:[%s3874_s6 + $0x40] sm:$0xff]  ;;  %v3951_v13 = vld [vmem:[%s3932_s11 + $0x8] sm:$0xff]  ;;  %v3956_v14 = vld [vmem:[%s3932_s11 + $0x10] sm:$0xff]  ;;  %1007 = vst.msk [vmem:[#allocation3 + $0x48] sm:$0xff] %vm997_vm1, %v3834_v26  ;;  %s5081_s13 = sld [smem:[%s5697_s0 + %s3850_s9]]   ;;  %s3851_s14 = smov 15  }
   0xb   :  { %v3944_v12 = vld [vmem:[%s3932_s11] sm:$0xff]  ;;  %v3967_v16 = vld [vmem:[%s3874_s6 + $0x48] sm:$0xff]  ;;  %v3970_v17 = vld [vmem:[%s3932_s11 + $0x18] sm:$0xff]  ;;  %v1136_v18 = vsel %vm332_vm0, 0.0, %v3941_v11  ;;  %1008 = vst.msk [vmem:[#allocation3 + $0x50] sm:$0xff] %vm997_vm1, %v3834_v26  ;;  %s5100_s17 = sld [smem:[%s5697_s0 + %s3851_s14]]   ;;  %s3852_s18 = smov 18  }
   0xc   :  { %v356_v15 = vsel %vm332_vm0, 0.0, %v3944_v12  ;;  %v3982_v19 = vld [vmem:[%s3874_s6 + $0x50] sm:$0xff]  ;;  %v3995_v20 = vld [vmem:[%s3932_s11 + $0x20] sm:$0xff]  ;;  %v979_v21 = vld [vmem:[%s3990_s16 + $0x58] sm:$0xff]  ;;  %1009 = vst.msk [vmem:[#allocation3 + $0x58] sm:$0xff] %vm997_vm1, %v3834_v26  ;;  %s5141_s21 = sld [smem:[%s5697_s0 + %s3852_s18]]   ;;  %s3853_s22 = smov 20  }
   0xd   :  { %v978_v22 = vld [vmem:[%s3990_s16 + $0x50] sm:$0xff]  ;;  %1297 = vmatpush.msra.mxu1 %v979_v21  ;;  %v4006_v23 = vld [vmem:[%s3874_s6 + $0x58] sm:$0xff]  ;;  %v4009_v24 = vld [vmem:[%s3932_s11 + $0x28] sm:$0xff]  ;;  %1010 = vst.msk [vmem:[#allocation3 + $0x60] sm:$0xff] %vm997_vm1, %v3834_v26  ;;  %s5147_s25 = sld [smem:[%s5697_s0 + %s3853_s22]]   ;;  %s3854_s26 = smov 19  }
   0xe   :  { %v977_v25 = vld [vmem:[%s3990_s16 + $0x48] sm:$0xff]  ;;  %v976_v27 = vld [vmem:[%s3990_s16 + $0x40] sm:$0xff]  ;;  %v975_v28 = vld [vmem:[%s3990_s16 + $0x38] sm:$0xff]  ;;  %1011 = vst.msk [vmem:[#allocation3 + $0x68] sm:$0xff] %vm997_vm1, %v3834_v26  ;;  %s5152_s29 = sld [smem:[%s5697_s0 + %s3854_s26]]   ;;  %s3855_s30 = smov 21  }
   0xf   :  { %1298 = vmatpush.msra.mxu1 %v978_v22  ;;  %v4029_v29 = vld [vmem:[%s3874_s6 + $0x60] sm:$0xff]  ;;  %v4036_v30 = vld [vmem:[%s3932_s11 + $0x30] sm:$0xff]  ;;  %v973_v32 = vld [vmem:[%s3990_s16 + $0x28] sm:$0xff]  ;;  %1012 = vst.msk [vmem:[#allocation3 + $0x70] sm:$0xff] %vm997_vm1, %v3834_v26 }
  0x10   :  { %1032 = vrot.lane.b32.xlu0 %v3889_v4, %s3830_s7  ;;  %1160 = vrot.lane.b32.xlu1 %v1128_v5, %s3831_s8  ;;  %v974_v31 = vld [vmem:[%s3990_s16 + $0x30] sm:$0xff]  ;;  %v972_v34 = vld [vmem:[%s3990_s16 + $0x20] sm:$0xff]  ;;  %1013 = vst.msk [vmem:[#allocation3 + $0x78] sm:$0xff] %vm997_vm1, %v3834_v26 }
  0x11   :  { %1036 = vrot.lane.b32.xlu2 %v3898_v6, %s3830_s7  ;;  %1299 = vmatpush.msra.mxu1 %v977_v25  ;;  %v4064_v35 = vld [vmem:[%s3874_s6 + $0x68] sm:$0xff]  ;;  %v971_v36 = vld [vmem:[%s3990_s16 + $0x18] sm:$0xff]  ;;  %v970_v37 = vld [vmem:[%s3990_s16 + $0x10] sm:$0xff]  ;;  %177 = vst.msk [vmem:[#allocation2] sm:$0xff] %vm176_vm6, %v3834_v26 }
  0x12   :  { %v969_v38 = vld [vmem:[%s3990_s16 + $0x8] sm:$0xff]  ;;  %v4081_v40 = vld [vmem:[%s3932_s11 + $0x38] sm:$0xff]  ;;  %v968_v41 = vld [vmem:[%s3990_s16] sm:$0xff]  ;;  %178 = vst.msk [vmem:[#allocation2 + $0x8] sm:$0xff] %vm176_vm6, %v3834_v26  ;;  %s3844_s16 = smov 12  }
  0x13   :  { %1300 = vmatpush.msra.mxu1 %v976_v27  ;;  %v4091_v43 = vld [vmem:[%s3874_s6 + $0x70] sm:$0xff]  ;;  %v4094_v44 = vld [vmem:[%s3932_s11 + $0x40] sm:$0xff]  ;;  %v4105_v48 = vld [vmem:[%s3874_s6 + $0x78] sm:$0xff]  ;;  %179 = vst.msk [vmem:[#allocation2 + $0x10] sm:$0xff] %vm176_vm6, %v3834_v26  ;;  %s4350_s6 = sld [smem:[%s5697_s0 + %s3839_s3]]  }
  0x14   :  { %v4115_v49 = vld [vmem:[%s3932_s11 + $0x48] sm:$0xff]  ;;  %v364_v53 = vsel %vm332_vm0, 0.0, %v4094_v44  ;;  %v4144_v54 = vld [vmem:[%s3932_s11 + $0x50] sm:$0xff]  ;;  %180 = vst.msk [vmem:[#allocation2 + $0x18] sm:$0xff] %vm176_vm6, %v3834_v26  ;;  %v4165_v59 = vld [vmem:[%s3932_s11 + $0x58] sm:$0xff]  ;;  %s4553_s19 = sld [smem:[%s5697_s0 + %s3844_s16]]   ;;  %s3860_s16 = smov 24  }
  0x15   :  { %1301 = vmatpush.msra.mxu1 %v975_v28  ;;  %v149_v60 = vld [vmem:[%s4138_s24 + $0x28] sm:$0xff]  ;;  %181 = vst.msk [vmem:[#allocation2 + $0x20] sm:$0xff] %vm176_vm6, %v3834_v26  ;;  %v148_v61 = vld [vmem:[%s4138_s24 + $0x20] sm:$0xff]  ;;  %v146_v5 = vld [vmem:[%s4138_s24 + $0x10] sm:$0xff]  ;;  %s5203_s3 = sld [smem:[%s5697_s0 + %s3855_s30]]  }
  0x16   :  { %182 = vst.msk [vmem:[#allocation2 + $0x28] sm:$0xff] %vm176_vm6, %v3834_v26  ;;  %531 = vmatpush.msra.mxu0 %v149_v60  ;;  %3567 = vmatpush.msra.mxu3 %v149_v60 }
  0x17   :  { %1302 = vmatpush.msra.mxu1 %v974_v31  ;;  %183 = vst.msk [vmem:[#allocation2 + $0x30] sm:$0xff] %vm176_vm6, %v3834_v26 }
  0x18   :  { %1164 = vrot.lane.b32.xlu0 %v3879_v2, %s3831_s8  ;;  %1038 = vrot.lane.b32.xlu1 %v3906_v7, %s3830_s7  ;;  %184 = vst.msk [vmem:[#allocation2 + $0x38] sm:$0xff] %vm176_vm6, %v3834_v26 }
  0x19   :  { %1166 = vrot.lane.b32.xlu2 %v3898_v6, %s3831_s8  ;;  %1303 = vmatpush.msra.mxu1 %v973_v32  ;;  %185 = vst.msk [vmem:[#allocation2 + $0x40] sm:$0xff] %vm176_vm6, %v3834_v26 }
  0x1a   :  { %532 = vmatpush.msra.mxu0 %v148_v61  ;;  %3568 = vmatpush.msra.mxu3 %v148_v61  ;;  %186 = vst.msk [vmem:[#allocation2 + $0x48] sm:$0xff] %vm176_vm6, %v3834_v26 }
  0x1b   :  { %1304 = vmatpush.msra.mxu1 %v972_v34  ;;  %187 = vst.msk [vmem:[#allocation2 + $0x50] sm:$0xff] %vm176_vm6, %v3834_v26 }
  0x1c   :  { %188 = vst.msk [vmem:[#allocation2 + $0x58] sm:$0xff] %vm176_vm6, %v3834_v26 }
  0x1d   :  { %1305 = vmatpush.msra.mxu1 %v971_v36  ;;  %189 = vst.msk [vmem:[#allocation2 + $0x60] sm:$0xff] %vm176_vm6, %v3834_v26 }
  0x1e   :  { %190 = vst.msk [vmem:[#allocation2 + $0x68] sm:$0xff] %vm176_vm6, %v3834_v26 }
  0x1f   :  { %1306 = vmatpush.msra.mxu1 %v970_v37  ;;  %191 = vst.msk [vmem:[#allocation2 + $0x70] sm:$0xff] %vm176_vm6, %v3834_v26 }
  0x20   :  { %1040 = vrot.lane.b32.xlu0 %v3915_v8, %s3830_s7  ;;  %1168 = vrot.lane.b32.xlu1 %v3906_v7, %s3831_s8  ;;  %192 = vst.msk [vmem:[#allocation2 + $0x78] sm:$0xff] %vm176_vm6, %v3834_v26 }
  0x21   :  { %1042 = vrot.lane.b32.xlu2 %v3918_v9, %s3830_s7  ;;  %1307 = vmatpush.msra.mxu1 %v969_v38 }
  0x23   :  { %1308 = vmatpush.msra.mxu1 %v968_v41 }
  0x28   :  { %1170 = vrot.lane.b32.xlu0 %v3915_v8, %s3831_s8  ;;  %1044 = vrot.lane.b32.xlu1 %v3927_v10, %s3830_s7 }
  0x29   :  { %1172 = vrot.lane.b32.xlu2 %v3918_v9, %s3831_s8 }
  0x30   :  { %1046 = vrot.lane.b32.xlu0 %v3941_v11, %s3830_s7  ;;  %209 = vrot.lane.b32.xlu1 %v3944_v12, %s3832_s12 }
  0x31   :  { %211 = vrot.lane.b32.xlu2 %v3951_v13, %s3832_s12 }
  0x38   :  { %213 = vrot.lane.b32.xlu0 %v3956_v14, %s3832_s12  ;;  %1174 = vrot.lane.b32.xlu1 %v3927_v10, %s3831_s8 }
  0x39   :  { %388 = vrot.lane.b32.xlu2 %v356_v15, %s3830_s7 }
  0x40   :  { %390 = vrot.lane.b32.xlu0 %v3951_v13, %s3830_s7  ;;  %1048 = vrot.lane.b32.xlu1 %v3967_v16, %s3830_s7 }
  0x41   :  { %215 = vrot.lane.b32.xlu2 %v3970_v17, %s3832_s12 }
  0x48   :  { %1176 = vrot.lane.b32.xlu0 %v1136_v18, %s3831_s8  ;;  %392 = vrot.lane.b32.xlu1 %v3956_v14, %s3830_s7  ;;  %v144_v18 = vld [vmem:[%s4138_s24] sm:$0xff] }
  0x49   :  { %1050 = vrot.lane.b32.xlu2 %v3982_v19, %s3830_s7 }
  0x50   :  { %217 = vrot.lane.b32.xlu0 %v3995_v20, %s3832_s12  ;;  %1178 = vrot.lane.b32.xlu1 %v3967_v16, %s3831_s8 }
  0x51   :  { %394 = vrot.lane.b32.xlu2 %v3970_v17, %s3830_s7 }
  0x58   :  { %1052 = vrot.lane.b32.xlu0 %v4006_v23, %s3830_s7  ;;  %219 = vrot.lane.b32.xlu1 %v4009_v24, %s3832_s12 }
  0x59   :  { %1180 = vrot.lane.b32.xlu2 %v3982_v19, %s3831_s8 }
  0x60   :  { %396 = vrot.lane.b32.xlu0 %v3995_v20, %s3830_s7  ;;  %1054 = vrot.lane.b32.xlu1 %v4029_v29, %s3830_s7 }
  0x61   :  { %221 = vrot.lane.b32.xlu2 %v4036_v30, %s3832_s12 }
  0x63   :  { %v1163_v33 = vpop.permute.xlu2 %1162 }
  0x68   :  { %1182 = vrot.lane.b32.xlu0 %v4006_v23, %s3831_s8  ;;  %398 = vrot.lane.b32.xlu1 %v4009_v24, %s3830_s7 }
  0x69   :  { %1056 = vrot.lane.b32.xlu2 %v4064_v35, %s3830_s7 }
  0x6b   :  { %v1037_v39 = vpop.permute.xlu2 %1036 }
  0x6c   :  { %1082 = vst.msk [vmem:[#allocation3 + $0x18] sm:$0xff] %vm1078_vm2, %v1037_v39 }
  0x70   :  { %223 = vrot.lane.b32.xlu0 %v4081_v40, %s3832_s12  ;;  %1184 = vrot.lane.b32.xlu1 %v4029_v29, %s3831_s8 }
  0x71   :  { %400 = vrot.lane.b32.xlu2 %v4036_v30, %s3830_s7 }
  0x73   :  { %v1167_v42 = vpop.permute.xlu2 %1166 }
  0x78   :  { %1058 = vrot.lane.b32.xlu0 %v4091_v43, %s3830_s7  ;;  %225 = vrot.lane.b32.xlu1 %v4094_v44, %s3832_s12 }
  0x79   :  { %1186 = vrot.lane.b32.xlu2 %v4064_v35, %s3831_s8 }
  0x7a   :  { %v1035_v45 = vpop.permute.xlu1 %1034  ;;  %v1031_v46 = vpop.permute.xlu0 %1030 }
  0x7b   :  { %1081 = vst.msk [vmem:[#allocation3 + $0x10] sm:$0xff] %vm1078_vm2, %v1035_v45  ;;  %v1043_v47 = vpop.permute.xlu2 %1042 }
  0x7c   :  { %1079 = vst.msk [vmem:[#allocation3] sm:$0xff] %vm1078_vm2, %v1031_v46 }
  0x7d   :  { %1113 = vst.msk [vmem:[#allocation3 + $0x11] sm:$0xff] %vm746_vm3, %v3879_v2  ;;  %v4188_v2 = vld [vmem:[%s3932_s11 + $0x60] sm:$0xff] }
  0x7e   :  { %1085 = vst.msk [vmem:[#allocation3 + $0x30] sm:$0xff] %vm1078_vm2, %v1043_v47 }
  0x80   :  { %402 = vrot.lane.b32.xlu0 %v4081_v40, %s3830_s7  ;;  %1060 = vrot.lane.b32.xlu1 %v4105_v48, %s3830_s7 }
  0x81   :  { %227 = vrot.lane.b32.xlu2 %v4115_v49, %s3832_s12 }
  0x82   :  { %v1033_v50 = vpop.permute.xlu0 %1032  ;;  %v1161_v51 = vpop.permute.xlu1 %1160 }
  0x83   :  { %1080 = vst.msk [vmem:[#allocation3 + $0x8] sm:$0xff] %vm1078_vm2, %v1033_v50  ;;  %v4120_v52 = vpop.permute.xlu2 %1172 }
  0x84   :  { %1111 = vst.msk [vmem:[#allocation3 + $0x1] sm:$0xff] %vm746_vm3, %v3882_v3  ;;  %v147_v3 = vld [vmem:[%s4138_s24 + $0x18] sm:$0xff] }
  0x85   :  { %1112 = vst.msk [vmem:[#allocation3 + $0x9] sm:$0xff] %vm746_vm3, %v3889_v4  ;;  %533 = vmatpush.msra.mxu0 %v147_v3  ;;  %3569 = vmatpush.msra.mxu3 %v147_v3 }
  0x86   :  { %1211 = vst.msk [vmem:[#allocation3 + $0x7] sm:$0xff] %vm1210_vm4, %v1163_v33 }
  0x87   :  { %1209 = vst.msk [vmem:[#allocation3 - $0x1] sm:$0xfe] %vm1208_vm5, %v1161_v51  ;;  %534 = vmatpush.msra.mxu0 %v146_v5  ;;  %3570 = vmatpush.msra.mxu3 %v146_v5 }
  0x88   :  { %1188 = vrot.lane.b32.xlu0 %v4091_v43, %s3831_s8  ;;  %404 = vrot.lane.b32.xlu1 %v364_v53, %s3830_s7 }
  0x89   :  { %229 = vrot.lane.b32.xlu2 %v4144_v54, %s3832_s12 }
  0x8a   :  { %v1165_v55 = vpop.permute.xlu0 %1164  ;;  %v1039_v56 = vpop.permute.xlu1 %1038 }
  0x8b   :  { %1212 = vst.msk [vmem:[#allocation3 + $0xf] sm:$0xff] %vm1210_vm4, %v1165_v55  ;;  %v4155_v57 = vpop.permute.xlu2 %211 }
  0x8c   :  { %1083 = vst.msk [vmem:[#allocation3 + $0x20] sm:$0xff] %vm1078_vm2, %v1039_v56 }
  0x8d   :  { %1114 = vst.msk [vmem:[#allocation3 + $0x19] sm:$0xff] %vm746_vm3, %v3898_v6  ;;  %v145_v6 = vld [vmem:[%s4138_s24 + $0x8] sm:$0xff]  ;;  %s3846_s24 = smov 13  }
  0x8e   :  { %1213 = vst.msk [vmem:[#allocation3 + $0x17] sm:$0xff] %vm1210_vm4, %v1167_v42  ;;  %v1226_v58 = vld [vmem:[#allocation3] sm:$0xff]  ;;  %535 = vmatpush.msra.mxu0 %v145_v6  ;;  %3571 = vmatpush.msra.mxu3 %v145_v6  ;;  %s4731_s27 = sld [smem:[%s5697_s0 + %s3846_s24]]   ;;  %s3862_s24 = smov 27  }
  0x8f   :  { %3478 = vmatmul.msk.f32.vlgmr.msra.gmra.mxu1 %vm997_vm1, %v1226_v58  ;;  %259 = vst.msk [vmem:[#allocation2 + $0x8] sm:$0xff] %vm257_vm8, %v4155_v57 }
  0x90   :  { %1190 = vrot.lane.b32.xlu0 %v4105_v48, %s3831_s8  ;;  %406 = vrot.lane.b32.xlu1 %v4115_v49, %s3830_s7  ;;  %s3448_s8 = sld [smem:[%s5697_s0 + %s3849_s5]]   ;;  %s3865_s5 = smov 30  }
  0x91   :  { %231 = vrot.lane.b32.xlu2 %v4165_v59, %s3832_s12  ;;  %536 = vmatpush.msra.mxu0 %v144_v18 }
  0x92   :  { %v1041_v62 = vpop.permute.xlu0 %1040  ;;  %v1169_v63 = vpop.permute.xlu1 %1168  ;;  %v1227_v4 = vld [vmem:[#allocation3 + $0x8] sm:$0xff]  ;;  %3572 = vmatpush.msra.mxu3 %v144_v18 }
  0x93   :  { %1084 = vst.msk [vmem:[#allocation3 + $0x28] sm:$0xff] %vm1078_vm2, %v1041_v62  ;;  %v4182_v0 = vpop.permute.xlu2 %388 }
  0x94   :  { %1115 = vst.msk [vmem:[#allocation3 + $0x21] sm:$0xff] %vm746_vm3, %v3906_v7  ;;  %v4209_v7 = vadd.s32 56, %v3876_v1  ;;  %v4219_v1 = vld [vmem:[%s3932_s11 + $0x68] sm:$0xff] }
  0x95   :  { %1214 = vst.msk [vmem:[#allocation3 + $0x1f] sm:$0xff] %vm1210_vm4, %v1169_v63  ;;  %v1228_v22 = vld [vmem:[#allocation3 + $0x10] sm:$0xff] }
  0x96   :  { %1116 = vst.msk [vmem:[#allocation3 + $0x29] sm:$0xff] %vm746_vm3, %v3915_v8  ;;  %vm281_vm7 = vcmp.eq.s32.totalorder %v4209_v7, 63  ;;  %v984_v7 = vld [vmem:[%s4332_s2 + $0x18] sm:$0xff] }
  0x97   :  { %3479 = vmatmul.msk.f32.gmra.mxu1 %vm997_vm1, %v1227_v4  ;;  %v1102_v25 = vsel %vm281_vm7, 0.0, %v3927_v10  ;;  %v4249_v10 = vld [vmem:[%s3932_s11 + $0x78] sm:$0xff]  ;;  %v305_v4 = vsel %vm281_vm7, 0.0, %v4081_v40  ;;  %v3840_v40 = vmov 0   ;;  %v1110_v18 = vsel %vm281_vm7, 0.0, %v4105_v48 }
  0x98   :  { %408 = vrot.lane.b32.xlu0 %v4144_v54, %s3830_s7  ;;  %233 = vrot.lane.b32.xlu1 %v4188_v2, %s3832_s12 }
  0x99   :  { %410 = vrot.lane.b32.xlu2 %v4165_v59, %s3830_s7  ;;  %3614 = vset.pattern.permute.xlu1 %v3840_v40 }
  0x9a   :  { %v1171_v8 = vpop.permute.xlu0 %1170  ;;  %v1045_v15 = vpop.permute.xlu1 %1044  ;;  %3616 = vset.pattern.permute.xlu0 %v3840_v40  ;;  %3615 = vset.pattern.permute.xlu2 %v3840_v40 }
  0x9b   :  { %1215 = vst.msk [vmem:[#allocation3 + $0x27] sm:$0xff] %vm1210_vm4, %v1171_v8  ;;  %v216_v21 = vpop.permute.xlu2 %215 }
  0x9c   :  { %1086 = vst.msk [vmem:[#allocation3 + $0x38] sm:$0xff] %vm1078_vm2, %v1045_v15  ;;  %v1229_v32 = vld [vmem:[#allocation3 + $0x18] sm:$0xff]  ;;  %v981_v15 = vld [vmem:[%s4332_s2] sm:$0xff] }
  0x9d   :  { %1117 = vst.msk [vmem:[#allocation3 + $0x31] sm:$0xff] %vm746_vm3, %v3918_v9  ;;  %v4234_v9 = vld [vmem:[%s3932_s11 + $0x70] sm:$0xff]  ;;  %s3842_s11 = smov 5  }
  0x9e   :  { %1216 = vst.msk [vmem:[#allocation3 + $0x2f] sm:$0xff] %vm1210_vm4, %v4120_v52  ;;  %s4389_s15 = sld [smem:[%s5697_s0 + %s3842_s11]]   ;;  %s3859_s11 = smov 25  }
  0x9f   :  { %3480 = vmatmul.msk.f32.gmra.mxu1 %vm997_vm1, %v1228_v22  ;;  %261 = vst.msk [vmem:[#allocation2 + $0x18] sm:$0xff] %vm257_vm8, %v216_v21 }
  0xa0   :  { %235 = vrot.lane.b32.xlu0 %v4219_v1, %s3832_s12  ;;  %412 = vrot.lane.b32.xlu1 %v4188_v2, %s3830_s7 }
  0xa1   :  { %237 = vrot.lane.b32.xlu2 %v4234_v9, %s3832_s12 }
  0xa2   :  { %v1047_v27 = vpop.permute.xlu0 %1046  ;;  %v210_v28 = vpop.permute.xlu1 %209 }
  0xa3   :  { %1087 = vst.msk [vmem:[#allocation3 + $0x40] sm:$0xff] %vm1078_vm2, %v1047_v27  ;;  %v1051_v31 = vpop.permute.xlu2 %1050 }
  0xa4   :  { %1118 = vst.msk [vmem:[#allocation3 + $0x39] sm:$0xff] %vm746_vm3, %v1102_v25 }
  0xa5   :  { %258 = vst.msk [vmem:[#allocation2] sm:$0xff] %vm257_vm8, %v210_v28  ;;  %v991_v28 = vld [vmem:[%s4350_s6 + $0x10] sm:$0xff] }
  0xa6   :  { %315 = vst.msk [vmem:[#allocation2 + $0x1] sm:$0xff] %vm314_vm9, %v3944_v12  ;;  %v1230_v12 = vld [vmem:[#allocation3 + $0x20] sm:$0xff] }
  0xa7   :  { %3481 = vmatmul.msk.f32.gmra.mxu1 %vm997_vm1, %v1229_v32  ;;  %437 = vst.msk [vmem:[#allocation2 - $0x1] sm:$0xfe] %vm436_vm10, %v4182_v0 }
  0xa8   :  { %239 = vrot.lane.b32.xlu0 %v4249_v10, %s3832_s12  ;;  %416 = vrot.lane.b32.xlu1 %v4234_v9, %s3830_s7  ;;  %1089 = vst.msk [vmem:[#allocation3 + $0x50] sm:$0xff] %vm1078_vm2, %v1051_v31  ;;  %s3848_s12 = smov 96  }
  0xa9   :  { %418 = vrot.lane.b32.xlu2 %v4249_v10, %s3830_s7 }
  0xaa   :  { %v214_v26 = vpop.permute.xlu0 %213  ;;  %v1175_v33 = vpop.permute.xlu1 %1174 }
  0xab   :  { %260 = vst.msk [vmem:[#allocation2 + $0x10] sm:$0xff] %vm257_vm8, %v214_v26  ;;  %v395_v34 = vpop.permute.xlu2 %394 }
  0xac   :  { %316 = vst.msk [vmem:[#allocation2 + $0x9] sm:$0xff] %vm314_vm9, %v3951_v13  ;;  %v1231_v13 = vld [vmem:[#allocation3 + $0x28] sm:$0xff] }
  0xad   :  { %1217 = vst.msk [vmem:[#allocation3 + $0x37] sm:$0xff] %vm1210_vm4, %v1175_v33 }
  0xae   :  { %317 = vst.msk [vmem:[#allocation2 + $0x11] sm:$0xff] %vm314_vm9, %v3956_v14 }
  0xaf   :  { %3482 = vmatmul.msk.f32.gmra.mxu1 %vm997_vm1, %v1230_v12  ;;  %v985_v12 = vld [vmem:[%s4332_s2 + $0x20] sm:$0xff] }
  0xb0   :  { %414 = vrot.lane.b32.xlu0 %v4219_v1, %s3830_s7  ;;  %1622 = vperm.xlu1 %3614, %v981_v15   ;;  %s3841_s7 = smov 4   ;;  %v160_v15 = vld [vmem:[%s4389_s15 + $0x8] sm:$0xff] }
  0xb1   :  { %s4384_s10 = sld [smem:[%s5697_s0 + %s3841_s7]]   ;;  %s3858_s7 = smov 23  }
  0xb2   :  { %v391_v36 = vpop.permute.xlu0 %390  ;;  %v1049_v37 = vpop.permute.xlu1 %1048 }
  0xb3   :  { %439 = vst.msk [vmem:[#allocation2 + $0x7] sm:$0xff] %vm438_vm11, %v391_v36  ;;  %v1181_v38 = vpop.permute.xlu2 %1180 }
  0xb4   :  { %1088 = vst.msk [vmem:[#allocation3 + $0x48] sm:$0xff] %vm1078_vm2, %v1049_v37  ;;  %v1232_v45 = vld [vmem:[#allocation3 + $0x30] sm:$0xff] }
  0xb5   :  { %1119 = vst.msk [vmem:[#allocation3 + $0x41] sm:$0xff] %vm746_vm3, %v3941_v11 }
  0xb6   :  { %1120 = vst.msk [vmem:[#allocation3 + $0x49] sm:$0xff] %vm746_vm3, %v3967_v16 }
  0xb7   :  { %3483 = vmatmul.msk.f32.gmra.mxu1 %vm997_vm1, %v1231_v13 }
  0xba   :  { %v1177_v14 = vpop.permute.xlu0 %1176  ;;  %v393_v39 = vpop.permute.xlu1 %392  ;;  %v454_v41 = vld [vmem:[#allocation2] sm:$0xff] }
  0xbb   :  { %1218 = vst.msk [vmem:[#allocation3 + $0x3f] sm:$0xff] %vm1210_vm4, %v1177_v14  ;;  %3462 = vmatmul.msk.f32.vlgmr.msra.gmra.mxu0 %vm176_vm6, %v454_v41  ;;  %v222_v42 = vpop.permute.xlu2 %221  ;;  %v989_v14 = vld [vmem:[%s4350_s6] sm:$0xff] }
  0xbc   :  { %440 = vst.msk [vmem:[#allocation2 + $0xf] sm:$0xff] %vm438_vm11, %v393_v39  ;;  %1670 = vperm.xlu2 %3615, %v989_v14   ;;  %v151_v41 = vld [vmem:[%s4384_s10] sm:$0xff] }
  0xbd   :  { %264 = vst.msk [vmem:[#allocation2 + $0x30] sm:$0xff] %vm257_vm8, %v222_v42  ;;  %v159_v42 = vld [vmem:[%s4389_s15] sm:$0xff] }
  0xbf   :  { %3484 = vmatmul.msk.f32.gmra.mxu1 %vm997_vm1, %v1232_v45 }
  0xc2   :  { %v218_v11 = vpop.permute.xlu0 %217  ;;  %v1179_v46 = vpop.permute.xlu1 %1178  ;;  %v1233_v50 = vld [vmem:[#allocation3 + $0x38] sm:$0xff] }
  0xc3   :  { %262 = vst.msk [vmem:[#allocation2 + $0x20] sm:$0xff] %vm257_vm8, %v218_v11  ;;  %v455_v16 = vld [vmem:[#allocation2 + $0x8] sm:$0xff]  ;;  %v1057_v47 = vpop.permute.xlu2 %1056 }
  0xc4   :  { %318 = vst.msk [vmem:[#allocation2 + $0x19] sm:$0xff] %vm314_vm9, %v3970_v17  ;;  %3463 = vmatmul.msk.f32.gmra.mxu0 %vm176_vm6, %v455_v16 }
  0xc5   :  { %1219 = vst.msk [vmem:[#allocation3 + $0x47] sm:$0xff] %vm1210_vm4, %v1179_v46 }
  0xc6   :  { %441 = vst.msk [vmem:[#allocation2 + $0x17] sm:$0xff] %vm438_vm11, %v395_v34  ;;  %v992_v34 = vld [vmem:[%s4350_s6 + $0x18] sm:$0xff] }
  0xc7   :  { %3485 = vmatmul.msk.f32.gmra.mxu1 %vm997_vm1, %v1233_v50  ;;  %1092 = vst.msk [vmem:[#allocation3 + $0x68] sm:$0xff] %vm1078_vm2, %v1057_v47  ;;  %v983_v47 = vld [vmem:[%s4332_s2 + $0x10] sm:$0xff] }
  0xc8   :  { %1632 = vperm.xlu2 %3615, %v983_v47  }
  0xca   :  { %v1053_v51 = vpop.permute.xlu0 %1052  ;;  %v220_v52 = vpop.permute.xlu1 %219 }
  0xcb   :  { %1090 = vst.msk [vmem:[#allocation3 + $0x58] sm:$0xff] %vm1078_vm2, %v1053_v51  ;;  %v401_v53 = vpop.permute.xlu2 %400  ;;  %v994_v51 = vld [vmem:[%s4350_s6 + $0x28] sm:$0xff] }
  0xcc   :  { %1121 = vst.msk [vmem:[#allocation3 + $0x51] sm:$0xff] %vm746_vm3, %v3982_v19  ;;  %v1234_v55 = vld [vmem:[#allocation3 + $0x40] sm:$0xff] }
  0xcd   :  { %263 = vst.msk [vmem:[#allocation2 + $0x28] sm:$0xff] %vm257_vm8, %v220_v52  ;;  %v456_v17 = vld [vmem:[#allocation2 + $0x10] sm:$0xff]  ;;  %v152_v52 = vld [vmem:[%s4384_s10 + $0x8] sm:$0xff] }
  0xce   :  { %319 = vst.msk [vmem:[#allocation2 + $0x21] sm:$0xff] %vm314_vm9, %v3995_v20  ;;  %3464 = vmatmul.msk.f32.gmra.mxu0 %vm176_vm6, %v456_v17 }
  0xcf   :  { %1220 = vst.msk [vmem:[#allocation3 + $0x4f] sm:$0xff] %vm1210_vm4, %v1181_v38  ;;  %3486 = vmatmul.msk.f32.gmra.mxu1 %vm997_vm1, %v1234_v55 }
  0xd0   :  { %320 = vst.msk [vmem:[#allocation2 + $0x29] sm:$0xff] %vm314_vm9, %v4009_v24  ;;  %1637 = vperm.xlu2 %3615, %v984_v7  }
  0xd2   :  { %v397_v56 = vpop.permute.xlu0 %396  ;;  %v1055_v57 = vpop.permute.xlu1 %1054 }
  0xd3   :  { %442 = vst.msk [vmem:[#allocation2 + $0x1f] sm:$0xff] %vm438_vm11, %v397_v56  ;;  %v1187_v19 = vpop.permute.xlu2 %1186 }
  0xd4   :  { %1091 = vst.msk [vmem:[#allocation3 + $0x60] sm:$0xff] %vm1078_vm2, %v1055_v57  ;;  %v987_v57 = vld [vmem:[%s4332_s2 + $0x30] sm:$0xff] }
  0xd5   :  { %1122 = vst.msk [vmem:[#allocation3 + $0x59] sm:$0xff] %vm746_vm3, %v4006_v23 }
  0xd6   :  { %v1235_v20 = vld [vmem:[#allocation3 + $0x48] sm:$0xff]  ;;  %1123 = vst.msk [vmem:[#allocation3 + $0x61] sm:$0xff] %vm746_vm3, %v4029_v29 }
  0xd7   :  { %3487 = vmatmul.msk.f32.gmra.mxu1 %vm997_vm1, %v1235_v20  ;;  %v993_v20 = vld [vmem:[%s4350_s6 + $0x20] sm:$0xff] }
  0xd8   :  { %1690 = vperm.xlu2 %3615, %v993_v20  }
  0xda   :  { %v1183_v58 = vpop.permute.xlu0 %1182  ;;  %v399_v60 = vpop.permute.xlu1 %398  ;;  %v457_v61 = vld [vmem:[#allocation2 + $0x18] sm:$0xff] }
  0xdb   :  { %1221 = vst.msk [vmem:[#allocation3 + $0x57] sm:$0xff] %vm1210_vm4, %v1183_v58  ;;  %3465 = vmatmul.msk.f32.gmra.mxu0 %vm176_vm6, %v457_v61  ;;  %v228_v24 = vpop.permute.xlu2 %227  ;;  %v161_v61 = vld [vmem:[%s4389_s15 + $0x10] sm:$0xff] }
  0xdc   :  { %443 = vst.msk [vmem:[#allocation2 + $0x27] sm:$0xff] %vm438_vm11, %v399_v60 }
  0xdd   :  { %267 = vst.msk [vmem:[#allocation2 + $0x48] sm:$0xff] %vm257_vm8, %v228_v24  ;;  %v4438_v24 = vld [vmem:[%s4132_s20] ss:$0 sm:$0xff]  ;;  %s3845_s20 = smov 10  }
  0xde   :  { %s4589_s23 = sld [smem:[%s5697_s0 + %s3845_s20]]   ;;  %s3861_s20 = smov 26  }
  0xe2   :  { %v224_v62 = vpop.permute.xlu0 %223  ;;  %v1185_v23 = vpop.permute.xlu1 %1184  ;;  %v1236_v63 = vld [vmem:[#allocation3 + $0x50] sm:$0xff] }
  0xe3   :  { %265 = vst.msk [vmem:[#allocation2 + $0x38] sm:$0xff] %vm257_vm8, %v224_v62  ;;  %v458_v29 = vld [vmem:[#allocation2 + $0x20] sm:$0xff]  ;;  %3488 = vmatmul.msk.f32.gmra.mxu1 %vm997_vm1, %v1236_v63  ;;  %v230_v0 = vpop.permute.xlu2 %229  ;;  %v988_v62 = vld [vmem:[%s4332_s2 + $0x38] sm:$0xff] }
  0xe4   :  { %321 = vst.msk [vmem:[#allocation2 + $0x31] sm:$0xff] %vm314_vm9, %v4036_v30  ;;  %3466 = vmatmul.msk.f32.gmra.mxu0 %vm176_vm6, %v458_v29  ;;  %v986_v29 = vld [vmem:[%s4332_s2 + $0x28] sm:$0xff] }
  0xe5   :  { %1222 = vst.msk [vmem:[#allocation3 + $0x5f] sm:$0xff] %vm1210_vm4, %v1185_v23  ;;  %1647 = vperm.xlu2 %3615, %v986_v29  }
  0xe6   :  { %444 = vst.msk [vmem:[#allocation2 + $0x2f] sm:$0xff] %vm438_vm11, %v401_v53  ;;  %v313_v53 = vsel %vm281_vm7, 0.0, %v4249_v10 }
  0xe7   :  { %268 = vst.msk [vmem:[#allocation2 + $0x50] sm:$0xff] %vm257_vm8, %v230_v0 }
  0xe8   :  { %324 = vst.msk [vmem:[#allocation2 + $0x49] sm:$0xff] %vm314_vm9, %v4115_v49 }
  0xea   :  { %v1059_v3 = vpop.permute.xlu0 %1058  ;;  %v226_v30 = vpop.permute.xlu1 %225 }
  0xeb   :  { %1093 = vst.msk [vmem:[#allocation3 + $0x70] sm:$0xff] %vm1078_vm2, %v1059_v3  ;;  %v232_v5 = vpop.permute.xlu2 %231 }
  0xec   :  { %1124 = vst.msk [vmem:[#allocation3 + $0x69] sm:$0xff] %vm746_vm3, %v4064_v35  ;;  %v1237_v6 = vld [vmem:[#allocation3 + $0x58] sm:$0xff] }
  0xed   :  { %266 = vst.msk [vmem:[#allocation2 + $0x40] sm:$0xff] %vm257_vm8, %v226_v30  ;;  %3489 = vmatmul.msk.f32.gmra.mxu1 %vm997_vm1, %v1237_v6  ;;  %v459_v8 = vld [vmem:[#allocation2 + $0x28] sm:$0xff]  ;;  %v162_v6 = vld [vmem:[%s4389_s15 + $0x18] sm:$0xff]  ;;  %911 = vperm.xlu2 %3615, %v160_v15  }
  0xee   :  { %322 = vst.msk [vmem:[#allocation2 + $0x39] sm:$0xff] %vm314_vm9, %v305_v4  ;;  %3467 = vmatmul.msk.f32.gmra.mxu0 %vm176_vm6, %v459_v8 }
  0xef   :  { %1223 = vst.msk [vmem:[#allocation3 + $0x67] sm:$0xff] %vm1210_vm4, %v1187_v19  ;;  %v995_v19 = vld [vmem:[%s4350_s6 + $0x30] sm:$0xff] }
  0xf0   :  { %323 = vst.msk [vmem:[#allocation2 + $0x41] sm:$0xff] %vm314_vm9, %v4094_v44  ;;  %v990_v44 = vld [vmem:[%s4350_s6 + $0x8] sm:$0xff] }
  0xf1   :  { %269 = vst.msk [vmem:[#allocation2 + $0x58] sm:$0xff] %vm257_vm8, %v232_v5  ;;  %1675 = vperm.xlu1 %3614, %v990_v44   ;;  %v154_v5 = vld [vmem:[%s4384_s10 + $0x18] sm:$0xff]  ;;  %v156_v44 = vld [vmem:[%s4384_s10 + $0x28] sm:$0xff] }
  0xf2   :  { %v403_v35 = vpop.permute.xlu0 %402  ;;  %v1061_v49 = vpop.permute.xlu1 %1060  ;;  %325 = vst.msk [vmem:[#allocation2 + $0x51] sm:$0xff] %vm314_vm9, %v4144_v54 }
  0xf3   :  { %445 = vst.msk [vmem:[#allocation2 + $0x37] sm:$0xff] %vm438_vm11, %v403_v35  ;;  %v411_v21 = vpop.permute.xlu2 %410 }
  0xf4   :  { %1094 = vst.msk [vmem:[#allocation3 + $0x78] sm:$0xff] %vm1078_vm2, %v1061_v49 }
  0xf5   :  { %1125 = vst.msk [vmem:[#allocation3 + $0x71] sm:$0xff] %vm746_vm3, %v4091_v43  ;;  %v982_v43 = vld [vmem:[%s4332_s2 + $0x8] sm:$0xff]  ;;  %s3864_s2 = smov 29  }
  0xf6   :  { %1127 = vst.msk [vmem:[#allocation3 + $0x79] sm:$0x7f] %vm1126_vm12, %v1110_v18  ;;  %v1238_v22 = vld [vmem:[#allocation3 + $0x60] sm:$0xff]  ;;  %1627 = vperm.xlu0 %3616, %v982_v43  }
  0xf7   :  { %3490 = vmatmul.msk.f32.gmra.mxu1 %vm997_vm1, %v1238_v22  ;;  %v163_v22 = vld [vmem:[%s4389_s15 + $0x20] sm:$0xff] }
  0xf9   :  { %1680 = vperm.xlu1 %3614, %v991_v28  }
  0xfa   :  { %v1189_v54 = vpop.permute.xlu0 %1188  ;;  %v405_v25 = vpop.permute.xlu1 %404  ;;  %v460_v48 = vld [vmem:[#allocation2 + $0x30] sm:$0xff] }
  0xfb   :  { %1224 = vst.msk [vmem:[#allocation3 + $0x6f] sm:$0xff] %vm1210_vm4, %v1189_v54  ;;  %3468 = vmatmul.msk.f32.gmra.mxu0 %vm176_vm6, %v460_v48  ;;  %v238_v27 = vpop.permute.xlu2 %237 }
  0xfc   :  { %446 = vst.msk [vmem:[#allocation2 + $0x3f] sm:$0xff] %vm438_vm11, %v405_v25  ;;  %v153_v25 = vld [vmem:[%s4384_s10 + $0x10] sm:$0xff] }
  0xfd   :  { %272 = vst.msk [vmem:[#allocation2 + $0x70] sm:$0xff] %vm257_vm8, %v238_v27  ;;  %868 = vperm.xlu2 %3615, %v153_v25   ;;  %v3843_v25 = vmov 32.0  }
  0xfe   :  { %1685 = vperm.xlu0 %3616, %v992_v34   ;;  %v165_v34 = vld [vmem:[%s4389_s15 + $0x30] sm:$0xff] }
 0x101   :  { %1642 = vperm.xlu1 %3614, %v985_v12  }
 0x102   :  { %v1191_v31 = vpop.permute.xlu0 %1190  ;;  %v407_v32 = vpop.permute.xlu1 %406  ;;  %v1239_v26 = vld [vmem:[#allocation3 + $0x68] sm:$0xff] }
 0x103   :  { %1225 = vst.msk [vmem:[#allocation3 + $0x77] sm:$0xff] %vm1210_vm4, %v1191_v31  ;;  %v461_v33 = vld [vmem:[#allocation2 + $0x38] sm:$0xff]  ;;  %3491 = vmatmul.msk.f32.gmra.mxu1 %vm997_vm1, %v1239_v26 }
 0x104   :  { %447 = vst.msk [vmem:[#allocation2 + $0x47] sm:$0xff] %vm438_vm11, %v407_v32  ;;  %3469 = vmatmul.msk.f32.gmra.mxu0 %vm176_vm6, %v461_v33  ;;  %v157_v33 = vld [vmem:[%s4384_s10 + $0x30] sm:$0xff] }
 0x106   :  { %858 = vperm.xlu0 %3616, %v151_v41  }
 0x109   :  { %906 = vperm.xlu1 %3614, %v159_v42  }
 0x10a   :  { %v409_v36 = vpop.permute.xlu0 %408  ;;  %v1240_v37 = vld [vmem:[#allocation3 + $0x70] sm:$0xff]  ;;  %v234_v38 = vpop.permute.xlu1 %233  ;;  %v1241_v46 = vld [vmem:[#allocation3 + $0x78] sm:$0xff] }
 0x10b   :  { %448 = vst.msk [vmem:[#allocation2 + $0x4f] sm:$0xff] %vm438_vm11, %v409_v36  ;;  %v462_v13 = vld [vmem:[#allocation2 + $0x40] sm:$0xff]  ;;  %3492 = vmatmul.msk.f32.gmra.mxu1 %vm997_vm1, %v1240_v37  ;;  %v996_v37 = vld [vmem:[%s4350_s6 + $0x38] sm:$0xff] }
 0x10c   :  { %v4394_v39 = vpop.f32.mrf.mxu1  ;;  %3470 = vmatmul.msk.f32.gmra.mxu0 %vm176_vm6, %v462_v13  ;;  %270 = vst.msk [vmem:[#allocation2 + $0x60] sm:$0xff] %vm257_vm8, %v234_v38  ;;  %1705 = vperm.xlu2 %3615, %v996_v37  }
 0x10d   :  { %326 = vst.msk [vmem:[#allocation2 + $0x59] sm:$0xff] %vm314_vm9, %v4165_v59 }
 0x10e   :  { %449 = vst.msk [vmem:[#allocation2 + $0x57] sm:$0xff] %vm438_vm11, %v411_v21  ;;  %1695 = vperm.xlu0 %3616, %v994_v51   ;;  %v166_v51 = vld [vmem:[%s4389_s15 + $0x38] sm:$0xff] }
 0x111   :  { %863 = vperm.xlu1 %3614, %v152_v52  }
 0x112   :  { %v236_v45 = vpop.permute.xlu0 %235  ;;  %v463_v11 = vld [vmem:[#allocation2 + $0x48] sm:$0xff]  ;;  %v413_v16 = vpop.permute.xlu1 %412 }
 0x113   :  { %271 = vst.msk [vmem:[#allocation2 + $0x68] sm:$0xff] %vm257_vm8, %v236_v45  ;;  %3493 = vmatmul.msk.f32.gmra.mxu1 %vm997_vm1, %v1241_v46 }
 0x114   :  { %v4406_v50 = vpop.f32.mrf.mxu1  ;;  %327 = vst.msk [vmem:[#allocation2 + $0x61] sm:$0xff] %vm314_vm9, %v4188_v2  ;;  %3471 = vmatmul.msk.f32.gmra.mxu0 %vm176_vm6, %v463_v11 }
 0x115   :  { %450 = vst.msk [vmem:[#allocation2 + $0x5f] sm:$0xff] %vm438_vm11, %v413_v16  ;;  %v464_v59 = vld [vmem:[#allocation2 + $0x50] sm:$0xff] }
 0x116   :  { %328 = vst.msk [vmem:[#allocation2 + $0x69] sm:$0xff] %vm314_vm9, %v4219_v1  ;;  %v419_v1 = vpop.permute.xlu2 %418  ;;  %1652 = vperm.xlu0 %3616, %v987_v57  }
 0x119   :  { %1700 = vperm.xlu1 %3614, %v995_v19  }
 0x11a   :  { %v240_v17 = vpop.permute.xlu0 %239  ;;  %v417_v2 = vpop.permute.xlu1 %416 }
 0x11b   :  { %273 = vst.msk [vmem:[#allocation2 + $0x78] sm:$0xff] %vm257_vm8, %v240_v17  ;;  %v155_v17 = vld [vmem:[%s4384_s10 + $0x20] sm:$0xff] }
 0x11c   :  { %v4420_v55 = vpop.f32.mrf.mxu1  ;;  %329 = vst.msk [vmem:[#allocation2 + $0x71] sm:$0xff] %vm314_vm9, %v4234_v9  ;;  %3472 = vmatmul.msk.f32.gmra.mxu0 %vm176_vm6, %v464_v59  ;;  %v465_v10 = vld [vmem:[#allocation2 + $0x58] sm:$0xff]  ;;  %878 = vperm.xlu2 %3615, %v155_v17  }
 0x11d   :  { %331 = vst.msk [vmem:[#allocation2 + $0x79] sm:$0x7f] %vm330_vm13, %v313_v53 }
 0x11e   :  { %452 = vst.msk [vmem:[#allocation2 + $0x6f] sm:$0xff] %vm438_vm11, %v417_v2  ;;  %916 = vperm.xlu0 %3616, %v161_v61   ;;  %v1311_v61 = vadd.f32 %v4438_v24, %v4394_v39 }
 0x11f   :  { %453 = vst.msk [vmem:[#allocation2 + $0x77] sm:$0xff] %vm438_vm11, %v419_v1 }
 0x121   :  { %1657 = vperm.xlu1 %3614, %v988_v62  }
 0x122   :  { %v415_v56 = vpop.permute.xlu0 %414 }
 0x123   :  { %451 = vst.msk [vmem:[#allocation2 + $0x67] sm:$0xff] %vm438_vm11, %v415_v56 }
 0x124   :  { %v4431_v9 = vpop.f32.mrf.mxu1  ;;  %3473 = vmatmul.msk.f32.gmra.mxu0 %vm176_vm6, %v465_v10 }
 0x126   :  { %v468_v58 = vld [vmem:[#allocation2 + $0x70] sm:$0xff]  ;;  %v469_v63 = vld [vmem:[#allocation2 + $0x78] sm:$0xff]  ;;  %873 = vperm.xlu0 %3616, %v154_v5  }
 0x127   :  { %3476 = vmatmul.msk.f32.vlgmr.msra.gmra.mxu3 %vm176_vm6, %v468_v58 }
 0x129   :  { %921 = vperm.xlu1 %3614, %v162_v6   ;;  %v164_v6 = vld [vmem:[%s4389_s15 + $0x28] sm:$0xff]  ;;  %s5575_s15 = sld [smem:[%s5697_s0 + %s3859_s11]]  }
 0x12a   :  { %v466_v60 = vld [vmem:[#allocation2 + $0x60] sm:$0xff]  ;;  %v467_v4 = vld [vmem:[#allocation2 + $0x68] sm:$0xff]  ;;  %931 = vperm.xlu2 %3615, %v164_v6  }
 0x12c   :  { %v1322_v23 = vpop.f32.mrf.mxu1  ;;  %3474 = vmatmul.msk.f32.gmra.mxu0 %vm176_vm6, %v466_v60 }
 0x12d   :  { %v1323_v0 = vadd.f32 %v4438_v24, %v1322_v23 }
 0x12e   :  { %883 = vperm.xlu0 %3616, %v156_v44  }
 0x12f   :  { %v1358_v3 = vsub.f32 0.0, %v1323_v0  ;;  %3477 = vmatmul.msk.f32.gmra.mxu3 %vm176_vm6, %v469_v63  ;;  %v1314_v63 = vadd.f32 %v4438_v24, %v4406_v50 }
 0x131   :  { %v1366_v30 = vmul.f32 1.442695, %v1358_v3  ;;  %926 = vperm.xlu1 %3614, %v163_v22  }
 0x133   :  { %3631 = vpow2.f32 %v1366_v30 }
 0x134   :  { %v1325_v8 = vpop.f32.mrf.mxu1  ;;  %3475 = vmatmul.msk.f32.gmra.mxu0 %vm176_vm6, %v467_v4 }
 0x135   :  { %v1326_v40 = vadd.f32 %v4438_v24, %v1325_v8 }
 0x136   :  { %888 = vperm.xlu0 %3616, %v157_v33  }
 0x137   :  { %v1359_v35 = vsub.f32 0.0, %v1326_v40 }
 0x138   :  { %v4454_v27 = vpop.f32.mrf.mxu0 }
 0x139   :  { %v3632_v49 = vpop.eup %3631  ;;  %v1368_v18 = vmul.f32 1.442695, %v1359_v35  ;;  %936 = vperm.xlu1 %3614, %v165_v34  }
 0x13a   :  { %v1382_v21 = vadd.f32 1.0, %v3632_v49 }
 0x13b   :  { %3633 = vpow2.f32 %v1368_v18 }
 0x13c   :  { %3635 = vrcp.f32 %v1382_v21  ;;  %v1328_v54 = vpop.f32.mrf.mxu1  ;;  %v1401_v47 = vand.u32 2147483648, %v1382_v21  ;;  %vm1395_vm15 = vweird.f32 %v1382_v21  ;;  %v1399_v52 = vand.u32 2147483647, %v1382_v21 }
 0x13d   :  { %v1329_v48 = vadd.f32 %v4438_v24, %v1328_v54 }
 0x13e   :  { %941 = vperm.xlu0 %3616, %v166_v51   ;;  %v1402_v7 = vor.u32 1.1754944e-38, %v1401_v47  ;;  %vm1400_vm1 = vcmp.eq.f32.partialorder %v1399_v52, 8.507059e+37  ;;  %v1320_v47 = vadd.f32 %v4438_v24, %v4431_v9 }
 0x13f   :  { %v1360_v43 = vsub.f32 0.0, %v1329_v48 }
 0x141   :  { %v3634_v28 = vpop.eup %3633  ;;  %v1370_v31 = vmul.f32 1.442695, %v1360_v43  ;;  %v4460_v42 = vpop.f32.mrf.mxu0  ;;  %v1317_v43 = vadd.f32 %v4438_v24, %v4420_v55 }
 0x142   :  { %v3636_v32 = vpop.eup %3635  ;;  %v1383_v26 = vadd.f32 1.0, %v3634_v28 }
 0x143   :  { %v1391_v12 = vmul.f32 %v3636_v32, %v1382_v21  ;;  %3637 = vpow2.f32 %v1370_v31  ;;  %vm1396_vm14 = vweird.f32 %v3636_v32 }
 0x144   :  { %3639 = vrcp.f32 %v1383_v26  ;;  %v1331_v36 = vpop.f32.mrf.mxu1  ;;  %vm1397_vm0 = vmor %vm1395_vm15, %vm1396_vm14  ;;  %v1416_v10 = vand.u32 2147483648, %v1383_v26  ;;  %v1414_v57 = vand.u32 2147483647, %v1383_v26  ;;  %vm1410_vm4 = vweird.f32 %v1383_v26 }
 0x145   :  { %v1392_v38 = vsub.f32 1.0, %v1391_v12  ;;  %v1332_v13 = vadd.f32 %v4438_v24, %v1331_v36 }
 0x146   :  { %v1417_v29 = vor.u32 1.1754944e-38, %v1416_v10  ;;  %vm1415_vm6 = vcmp.eq.f32.partialorder %v1414_v57, 8.507059e+37 }
 0x147   :  { %v1393_v14 = vmul.f32 %v3636_v32, %v1392_v38  ;;  %v1361_v41 = vsub.f32 0.0, %v1332_v13 }
 0x149   :  { %v3638_v45 = vpop.eup %3637  ;;  %v1394_v11 = vadd.f32 %v3636_v32, %v1393_v14  ;;  %v1372_v46 = vmul.f32 1.442695, %v1361_v41  ;;  %v4493_v14 = vld [vmem:[%s4280_s28] ss:$0 sm:$0xff]  ;;  %s3847_s28 = smov 11  }
 0x14a   :  { %v3640_v16 = vpop.eup %3639  ;;  %v1384_v59 = vadd.f32 1.0, %v3638_v45  ;;  %s4874_s1 = sld [smem:[%s5697_s0 + %s3847_s28]]   ;;  %s3863_s28 = smov 28  }
 0x14b   :  { %v1406_v53 = vmul.f32 %v3640_v16, %v1383_v26  ;;  %3641 = vpow2.f32 %v1372_v46  ;;  %v1398_v2 = vsel %vm1397_vm0, %v3636_v32, %v1394_v11  ;;  %vm1411_vm2 = vweird.f32 %v3640_v16  ;;  %v4464_v20 = vpop.f32.mrf.mxu0  ;;  %v158_v26 = vld [vmem:[%s4384_s10 + $0x38] sm:$0xff]  ;;  %s5427_s10 = sld [smem:[%s5697_s0 + %s3858_s7]]  }
 0x14c   :  { %3643 = vrcp.f32 %v1384_v59  ;;  %v1403_v19 = vsel %vm1400_vm1, %v1402_v7, %v1398_v2  ;;  %v4466_v58 = vpop.f32.mrf.mxu1  ;;  %vm1412_vm5 = vmor %vm1410_vm4, %vm1411_vm2  ;;  %v1429_v15 = vand.u32 2147483647, %v1384_v59  ;;  %v1431_v40 = vand.u32 2147483648, %v1384_v59  ;;  %893 = vperm.xlu2 %3615, %v158_v26  }
 0x14d   :  { %v1407_v1 = vsub.f32 1.0, %v1406_v53  ;;  %v4472_v3 = vmul.f32 %v1403_v19, %v1311_v61  ;;  %vm1425_vm8 = vweird.f32 %v1384_v59 }
 0x14e   :  { %v1432_v54 = vor.u32 1.1754944e-38, %v1431_v40  ;;  %vm1430_vm10 = vcmp.eq.f32.partialorder %v1429_v15, 8.507059e+37 }
 0x14f   :  { %v1408_v56 = vmul.f32 %v3640_v16, %v1407_v1  ;;  %v1518_v50 = vsel %vm746_vm3, %v4472_v3, 0.0 }
 0x151   :  { %v3642_v60 = vpop.eup %3641  ;;  %v1409_v62 = vadd.f32 %v3640_v16, %v1408_v56 }
 0x152   :  { %v3644_v23 = vpop.eup %3643  ;;  %v1385_v0 = vadd.f32 1.0, %v3642_v60 }
 0x153   :  { %v1413_v30 = vsel %vm1412_vm5, %v3640_v16, %v1409_v62  ;;  %v1421_v4 = vmul.f32 %v3644_v23, %v1384_v59  ;;  %vm1426_vm7 = vweird.f32 %v3644_v23 }
 0x154   :  { %v1418_v5 = vsel %vm1415_vm6, %v1417_v29, %v1413_v30  ;;  %3645 = vrcp.f32 %v1385_v0  ;;  %vm1427_vm9 = vmor %vm1425_vm8, %vm1426_vm7  ;;  %v4483_v48 = vpop.f32.mrf.mxu1  ;;  %v1446_v12 = vand.u32 2147483648, %v1385_v0  ;;  %v1444_v38 = vand.u32 2147483647, %v1385_v0 }
 0x155   :  { %v4475_v8 = vmul.f32 %v1418_v5, %v1314_v63  ;;  %v1422_v39 = vsub.f32 1.0, %v1421_v4  ;;  %3647 = vrcp.f32 %v3843_v25  ;;  %vm1440_vm12 = vweird.f32 %v1385_v0 }
 0x156   :  { %v1447_v11 = vor.u32 1.1754944e-38, %v1446_v12  ;;  %vm1445_vm14 = vcmp.eq.f32.partialorder %v1444_v38, 8.507059e+37 }
 0x157   :  { %v1519_v35 = vsel %vm746_vm3, %v4475_v8, 0.0  ;;  %v1423_v49 = vmul.f32 %v3644_v23, %v1422_v39 }
 0x158   :  { %v1520_v18 = vadd.f32 %v1519_v35, %v1518_v50  ;;  %v4481_v21 = vpop.f32.mrf.mxu0 }
 0x159   :  { %v1424_v44 = vadd.f32 %v3644_v23, %v1423_v49 }
 0x15a   :  { %v3646_v22 = vpop.eup %3645 }
 0x15b   :  { %v1428_v28 = vsel %vm1427_vm9, %v3644_v23, %v1424_v44  ;;  %v1436_v31 = vmul.f32 %v3646_v22, %v1385_v0  ;;  %vm1441_vm11 = vweird.f32 %v3646_v22  ;;  %v3648_v13 = vpop.eup %3647 }
 0x15c   :  { %v1433_v32 = vsel %vm1430_vm10, %v1432_v54, %v1428_v28  ;;  %vm1442_vm13 = vmor %vm1440_vm12, %vm1441_vm11  ;;  %v774_v59 = vmul.f32 32.0, %v3648_v13  ;;  %vm778_vm15 = vweird.f32 %v3648_v13 }
 0x15d   :  { %v4488_v33 = vmul.f32 %v1433_v32, %v1317_v43  ;;  %v1437_v34 = vsub.f32 1.0, %v1436_v31 }
 0x15e   :  { %v775_v1 = vsub.f32 1.0, %v774_v59 }
 0x15f   :  { %v1521_v36 = vsel %vm746_vm3, %v4488_v33, 0.0  ;;  %v1438_v37 = vmul.f32 %v3646_v22, %v1437_v34 }
 0x160   :  { %v1522_v55 = vadd.f32 %v1521_v36, %v1520_v18  ;;  %v4496_v16 = vpop.f32.mrf.mxu1  ;;  %v776_v57 = vmul.f32 %v3648_v13, %v775_v1 }
 0x161   :  { %v1439_v41 = vadd.f32 %v3646_v22, %v1438_v37  ;;  %v550_v45 = vpop.f32.mrf.mxu0 }
 0x162   :  { %v551_v46 = vadd.f32 %v4493_v14, %v550_v45  ;;  %v777_v29 = vadd.f32 %v3648_v13, %v776_v57 }
 0x163   :  { %v1443_v51 = vsel %vm1442_vm13, %v3646_v22, %v1439_v41 }
 0x164   :  { %v1448_v52 = vsel %vm1445_vm14, %v1447_v11, %v1443_v51  ;;  %v586_v53 = vsub.f32 0.0, %v551_v46  ;;  %v4507_v6 = vsel %vm778_vm15, %v3648_v13, %v777_v29 }
 0x165   :  { %v1513_v17 = vmul.f32 %v1448_v52, %v1320_v47 }
 0x166   :  { %v594_v2 = vmul.f32 1.442695, %v586_v53 }
 0x167   :  { %v1523_v7 = vsel %vm746_vm3, %v1513_v17, 0.0 }
 0x168   :  { %v1524_v10 = vadd.f32 %v1523_v7, %v1522_v55  ;;  %3649 = vpow2.f32 %v594_v2 }
 0x16a   :  { %v1525_v56 = vrot.slane %v1524_v10, 4  ;;  %v4501_v61 = vpop.f32.mrf.mxu1 }
 0x16b   :  { %v553_v19 = vpop.f32.mrf.mxu0 }
 0x16c   :  { %v1526_v60 = vadd.f32 %v1525_v56, %v1524_v10  ;;  %v554_v9 = vadd.f32 %v4493_v14, %v553_v19 }
 0x16e   :  { %v3650_v62 = vpop.eup %3649  ;;  %v1527_v23 = vrot.slane %v1526_v60, 2  ;;  %v587_v63 = vsub.f32 0.0, %v554_v9 }
 0x16f   :  { %v4504_v0 = vadd.f32 1.0, %v3650_v62 }
 0x170   :  { %v1528_v30 = vadd.f32 %v1527_v23, %v1526_v60  ;;  %v596_v4 = vmul.f32 1.442695, %v587_v63 }
 0x171   :  { %3651 = vrcp.f32 %v4504_v0  ;;  %v629_v57 = vand.u32 2147483648, %v4504_v0  ;;  %vm623_vm1 = vweird.f32 %v4504_v0  ;;  %v627_v9 = vand.u32 2147483647, %v4504_v0 }
 0x172   :  { %v1529_v5 = vrot.slane %v1528_v30, 1  ;;  %3653 = vpow2.f32 %v596_v4 }
 0x173   :  { %vm628_vm4 = vcmp.eq.f32.partialorder %v627_v9, 8.507059e+37 }
 0x174   :  { %v1530_v39 = vadd.f32 %v1529_v5, %v1528_v30  ;;  %v1346_v15 = vpop.f32.mrf.mxu1  ;;  %v630_v5 = vor.u32 1.1754944e-38, %v629_v57 }
 0x175   :  { %v1347_v40 = vadd.f32 %v4438_v24, %v1346_v15 }
 0x176   :  { %v1544_v50 = vmul.f32 %v1530_v39, %v4507_v6 }
 0x177   :  { %v4511_v35 = vpop.eup %3651  ;;  %v1362_v49 = vsub.f32 0.0, %v1347_v40 }
 0x178   :  { %v3654_v18 = vpop.eup %3653  ;;  %v619_v44 = vmul.f32 %v4511_v35, %v4504_v0  ;;  %v556_v22 = vpop.f32.mrf.mxu0  ;;  %v4516_v54 = vsub.f32 %v4472_v3, %v1544_v50  ;;  %v4522_v31 = vsub.f32 %v4475_v8, %v1544_v50  ;;  %v4524_v32 = vsub.f32 %v1513_v17, %v1544_v50 }
 0x179   :  { %v4518_v25 = vadd.f32 1.0, %v3654_v18  ;;  %v1374_v43 = vmul.f32 1.442695, %v1362_v49  ;;  %v557_v28 = vadd.f32 %v4493_v14, %v556_v22  ;;  %v4527_v26 = vsub.f32 %v4488_v33, %v1544_v50  ;;  %v1797_v18 = vld [vmem:[%s4553_s19 + $0x18] sm:$0xff] }
 0x17a   :  { %v1554_v34 = vmul.f32 %v4516_v54, %v4516_v54  ;;  %v620_v12 = vsub.f32 1.0, %v619_v44  ;;  %v1555_v36 = vmul.f32 %v4522_v31, %v4522_v31  ;;  %v1557_v33 = vmul.f32 %v4524_v32, %v4524_v32  ;;  %1838 = vmatpush.msrb.mxu3 %v1797_v18 }
 0x17b   :  { %3655 = vrcp.f32 %v4518_v25  ;;  %v588_v3 = vsub.f32 0.0, %v557_v28  ;;  %v1556_v8 = vmul.f32 %v4527_v26, %v4527_v26  ;;  %vm624_vm0 = vweird.f32 %v4511_v35 }
 0x17c   :  { %3657 = vpow2.f32 %v1374_v43  ;;  %v1562_v37 = vsel %vm746_vm3, %v1554_v34, 0.0  ;;  %v1563_v13 = vsel %vm746_vm3, %v1555_v36, 0.0  ;;  %v621_v55 = vmul.f32 %v4511_v35, %v620_v12  ;;  %vm625_vm2 = vmor %vm623_vm1, %vm624_vm0  ;;  %v1796_v12 = vld [vmem:[%s4553_s19 + $0x10] sm:$0xff] }
 0x17d   :  { %v598_v38 = vmul.f32 1.442695, %v588_v3  ;;  %v1564_v41 = vadd.f32 %v1563_v13, %v1562_v37  ;;  %v1565_v11 = vsel %vm746_vm3, %v1556_v8, 0.0  ;;  %v1567_v2 = vsel %vm746_vm3, %v1557_v33, 0.0  ;;  %1839 = vmatpush.msrb.mxu3 %v1796_v12 }
 0x17e   :  { %v622_v1 = vadd.f32 %v4511_v35, %v621_v55  ;;  %v642_v36 = vand.u32 2147483647, %v4518_v25  ;;  %v644_v8 = vand.u32 2147483648, %v4518_v25  ;;  %v4595_v33 = vadd.f32 %v4493_v14, %v4464_v20  ;;  %v1795_v55 = vld [vmem:[%s4553_s19 + $0x8] sm:$0xff] }
 0x17f   :  { %3659 = vpow2.f32 %v598_v38  ;;  %v1566_v51 = vadd.f32 %v1565_v11, %v1564_v41  ;;  %v542_v38 = vadd.f32 %v4493_v14, %v4460_v42  ;;  %vm638_vm6 = vweird.f32 %v4518_v25  ;;  %1840 = vmatpush.msrb.mxu3 %v1795_v55 }
 0x180   :  { %v1349_v45 = vpop.f32.mrf.mxu1  ;;  %v626_v30 = vsel %vm625_vm2, %v4511_v35, %v622_v1  ;;  %v539_v35 = vadd.f32 %v4493_v14, %v4454_v27  ;;  %vm643_vm8 = vcmp.eq.f32.partialorder %v642_v36, 8.507059e+37  ;;  %v645_v1 = vor.u32 1.1754944e-38, %v644_v8 }
 0x181   :  { %v4542_v46 = vpop.eup %3655  ;;  %v559_v47 = vpop.f32.mrf.mxu0  ;;  %v1350_v59 = vadd.f32 %v4438_v24, %v1349_v45  ;;  %v1568_v56 = vadd.f32 %v1567_v2, %v1566_v51  ;;  %v631_v50 = vsel %vm628_vm4, %v630_v5, %v626_v30  ;;  %v4601_v45 = vadd.f32 %v4438_v24, %v4466_v58 }
 0x182   :  { %v3658_v52 = vpop.eup %3657  ;;  %v634_v53 = vmul.f32 %v4542_v46, %v4518_v25  ;;  %v560_v17 = vadd.f32 %v4493_v14, %v559_v47  ;;  %vm639_vm5 = vweird.f32 %v4542_v46  ;;  %v4582_v3 = vmul.f32 %v631_v50, %v539_v35 }
 0x183   :  { %v4556_v7 = vadd.f32 1.0, %v3658_v52  ;;  %v1363_v10 = vsub.f32 0.0, %v1350_v59  ;;  %v1569_v29 = vrot.slane %v1568_v56, 4  ;;  %vm4605_vm7 = vmor %vm638_vm6, %vm639_vm5  ;;  %v4613_v59 = vadd.f32 %v4438_v24, %v4483_v48 }
 0x184   :  { %v635_v19 = vsub.f32 1.0, %v634_v53  ;;  %v589_v60 = vsub.f32 0.0, %v560_v17  ;;  %v1794_v17 = vld [vmem:[%s4553_s19] sm:$0xff]  ;;  %v747_v2 = vsel %vm746_vm3, %v4582_v3, 0.0  ;;  %s5580_s19 = sld [smem:[%s5697_s0 + %s3860_s16]]  }
 0x185   :  { %3661 = vrcp.f32 %v4556_v7  ;;  %v3660_v62 = vpop.eup %3659  ;;  %v1376_v63 = vmul.f32 1.442695, %v1363_v10  ;;  %v1570_v15 = vadd.f32 %v1569_v29, %v1568_v56  ;;  %1841 = vmatpush.msrb.mxu3 %v1794_v17  ;;  %v1459_v29 = vand.u32 2147483647, %v4556_v7 }
 0x186   :  { %v600_v23 = vmul.f32 1.442695, %v589_v60  ;;  %v4565_v4 = vadd.f32 1.0, %v3660_v62  ;;  %v636_v39 = vmul.f32 %v4542_v46, %v635_v19  ;;  %v1461_v30 = vand.u32 2147483648, %v4556_v7 }
 0x187   :  { %v1571_v49 = vrot.slane %v1570_v15, 2  ;;  %vm1455_vm13 = vweird.f32 %v4556_v7  ;;  %vm4651_vm15 = vcmp.eq.f32.partialorder %v1459_v29, 8.507059e+37 }
 0x188   :  { %3663 = vpow2.f32 %v600_v23  ;;  %v1352_v0 = vpop.f32.mrf.mxu1  ;;  %v637_v43 = vadd.f32 %v4542_v46, %v636_v39  ;;  %v659_v56 = vand.u32 2147483648, %v4565_v4  ;;  %v657_v23 = vand.u32 2147483647, %v4565_v4  ;;  %v1724_v39 = vld [vmem:[%s4589_s23 + $0x18] sm:$0xff] }
 0x189   :  { %3665 = vrcp.f32 %v4565_v4  ;;  %v4569_v40 = vpop.f32.mrf.mxu0  ;;  %v1353_v22 = vadd.f32 %v4438_v24, %v1352_v0  ;;  %v1572_v34 = vadd.f32 %v1571_v49, %v1570_v15  ;;  %vm653_vm10 = vweird.f32 %v4565_v4  ;;  %1765 = vmatpush.msrb.mxu0 %v1724_v39  ;;  %3573 = vmatpush.msra.mxu2 %v1724_v39 }
 0x18a   :  { %3667 = vpow2.f32 %v1376_v63  ;;  %v641_v58 = vsel %vm4605_vm7, %v4542_v46, %v637_v43  ;;  %v4635_v63 = vadd.f32 %v4493_v14, %v4481_v21  ;;  %v660_v21 = vor.u32 1.1754944e-38, %v659_v56 }
 0x18b   :  { %v4572_v44 = vpop.eup %3661  ;;  %v1364_v27 = vsub.f32 0.0, %v1353_v22  ;;  %v1573_v13 = vrot.slane %v1572_v34, 1  ;;  %v646_v19 = vsel %vm643_vm8, %v645_v1, %v641_v58  ;;  %vm658_vm14 = vcmp.eq.f32.partialorder %v657_v23, 8.507059e+37 }
 0x18c   :  { %v1451_v28 = vmul.f32 %v4572_v44, %v4556_v7  ;;  %v4642_v15 = vmul.f32 %v646_v19, %v542_v38  ;;  %vm1456_vm11 = vweird.f32 %v4572_v44 }
 0x18d   :  { %v1378_v20 = vmul.f32 1.442695, %v1364_v27  ;;  %v1574_v52 = vadd.f32 %v1573_v13, %v1572_v34  ;;  %vm4661_vm0 = vmor %vm1455_vm13, %vm1456_vm11 }
 0x18e   :  { %v3664_v37 = vpop.eup %3663  ;;  %v1452_v42 = vsub.f32 1.0, %v1451_v28  ;;  %v1462_v28 = vor.u32 1.1754944e-38, %v1461_v30  ;;  %v748_v27 = vsel %vm746_vm3, %v4642_v15, 0.0 }
 0x18f   :  { %v3666_v41 = vpop.eup %3665  ;;  %v4609_v47 = vadd.f32 1.0, %v3664_v37  ;;  %v1588_v57 = vmul.f32 %v1574_v52, %v4507_v6  ;;  %v749_v58 = vadd.f32 %v748_v27, %v747_v2 }
 0x190   :  { %v3668_v25 = vpop.eup %3667  ;;  %v649_v51 = vmul.f32 %v3666_v41, %v4565_v4  ;;  %v1355_v53 = vpop.f32.mrf.mxu1  ;;  %v1453_v60 = vmul.f32 %v4572_v44, %v1452_v42  ;;  %vm654_vm9 = vweird.f32 %v3666_v41 }
 0x191   :  { %3669 = vrcp.f32 %v4609_v47  ;;  %v4623_v10 = vpop.f32.mrf.mxu0  ;;  %v4626_v46 = vadd.f32 1.0, %v3668_v25  ;;  %v1356_v9 = vadd.f32 %v4438_v24, %v1355_v53  ;;  %v4639_v5 = vadd.f32 1e-05, %v1588_v57  ;;  %vm655_vm12 = vmor %vm653_vm10, %vm654_vm9 }
 0x192   :  { %v650_v48 = vsub.f32 1.0, %v649_v51  ;;  %3671 = vpow2.f32 %v1378_v20  ;;  %v1454_v18 = vadd.f32 %v4572_v44, %v1453_v60  ;;  %v672_v38 = vand.u32 2147483647, %v4609_v47 }
 0x193   :  { %3673 = vrcp.f32 %v4626_v46  ;;  %v1365_v50 = vsub.f32 0.0, %v1356_v9  ;;  %vm668_vm2 = vweird.f32 %v4609_v47  ;;  %v1474_v52 = vand.u32 2147483647, %v4626_v46 }
 0x194   :  { %v651_v62 = vmul.f32 %v3666_v41, %v650_v48  ;;  %3675 = vrsqrt.f32 %v4639_v5  ;;  %v1458_v55 = vsel %vm4661_vm0, %v4572_v44, %v1454_v18  ;;  %v1476_v17 = vand.u32 2147483648, %v4626_v46 }
 0x195   :  { %v1380_v12 = vmul.f32 1.442695, %v1365_v50  ;;  %v1463_v44 = vsel %vm4651_vm15, %v1462_v28, %v1458_v55  ;;  %vm673_vm5 = vcmp.eq.f32.partialorder %v672_v38, 8.507059e+37  ;;  %vm1470_vm7 = vweird.f32 %v4626_v46 }
 0x196   :  { %v652_v0 = vadd.f32 %v3666_v41, %v651_v62  ;;  %v4687_v19 = vmul.f32 %v1463_v44, %v4601_v45  ;;  %vm1475_vm8 = vcmp.eq.f32.partialorder %v1474_v52, 8.507059e+37  ;;  %v1477_v30 = vor.u32 1.1754944e-38, %v1476_v17 }
 0x197   :  { %v3670_v49 = vpop.eup %3669  ;;  %3677 = vpow2.f32 %v1380_v12  ;;  %vm1598_vm11 = vweird.f32 %v4639_v5 }
 0x198   :  { %v656_v35 = vsel %vm655_vm12, %v3666_v41, %v652_v0  ;;  %v664_v22 = vmul.f32 %v3670_v49, %v4609_v47  ;;  %v3672_v4 = vpop.eup %3671  ;;  %v674_v41 = vand.u32 2147483648, %v4609_v47  ;;  %vm669_vm1 = vweird.f32 %v3670_v49 }
 0x199   :  { %v661_v34 = vsel %vm658_vm14, %v660_v21, %v656_v35  ;;  %v4655_v36 = vpop.f32.mrf.mxu0  ;;  %v3674_v8 = vpop.eup %3673  ;;  %v4666_v13 = vadd.f32 1.0, %v3672_v4  ;;  %vm670_vm4 = vmor %vm668_vm2, %vm669_vm1  ;;  %v1531_v4 = vsel %vm746_vm3, %v4687_v19, 0.0 }
 0x19a   :  { %v665_v37 = vsub.f32 1.0, %v664_v22  ;;  %v1466_v11 = vmul.f32 %v3674_v8, %v4626_v46  ;;  %v4674_v42 = vmul.f32 %v661_v34, %v4595_v33  ;;  %v3676_v25 = vpop.eup %3675  ;;  %v675_v1 = vor.u32 1.1754944e-38, %v674_v41  ;;  %v1671_v41 = vpop.permute.xlu2 %1670 }
 0x19b   :  { %3679 = vrcp.f32 %v4666_v13  ;;  %v1593_v33 = vmul.f32 %v3676_v25, %v4639_v5  ;;  %vm1471_vm6 = vweird.f32 %v3674_v8  ;;  %vm1599_vm10 = vweird.f32 %v3676_v25 }
 0x19c   :  { %v666_v20 = vmul.f32 %v3670_v49, %v665_v37  ;;  %v1467_v51 = vsub.f32 1.0, %v1466_v11  ;;  %v750_v2 = vsel %vm746_vm3, %v4674_v42, 0.0  ;;  %vm1472_vm9 = vmor %vm1470_vm7, %vm1471_vm6  ;;  %v1489_v28 = vand.u32 2147483647, %v4666_v13  ;;  %v1623_v37 = vpop.permute.xlu1 %1622 }
 0x19d   :  { %v1594_v56 = vmul.f32 %v3676_v25, %v1593_v33  ;;  %v3678_v57 = vpop.eup %3677  ;;  %v751_v46 = vadd.f32 %v750_v2, %v749_v58  ;;  %v1491_v34 = vand.u32 2147483648, %v4666_v13  ;;  %vm1600_vm12 = vmor %vm1598_vm11, %vm1599_vm10  ;;  %vm1485_vm14 = vweird.f32 %v4666_v13 }
 0x19e   :  { %v667_v53 = vadd.f32 %v3670_v49, %v666_v20  ;;  %v1468_v48 = vmul.f32 %v3674_v8, %v1467_v51  ;;  %v4694_v0 = vadd.f32 1.0, %v3678_v57  ;;  %vm1490_vm0 = vcmp.eq.f32.partialorder %v1489_v28, 8.507059e+37 }
 0x19f   :  { %v1595_v39 = vmul.f32 0.5, %v1594_v56  ;;  %v1492_v52 = vor.u32 1.1754944e-38, %v1491_v34 }
 0x1a0   :  { %v671_v47 = vsel %vm670_vm4, %v3670_v49, %v667_v53  ;;  %v1469_v9 = vadd.f32 %v3674_v8, %v1468_v48  ;;  %3681 = vrcp.f32 %v4694_v0  ;;  %vm1500_vm2 = vweird.f32 %v4694_v0 }
 0x1a1   :  { %v676_v60 = vsel %vm673_vm5, %v675_v1, %v671_v47  ;;  %v4689_v62 = vpop.f32.mrf.mxu0  ;;  %v3680_v23 = vpop.eup %3679  ;;  %v1596_v21 = vsub.f32 1.5, %v1595_v39 }
 0x1a2   :  { %v4692_v29 = vmul.f32 %v676_v60, %v4635_v63  ;;  %v1473_v50 = vsel %vm1472_vm9, %v3674_v8, %v1469_v9  ;;  %v1481_v45 = vmul.f32 %v3680_v23, %v4666_v13  ;;  %vm1486_vm13 = vweird.f32 %v3680_v23  ;;  %v1628_v9 = vpop.permute.xlu0 %1627  ;;  %v1633_v34 = vpop.permute.xlu2 %1632 }
 0x1a3   :  { %v1478_v18 = vsel %vm1475_vm8, %v1477_v30, %v1473_v50  ;;  %v1597_v43 = vmul.f32 %v3676_v25, %v1596_v21  ;;  %vm1487_vm15 = vmor %vm1485_vm14, %vm1486_vm13 }
 0x1a4   :  { %v752_v49 = vsel %vm746_vm3, %v4692_v29, 0.0  ;;  %v4701_v63 = vmul.f32 %v1478_v18, %v4613_v59  ;;  %v1482_v22 = vsub.f32 1.0, %v1481_v45  ;;  %v1341_v59 = vadd.f32 %v4438_v24, %v4496_v16 }
 0x1a5   :  { %v753_v35 = vadd.f32 %v752_v49, %v751_v46  ;;  %v1601_v7 = vsel %vm1600_vm12, %v3676_v25, %v1597_v43  ;;  %v1344_v45 = vadd.f32 %v4438_v24, %v4501_v61 }
 0x1a6   :  { %v1532_v8 = vsel %vm746_vm3, %v4701_v63, 0.0  ;;  %v1483_v27 = vmul.f32 %v3680_v23, %v1482_v22  ;;  %v1612_v55 = vmul.f32 %v1601_v7, %v4516_v54  ;;  %v4716_v20 = vmul.f32 %v1601_v7, %v4527_v26  ;;  %v3682_v51 = vpop.eup %3681 }
 0x1a7   :  { %v754_v12 = vrot.slane %v753_v35, 4  ;;  %v1533_v5 = vadd.f32 %v1532_v8, %v1531_v4  ;;  %v1613_v44 = vmul.f32 %v1601_v7, %v4522_v31  ;;  %v4720_v16 = vmul.f32 %v1601_v7, %v4524_v32 }
 0x1a8   :  { %v1484_v11 = vadd.f32 %v3680_v23, %v1483_v27  ;;  %v1660_v17 = vmul.f32 %v1623_v37, %v1612_v55  ;;  %v1496_v26 = vmul.f32 %v3682_v51, %v4694_v0  ;;  %v1504_v31 = vand.u32 2147483647, %v4694_v0 }
 0x1a9   :  { %v755_v38 = vadd.f32 %v754_v12, %v753_v35  ;;  %v574_v58 = vpop.f32.mrf.mxu0  ;;  %v1506_v32 = vand.u32 2147483648, %v4694_v0  ;;  %vm1501_vm1 = vweird.f32 %v3682_v51  ;;  %v1661_v46 = vmul.f32 %v1628_v9, %v1613_v44  ;;  %v1676_v35 = vpop.permute.xlu1 %1675 }
 0x1aa   :  { %v575_v25 = vadd.f32 %v4493_v14, %v574_v58  ;;  %v580_v13 = vpop.f32.mrf.mxu3  ;;  %v1488_v54 = vsel %vm1487_vm15, %v3680_v23, %v1484_v11  ;;  %v1708_v48 = vadd.f32 %v1671_v41, %v1660_v17  ;;  %v1497_v47 = vsub.f32 1.0, %v1496_v26  ;;  %vm1502_vm4 = vmor %vm1500_vm2, %vm1501_vm1 }
 0x1ab   :  { %v756_v53 = vrot.slane %v755_v38, 2  ;;  %v1493_v33 = vsel %vm1490_vm0, %v1492_v52, %v1488_v54  ;;  %v581_v23 = vadd.f32 %v4493_v14, %v580_v13  ;;  %v1507_v12 = vor.u32 1.1754944e-38, %v1506_v32  ;;  %v1638_v32 = vpop.permute.xlu2 %1637 }
 0x1ac   :  { %v4724_v2 = vmul.f32 %v1493_v33, %v1341_v59  ;;  %v590_v56 = vsub.f32 0.0, %v575_v25  ;;  %3502 = vmatmul.msk.f32.vlgmr.msrb.gmra.mxu3 %vm746_vm3, %v1708_v48  ;;  %v1498_v39 = vmul.f32 %v3682_v51, %v1497_v47  ;;  %vm1505_vm5 = vcmp.eq.f32.partialorder %v1504_v31, 8.507059e+37 }
 0x1ad   :  { %v757_v1 = vadd.f32 %v756_v53, %v755_v38  ;;  %v592_v18 = vsub.f32 0.0, %v581_v23  ;;  %v1709_v27 = vadd.f32 %v1676_v35, %v1661_v46  ;;  %v1663_v9 = vmul.f32 %v1638_v32, %v4720_v16 }
 0x1ae   :  { %v1534_v60 = vsel %vm746_vm3, %v4724_v2, 0.0  ;;  %v602_v50 = vmul.f32 1.442695, %v590_v56  ;;  %v1499_v22 = vadd.f32 %v3682_v51, %v1498_v39 }
 0x1af   :  { %v758_v57 = vrot.slane %v757_v1, 1  ;;  %v1535_v30 = vadd.f32 %v1534_v60, %v1533_v5  ;;  %v606_v8 = vmul.f32 1.442695, %v592_v18  ;;  %v1686_v18 = vpop.permute.xlu0 %1685 }
 0x1b0   :  { %3683 = vpow2.f32 %v602_v50  ;;  %v1503_v61 = vsel %vm1502_vm4, %v3682_v51, %v1499_v22  ;;  %v4798_v22 = vadd.f32 %v4493_v14, %v4655_v36 }
 0x1b1   :  { %v759_v49 = vadd.f32 %v758_v57, %v757_v1  ;;  %v577_v21 = vpop.f32.mrf.mxu0  ;;  %v1508_v0 = vsel %vm1505_vm5, %v1507_v12, %v1503_v61  ;;  %3685 = vpow2.f32 %v606_v8  ;;  %v1681_v1 = vpop.permute.xlu1 %1680 }
 0x1b2   :  { %v578_v4 = vadd.f32 %v4493_v14, %v577_v21  ;;  %v583_v43 = vpop.f32.mrf.mxu3  ;;  %v4753_v38 = vmul.f32 %v1508_v0, %v1344_v45  ;;  %v4786_v45 = vadd.f32 %v4493_v14, %v4569_v40 }
 0x1b3   :  { %v780_v28 = vmul.f32 %v4507_v6, %v759_v49  ;;  %v584_v24 = vadd.f32 %v4493_v14, %v583_v43  ;;  %v4790_v49 = vadd.f32 %v4493_v14, %v4623_v10 }
 0x1b4   :  { %v591_v59 = vsub.f32 0.0, %v578_v4  ;;  %3503 = vmatmul.msk.f32.gmra.mxu3 %vm746_vm3, %v1709_v27  ;;  %v1536_v51 = vsel %vm746_vm3, %v4753_v38, 0.0  ;;  %v1711_v4 = vadd.f32 %v1686_v18, %v1663_v9 }
 0x1b5   :  { %v4745_v5 = vsub.f32 %v4692_v29, %v780_v28  ;;  %v4748_v7 = vsub.f32 %v4582_v3, %v780_v28  ;;  %v4751_v37 = vsub.f32 %v4642_v15, %v780_v28  ;;  %v4756_v55 = vsub.f32 %v4674_v42, %v780_v28 }
 0x1b6   :  { %v604_v41 = vmul.f32 1.442695, %v591_v59  ;;  %v593_v3 = vsub.f32 0.0, %v584_v24  ;;  %v3684_v58 = vpop.eup %3683  ;;  %v1662_v15 = vmul.f32 %v1633_v34, %v4716_v20  ;;  %v1537_v52 = vadd.f32 %v1536_v51, %v1535_v30 }
 0x1b7   :  { %v790_v11 = vmul.f32 %v4748_v7, %v4748_v7  ;;  %v791_v29 = vmul.f32 %v4751_v37, %v4751_v37  ;;  %v792_v42 = vmul.f32 %v4756_v55, %v4756_v55  ;;  %v793_v44 = vmul.f32 %v4745_v5, %v4745_v5  ;;  %v3686_v26 = vpop.eup %3685 }
 0x1b8   :  { %3687 = vpow2.f32 %v604_v41  ;;  %v4772_v17 = vadd.f32 1.0, %v3684_v58  ;;  %v608_v54 = vmul.f32 1.442695, %v593_v3  ;;  %v1538_v20 = vrot.slane %v1537_v52, 4 }
 0x1b9   :  { %v798_v25 = vsel %vm746_vm3, %v790_v11, 0.0  ;;  %v799_v13 = vsel %vm746_vm3, %v791_v29, 0.0  ;;  %v801_v33 = vsel %vm746_vm3, %v792_v42, 0.0  ;;  %v1710_v31 = vadd.f32 %v1681_v1, %v1662_v15  ;;  %v4850_v1 = vpop.permute.xlu1 %1642 }
 0x1ba   :  { %v800_v53 = vadd.f32 %v799_v13, %v798_v25  ;;  %3689 = vrcp.f32 %v4772_v17  ;;  %v1539_v47 = vadd.f32 %v1538_v20, %v1537_v52  ;;  %v803_v56 = vsel %vm746_vm3, %v793_v44, 0.0 }
 0x1bb   :  { %v4777_v57 = vadd.f32 1.0, %v3686_v26  ;;  %3691 = vpow2.f32 %v608_v54  ;;  %v687_v46 = vand.u32 2147483647, %v4772_v17  ;;  %v689_v50 = vand.u32 2147483648, %v4772_v17 }
 0x1bc   :  { %v802_v48 = vadd.f32 %v801_v33, %v800_v53  ;;  %v1540_v30 = vrot.slane %v1539_v47, 2  ;;  %3504 = vmatmul.msk.f32.gmra.mxu3 %vm746_vm3, %v1710_v31  ;;  %vm683_vm6 = vweird.f32 %v4772_v17 }
 0x1bd   :  { %3693 = vrcp.f32 %v4777_v57  ;;  %v717_v28 = vand.u32 2147483647, %v4777_v57  ;;  %v719_v10 = vand.u32 2147483648, %v4777_v57  ;;  %vm4806_vm7 = vcmp.eq.f32.partialorder %v687_v46, 8.507059e+37 }
 0x1be   :  { %v3688_v60 = vpop.eup %3687  ;;  %v804_v23 = vadd.f32 %v803_v56, %v802_v48  ;;  %v1541_v16 = vadd.f32 %v1540_v30, %v1539_v47  ;;  %v690_v36 = vor.u32 1.1754944e-38, %v689_v50  ;;  %vm713_vm8 = vweird.f32 %v4777_v57 }
 0x1bf   :  { %v4792_v21 = vadd.f32 1.0, %v3688_v60  ;;  %vm4815_vm10 = vcmp.eq.f32.partialorder %v717_v28, 8.507059e+37  ;;  %v720_v15 = vor.u32 1.1754944e-38, %v719_v10 }
 0x1c0   :  { %v805_v39 = vrot.slane %v804_v23, 4  ;;  %v4794_v35 = vpop.eup %3689  ;;  %v1542_v40 = vrot.slane %v1541_v16, 1 }
 0x1c1   :  { %v679_v34 = vmul.f32 %v4794_v35, %v4772_v17  ;;  %3695 = vrcp.f32 %v4792_v21  ;;  %v3692_v12 = vpop.eup %3691  ;;  %vm684_vm9 = vweird.f32 %v4794_v35  ;;  %v702_v51 = vand.u32 2147483647, %v4792_v21 }
 0x1c2   :  { %v806_v43 = vadd.f32 %v805_v39, %v804_v23  ;;  %v1543_v27 = vadd.f32 %v1542_v40, %v1541_v16  ;;  %v4811_v0 = vadd.f32 1.0, %v3692_v12  ;;  %vm4842_vm12 = vmor %vm683_vm6, %vm684_vm9  ;;  %v704_v31 = vand.u32 2147483648, %v4792_v21  ;;  %v1722_v23 = vld [vmem:[%s4589_s23 + $0x8] sm:$0xff] }
 0x1c3   :  { %v3694_v61 = vpop.eup %3693  ;;  %v680_v59 = vsub.f32 1.0, %v679_v34  ;;  %vm698_vm14 = vweird.f32 %v4792_v21  ;;  %vm4900_vm1 = vcmp.eq.f32.partialorder %v702_v51, 8.507059e+37 }
 0x1c4   :  { %v807_v8 = vrot.slane %v806_v43, 2  ;;  %v709_v11 = vmul.f32 %v3694_v61, %v4777_v57  ;;  %v1545_v3 = vmul.f32 %v1543_v27, %v4507_v6  ;;  %3505 = vmatmul.msk.f32.gmra.mxu3 %vm746_vm3, %v1711_v4  ;;  %vm714_vm11 = vweird.f32 %v3694_v61  ;;  %v1721_v4 = vld [vmem:[%s4589_s23] sm:$0xff] }
 0x1c5   :  { %v681_v58 = vmul.f32 %v4794_v35, %v680_v59  ;;  %3697 = vrcp.f32 %v4811_v0  ;;  %vm4861_vm13 = vmor %vm713_vm8, %vm714_vm11  ;;  %vm728_vm2 = vweird.f32 %v4811_v0  ;;  %v734_v29 = vand.u32 2147483648, %v4811_v0 }
 0x1c6   :  { %v808_v41 = vadd.f32 %v807_v8, %v806_v43  ;;  %v710_v52 = vsub.f32 1.0, %v709_v11  ;;  %v4827_v25 = vsub.f32 %v4753_v38, %v1545_v3  ;;  %v4830_v13 = vsub.f32 %v4687_v19, %v1545_v3  ;;  %v1723_v19 = vld [vmem:[%s4589_s23 + $0x10] sm:$0xff]  ;;  %s3457_s23 = sld [smem:[%s5697_s0 + %s3861_s20]]  }
 0x1c7   :  { %v4824_v44 = vpop.eup %3695  ;;  %v4833_v53 = vsub.f32 %v4701_v63, %v1545_v3  ;;  %v4836_v54 = vsub.f32 %v4724_v2, %v1545_v3  ;;  %v682_v38 = vadd.f32 %v4794_v35, %v681_v58  ;;  %1766 = vmatpush.msrb.mxu0 %v1723_v19  ;;  %3574 = vmatpush.msra.mxu2 %v1723_v19  ;;  %v705_v8 = vor.u32 1.1754944e-38, %v704_v31 }
 0x1c8   :  { %v809_v42 = vrot.slane %v808_v41, 1  ;;  %v711_v26 = vmul.f32 %v3694_v61, %v710_v52  ;;  %v694_v63 = vmul.f32 %v4824_v44, %v4792_v21  ;;  %v1558_v2 = vmul.f32 %v4830_v13, %v4830_v13  ;;  %v907_v52 = vpop.permute.xlu1 %906 }
 0x1c9   :  { %v1559_v17 = vmul.f32 %v4833_v53, %v4833_v53  ;;  %v1560_v48 = vmul.f32 %v4836_v54, %v4836_v54  ;;  %v686_v56 = vsel %vm4842_vm12, %v4794_v35, %v682_v38  ;;  %v1561_v57 = vmul.f32 %v4827_v25, %v4827_v25  ;;  %1767 = vmatpush.msrb.mxu0 %v1722_v23 }
 0x1ca   :  { %v810_v33 = vadd.f32 %v809_v42, %v808_v41  ;;  %v712_v60 = vadd.f32 %v3694_v61, %v711_v26  ;;  %v695_v9 = vsub.f32 1.0, %v694_v63  ;;  %v1575_v30 = vsel %vm746_vm3, %v1558_v2, 0.0  ;;  %3575 = vmatpush.msra.mxu2 %v1722_v23 }
 0x1cb   :  { %v1576_v39 = vsel %vm746_vm3, %v1559_v17, 0.0  ;;  %v3698_v46 = vpop.eup %3697  ;;  %v1578_v16 = vsel %vm746_vm3, %v1560_v48, 0.0  ;;  %v691_v43 = vsel %vm4806_vm7, %v690_v36, %v686_v56  ;;  %vm699_vm15 = vweird.f32 %v4824_v44  ;;  %1768 = vmatpush.msrb.mxu0 %v1721_v4  ;;  %v4905_v36 = vpop.permute.xlu2 %1690 }
 0x1cc   :  { %v824_v32 = vmul.f32 %v810_v33, %v4507_v6  ;;  %v1577_v50 = vadd.f32 %v1576_v39, %v1575_v30  ;;  %v716_v35 = vsel %vm4861_vm13, %v3694_v61, %v712_v60  ;;  %v696_v40 = vmul.f32 %v4824_v44, %v695_v9  ;;  %vm4896_vm0 = vmor %vm698_vm14, %vm699_vm15  ;;  %3576 = vmatpush.msra.mxu2 %v1721_v4  ;;  %v859_v61 = vpop.permute.xlu0 %858 }
 0x1cd   :  { %v721_v28 = vsel %vm4815_vm10, %v720_v15, %v716_v35  ;;  %v1580_v24 = vsel %vm746_vm3, %v1561_v57, 0.0  ;;  %v724_v59 = vmul.f32 %v3698_v46, %v4811_v0  ;;  %v4911_v41 = vmul.f32 %v691_v43, %v4786_v45 }
 0x1ce   :  { %v4882_v18 = vadd.f32 1e-05, %v824_v32  ;;  %v1579_v34 = vadd.f32 %v1578_v16, %v1577_v50  ;;  %v697_v27 = vadd.f32 %v4824_v44, %v696_v40  ;;  %v4914_v11 = vmul.f32 %v721_v28, %v4798_v22 }
 0x1cf   :  { %v725_v58 = vsub.f32 1.0, %v724_v59  ;;  %vm729_vm4 = vweird.f32 %v3698_v46  ;;  %v732_v15 = vand.u32 2147483647, %v4811_v0  ;;  %v572_v45 = vadd.f32 %v4493_v14, %v4689_v62 }
 0x1d0   :  { %3699 = vrsqrt.f32 %v4882_v18  ;;  %v1581_v21 = vadd.f32 %v1580_v24, %v1579_v34  ;;  %v701_v3 = vsel %vm4896_vm0, %v4824_v44, %v697_v27  ;;  %v760_v44 = vsel %vm746_vm3, %v4911_v41, 0.0  ;;  %vm730_vm5 = vmor %vm728_vm2, %vm729_vm4 }
 0x1d1   :  { %v706_v42 = vsel %vm4900_vm1, %v705_v8, %v701_v3  ;;  %v726_v20 = vmul.f32 %v3698_v46, %v725_v58  ;;  %v763_v19 = vsel %vm746_vm3, %v4914_v11, 0.0  ;;  %v735_v26 = vor.u32 1.1754944e-38, %v734_v29 }
 0x1d2   :  { %v1582_v51 = vrot.slane %v1581_v21, 4  ;;  %v743_v22 = vmul.f32 %v706_v42, %v4790_v49  ;;  %vm733_vm6 = vcmp.eq.f32.partialorder %v732_v15, 8.507059e+37  ;;  %vm834_vm8 = vweird.f32 %v4882_v18 }
 0x1d3   :  { %v727_v62 = vadd.f32 %v3698_v46, %v726_v20  ;;  %v4934_v60 = vpop.permute.xlu2 %1647  ;;  %vm2109_vm0 = vcmask 64512  }
 0x1d4   :  { %v1583_v38 = vadd.f32 %v1582_v51, %v1581_v21  ;;  %v761_v14 = vsel %vm746_vm3, %v743_v22, 0.0  ;;  %v4936_v9 = vpop.permute.xlu0 %1695 }
 0x1d5   :  { %v762_v2 = vadd.f32 %v761_v14, %v760_v44  ;;  %v731_v48 = vsel %vm730_vm5, %v3698_v46, %v727_v62  ;;  %v864_v46 = vpop.permute.xlu1 %863 }
 0x1d6   :  { %v3700_v33 = vpop.eup %3699  ;;  %v1584_v49 = vrot.slane %v1583_v38, 2  ;;  %v736_v32 = vsel %vm733_vm6, %v735_v26, %v731_v48 }
 0x1d7   :  { %v829_v63 = vmul.f32 %v3700_v33, %v4882_v18  ;;  %v764_v31 = vadd.f32 %v763_v19, %v762_v2  ;;  %v745_v0 = vmul.f32 %v736_v32, %v572_v45  ;;  %vm835_vm7 = vweird.f32 %v3700_v33 }
 0x1d8   :  { %v1585_v47 = vadd.f32 %v1584_v49, %v1583_v38  ;;  %vm836_vm9 = vmor %vm834_vm8, %vm835_vm7 }
 0x1d9   :  { %v830_v17 = vmul.f32 %v3700_v33, %v829_v63  ;;  %v765_v30 = vsel %vm746_vm3, %v745_v0, 0.0 }
 0x1da   :  { %v1586_v23 = vrot.slane %v1585_v47, 1  ;;  %v766_v50 = vadd.f32 %v765_v30, %v764_v31 }
 0x1db   :  { %v831_v56 = vmul.f32 0.5, %v830_v17  ;;  %v912_v12 = vpop.permute.xlu2 %911 }
 0x1dc   :  { %v1587_v39 = vadd.f32 %v1586_v23, %v1585_v47  ;;  %v767_v4 = vrot.slane %v766_v50, 4  ;;  %v4942_v8 = vpop.permute.xlu0 %1652 }
 0x1dd   :  { %v832_v57 = vsub.f32 1.5, %v831_v56  ;;  %v4949_v21 = vpop.permute.xlu1 %1700 }
 0x1de   :  { %v1589_v35 = vmul.f32 %v1587_v39, %v4507_v6  ;;  %v768_v34 = vadd.f32 %v767_v4, %v766_v50 }
 0x1df   :  { %v833_v16 = vmul.f32 %v3700_v33, %v832_v57 }
 0x1e0   :  { %v1591_v28 = vadd.f32 1e-05, %v1589_v35  ;;  %v769_v24 = vrot.slane %v768_v34, 2 }
 0x1e1   :  { %v837_v43 = vsel %vm836_vm9, %v3700_v33, %v833_v16 }
 0x1e2   :  { %v848_v40 = vmul.f32 %v837_v43, %v4748_v7  ;;  %3701 = vrsqrt.f32 %v1591_v28  ;;  %v849_v18 = vmul.f32 %v837_v43, %v4751_v37  ;;  %v770_v59 = vadd.f32 %v769_v24, %v768_v34 }
 0x1e3   :  { %v869_v37 = vpop.permute.xlu2 %868  ;;  %vm1608_vm11 = vweird.f32 %v1591_v28  ;;  %v851_v31 = vmul.f32 %v837_v43, %v4745_v5 }
 0x1e4   :  { %v896_v10 = vmul.f32 %v859_v61, %v848_v40  ;;  %v771_v29 = vrot.slane %v770_v59, 1  ;;  %v897_v7 = vmul.f32 %v864_v46, %v849_v18  ;;  %v850_v61 = vmul.f32 %v837_v43, %v4756_v55  ;;  %v917_v20 = vpop.permute.xlu0 %916 }
 0x1e5   :  { %v1658_v62 = vpop.permute.xlu1 %1657 }
 0x1e6   :  { %v4944_v27 = vadd.f32 %v907_v52, %v896_v10  ;;  %v772_v15 = vadd.f32 %v771_v29, %v770_v59  ;;  %v4953_v45 = vadd.f32 %v912_v12, %v897_v7  ;;  %v898_v19 = vmul.f32 %v869_v37, %v850_v61 }
 0x1e8   :  { %3494 = vmatmul.msk.f32.vlgmr.msrb.gmra.mxu0 %vm746_vm3, %v4944_v27  ;;  %v3702_v3 = vpop.eup %3701  ;;  %v781_v42 = vmul.f32 %v4507_v6, %v772_v15  ;;  %v4977_v47 = vadd.f32 %v917_v20, %v898_v19 }
 0x1e9   :  { %v1603_v58 = vmul.f32 %v3702_v3, %v1591_v28  ;;  %vm1609_vm10 = vweird.f32 %v3702_v3 }
 0x1ea   :  { %v4956_v33 = vsub.f32 %v4911_v41, %v781_v42  ;;  %v4958_v38 = vsub.f32 %v743_v22, %v781_v42  ;;  %v4960_v44 = vsub.f32 %v745_v0, %v781_v42  ;;  %v4963_v26 = vsub.f32 %v4914_v11, %v781_v42  ;;  %vm1610_vm12 = vmor %vm1608_vm11, %vm1609_vm10 }
 0x1eb   :  { %v1604_v51 = vmul.f32 %v3702_v3, %v1603_v58  ;;  %v1706_v24 = vpop.permute.xlu2 %1705 }
 0x1ec   :  { %v794_v63 = vmul.f32 %v4956_v33, %v4956_v33  ;;  %v795_v41 = vmul.f32 %v4958_v38, %v4958_v38  ;;  %v796_v22 = vmul.f32 %v4963_v26, %v4963_v26  ;;  %v797_v2 = vmul.f32 %v4960_v44, %v4960_v44  ;;  %v874_v16 = vpop.permute.xlu0 %873 }
 0x1ed   :  { %v1605_v52 = vmul.f32 0.5, %v1604_v51  ;;  %v899_v35 = vmul.f32 %v874_v16, %v851_v31 }
 0x1ee   :  { %v811_v11 = vsel %vm746_vm3, %v794_v63, 0.0  ;;  %v812_v49 = vsel %vm746_vm3, %v795_v41, 0.0  ;;  %v814_v32 = vsel %vm746_vm3, %v796_v22, 0.0  ;;  %v816_v50 = vsel %vm746_vm3, %v797_v2, 0.0 }
 0x1ef   :  { %v1606_v55 = vsub.f32 1.5, %v1605_v52  ;;  %v813_v17 = vadd.f32 %v812_v49, %v811_v11  ;;  %v1717_v49 = vld [vmem:[%s5007_s4 + $0x8] sm:$0xff] }
 0x1f0   :  { %3495 = vmatmul.msk.f32.gmra.mxu0 %vm746_vm3, %v4953_v45 }
 0x1f1   :  { %v1607_v14 = vmul.f32 %v3702_v3, %v1606_v55  ;;  %v815_v30 = vadd.f32 %v814_v32, %v813_v17 }
 0x1f3   :  { %v1611_v48 = vsel %vm1610_vm12, %v3702_v3, %v1607_v14  ;;  %v817_v5 = vadd.f32 %v816_v50, %v815_v30  ;;  %v879_v58 = vpop.permute.xlu2 %878  ;;  %v5037_v30 = vld [vmem:[%s4874_s1] ss:$0 sm:$0xff]  ;;  %s5685_s1 = sld [smem:[%s5697_s0 + %s3863_s28]]  }
 0x1f4   :  { %v1616_v56 = vmul.f32 %v1611_v48, %v4830_v13  ;;  %v1617_v0 = vmul.f32 %v1611_v48, %v4833_v53  ;;  %v1618_v23 = vmul.f32 %v1611_v48, %v4836_v54  ;;  %v1619_v57 = vmul.f32 %v1611_v48, %v4827_v25  ;;  %v922_v53 = vpop.permute.xlu1 %921  ;;  %v884_v61 = vpop.permute.xlu0 %883  ;;  %v3619_v48 = vld [vmem:[%s4731_s27] ss:$0 sm:$0xff]  ;;  %s3458_s27 = sld [smem:[%s5697_s0 + %s3862_s24]]  }
 0x1f5   :  { %v818_v13 = vrot.slane %v817_v5, 4  ;;  %v4992_v4 = vadd.f32 %v922_v53, %v899_v35 }
 0x1f6   :  { %v1664_v39 = vmul.f32 %v4850_v1, %v1616_v56  ;;  %v1665_v25 = vmul.f32 %v4934_v60, %v1617_v0  ;;  %v1666_v34 = vmul.f32 %v4942_v8, %v1618_v23  ;;  %v1667_v18 = vmul.f32 %v1658_v62, %v1619_v57  ;;  %v1716_v57 = vld [vmem:[%s5007_s4] sm:$0xff] }
 0x1f7   :  { %v819_v54 = vadd.f32 %v818_v13, %v817_v5 }
 0x1f8   :  { %3496 = vmatmul.msk.f32.gmra.mxu0 %vm746_vm3, %v4977_v47  ;;  %v1712_v46 = vadd.f32 %v4905_v36, %v1664_v39  ;;  %v1713_v28 = vadd.f32 %v4936_v9, %v1665_v25  ;;  %v1714_v60 = vadd.f32 %v4949_v21, %v1666_v34  ;;  %v1715_v29 = vadd.f32 %v1706_v24, %v1667_v18 }
 0x1f9   :  { %v820_v1 = vrot.slane %v819_v54, 2 }
 0x1fa   :  { %3506 = vmatmul.msk.f32.gmra.mxu3 %vm746_vm3, %v1712_v46 }
 0x1fb   :  { %v821_v43 = vadd.f32 %v820_v1, %v819_v54  ;;  %v932_v19 = vpop.permute.xlu2 %931 }
 0x1fc   :  { %v927_v52 = vpop.permute.xlu1 %926 }
 0x1fd   :  { %v822_v40 = vrot.slane %v821_v43, 1 }
 0x1ff   :  { %v823_v36 = vadd.f32 %v822_v40, %v821_v43 }
 0x200   :  { %3497 = vmatmul.msk.f32.gmra.mxu0 %vm746_vm3, %v4992_v4 }
 0x201   :  { %v825_v10 = vmul.f32 %v823_v36, %v4507_v6 }
 0x202   :  { %3507 = vmatmul.msk.f32.gmra.mxu3 %vm746_vm3, %v1713_v28 }
 0x203   :  { %v827_v12 = vadd.f32 1e-05, %v825_v10  ;;  %v894_v2 = vpop.permute.xlu2 %893 }
 0x204   :  { %v937_v14 = vpop.permute.xlu1 %936 }
 0x205   :  { %3703 = vrsqrt.f32 %v827_v12  ;;  %vm844_vm14 = vweird.f32 %v827_v12 }
 0x20a   :  { %3508 = vmatmul.msk.f32.gmra.mxu3 %vm746_vm3, %v1714_v60 }
 0x20b   :  { %v3704_v59 = vpop.eup %3703 }
 0x20c   :  { %v839_v3 = vmul.f32 %v3704_v59, %v827_v12  ;;  %vm845_vm13 = vweird.f32 %v3704_v59 }
 0x20d   :  { %vm846_vm15 = vmor %vm844_vm14, %vm845_vm13 }
 0x20e   :  { %v840_v9 = vmul.f32 %v3704_v59, %v839_v3 }
 0x210   :  { %v841_v7 = vmul.f32 0.5, %v840_v9 }
 0x212   :  { %3509 = vmatmul.msk.f32.gmra.mxu3 %vm746_vm3, %v1715_v29  ;;  %v842_v15 = vsub.f32 1.5, %v841_v7 }
 0x214   :  { %v843_v8 = vmul.f32 %v3704_v59, %v842_v15 }
 0x216   :  { %v847_v21 = vsel %vm846_vm15, %v3704_v59, %v843_v8 }
 0x217   :  { %v852_v51 = vmul.f32 %v847_v21, %v4956_v33  ;;  %v853_v42 = vmul.f32 %v847_v21, %v4958_v38  ;;  %v854_v41 = vmul.f32 %v847_v21, %v4963_v26  ;;  %v1719_v33 = vld [vmem:[%s5007_s4 + $0x18] sm:$0xff]  ;;  %v889_v38 = vpop.permute.xlu0 %888  ;;  %v855_v11 = vmul.f32 %v847_v21, %v4960_v44  ;;  %v1718_v26 = vld [vmem:[%s5007_s4 + $0x10] sm:$0xff]  ;;  %s3856_s4 = smov 22  }
 0x218   :  { %1992 = vmatpush.msra.mxu3 %v1719_v33  ;;  %1911 = vmatpush.msrb.mxu2 %v1719_v33  ;;  %s3453_s6 = sld [smem:[%s5697_s0 + %s3856_s4]]  }
 0x219   :  { %v900_v37 = vmul.f32 %v879_v58, %v852_v51  ;;  %v901_v20 = vmul.f32 %v884_v61, %v853_v42  ;;  %v902_v22 = vmul.f32 %v889_v38, %v854_v41  ;;  %v903_v17 = vmul.f32 %v894_v2, %v855_v11 }
 0x21a   :  { %1993 = vmatpush.msra.mxu3 %v1718_v26  ;;  %1912 = vmatpush.msrb.mxu2 %v1718_v26 }
 0x21b   :  { %v5011_v55 = vadd.f32 %v927_v52, %v900_v37  ;;  %v5013_v63 = vadd.f32 %v932_v19, %v901_v20  ;;  %v5021_v62 = vadd.f32 %v937_v14, %v902_v22 }
 0x21c   :  { %1994 = vmatpush.msra.mxu3 %v1717_v49  ;;  %1913 = vmatpush.msrb.mxu2 %v1717_v49  ;;  %v1720_v49 = vld [vmem:[%s3448_s8] sm:$0xff]  ;;  %s3461_s8 = sld [smem:[%s5697_s0 + %s3865_s5]]  }
 0x21d   :  { %3498 = vmatmul.msk.f32.gmra.mxu0 %vm746_vm3, %v5011_v55  ;;  %3499 = vmatmul.msk.f32.vlgmr.msra.gmra.mxu2 %vm746_vm3, %v5013_v63 }
 0x21e   :  { %1914 = vmatpush.msrb.mxu2 %v1716_v57  ;;  %1995 = vmatpush.msra.mxu3 %v1716_v57 }
 0x21f   :  { %v942_v31 = vpop.permute.xlu0 %941 }
 0x220   :  { %v5029_v32 = vadd.f32 %v942_v31, %v903_v17  ;;  %2149 = vmatpush.msra.mxu2 %v1720_v49  ;;  %2254 = vmatpush.msrb.mxu3 %v1720_v49 }
 0x225   :  { %3500 = vmatmul.msk.f32.gmra.mxu2 %vm746_vm3, %v5021_v62 }
 0x22d   :  { %3501 = vmatmul.msk.f32.gmra.mxu2 %vm746_vm3, %v5029_v32 }
 0x22f   :  { %v1843_v56 = vpop.f32.mrf.mxu3 }
 0x230   :  { %v1844_v44 = vadd.f32 %v3619_v48, %v1843_v56 }
 0x232   :  { %2179 = vrot.lane.b32.xlu1 %v1844_v44, %s3848_s12 }
 0x237   :  { %v1846_v0 = vpop.f32.mrf.mxu3 }
 0x238   :  { %v1847_v23 = vadd.f32 %v3619_v48, %v1846_v0 }
 0x23a   :  { %2181 = vrot.lane.b32.xlu0 %v1847_v23, %s3848_s12 }
 0x23f   :  { %v1849_v5 = vpop.f32.mrf.mxu3 }
 0x240   :  { %v1850_v54 = vadd.f32 %v3619_v48, %v1849_v5 }
 0x247   :  { %v1852_v1 = vpop.f32.mrf.mxu3 }
 0x248   :  { %v1853_v40 = vadd.f32 %v3619_v48, %v1852_v1 }
 0x265   :  { %v1770_v39 = vpop.f32.mrf.mxu0 }
 0x266   :  { %v1771_v50 = vadd.f32 %v5037_v30, %v1770_v39 }
 0x268   :  { %v1867_v16 = vmul.f32 %v1844_v44, %v1771_v50 }
 0x26a   :  { %3510 = vmatmul.msk.f32.vlgmr.msrb.gmra.mxu2 %vm746_vm3, %v1867_v16 }
 0x26d   :  { %v1773_v46 = vpop.f32.mrf.mxu0 }
 0x26e   :  { %v1774_v35 = vadd.f32 %v5037_v30, %v1773_v46 }
 0x270   :  { %v1868_v13 = vmul.f32 %v1847_v23, %v1774_v35 }
 0x272   :  { %3511 = vmatmul.msk.f32.gmra.mxu2 %vm746_vm3, %v1868_v13 }
 0x275   :  { %v1776_v53 = vpop.f32.mrf.mxu0 }
 0x276   :  { %v1777_v25 = vadd.f32 %v5037_v30, %v1776_v53 }
 0x278   :  { %v1869_v43 = vmul.f32 %v1850_v54, %v1777_v25 }
 0x27a   :  { %3512 = vmatmul.msk.f32.gmra.mxu2 %vm746_vm3, %v1869_v43 }
 0x27d   :  { %v1779_v28 = vpop.f32.mrf.mxu0  ;;  %v1855_v34 = vpop.f32.mrf.mxu3 }
 0x27e   :  { %v1780_v36 = vadd.f32 %v5037_v30, %v1779_v28  ;;  %v1856_v10 = vadd.f32 %v3619_v48, %v1855_v34 }
 0x280   :  { %v1870_v12 = vmul.f32 %v1853_v40, %v1780_v36  ;;  %v1948_v60 = vmul.f32 %v1856_v10, %v1771_v50  ;;  %2284 = vrot.lane.b32.xlu2 %v1856_v10, %s3848_s12 }
 0x282   :  { %3513 = vmatmul.msk.f32.gmra.mxu2 %vm746_vm3, %v1870_v12  ;;  %3518 = vmatmul.msk.f32.vlgmr.msra.gmra.mxu3 %vm746_vm3, %v1948_v60 }
 0x285   :  { %v1858_v24 = vpop.f32.mrf.mxu3 }
 0x286   :  { %v1859_v18 = vadd.f32 %v3619_v48, %v1858_v24 }
 0x288   :  { %2183 = vrot.lane.b32.xlu2 %v1850_v54, %s3848_s12  ;;  %2286 = vrot.lane.b32.xlu1 %v1859_v18, %s3848_s12  ;;  %v1949_v59 = vmul.f32 %v1859_v18, %v1774_v35 }
 0x28a   :  { %3519 = vmatmul.msk.f32.gmra.mxu3 %vm746_vm3, %v1949_v59 }
 0x28d   :  { %v1861_v29 = vpop.f32.mrf.mxu3 }
 0x28e   :  { %v1862_v3 = vadd.f32 %v3619_v48, %v1861_v29 }
 0x290   :  { %2288 = vrot.lane.b32.xlu0 %v1862_v3, %s3848_s12  ;;  %2185 = vrot.lane.b32.xlu1 %v1853_v40, %s3848_s12  ;;  %v1950_v9 = vmul.f32 %v1862_v3, %v1777_v25 }
 0x292   :  { %3520 = vmatmul.msk.f32.gmra.mxu3 %vm746_vm3, %v1950_v9 }
 0x295   :  { %v1864_v7 = vpop.f32.mrf.mxu3 }
 0x296   :  { %v1865_v58 = vadd.f32 %v3619_v48, %v1864_v7 }
 0x298   :  { %2290 = vrot.lane.b32.xlu2 %v1865_v58, %s3848_s12  ;;  %v1951_v15 = vmul.f32 %v1865_v58, %v1780_v36  ;;  %s3460_s12 = sld [smem:[%s5697_s0 + %s3864_s2]]  }
 0x29a   :  { %3521 = vmatmul.msk.f32.gmra.mxu3 %vm746_vm3, %v1951_v15  ;;  %v1782_v8 = vpop.f32.mrf.mxu0 }
 0x29b   :  { %v1783_v61 = vadd.f32 %v5037_v30, %v1782_v8 }
 0x29d   :  { %v1871_v21 = vmul.f32 %v1844_v44, %v1783_v61  ;;  %v1952_v51 = vmul.f32 %v1856_v10, %v1783_v61 }
 0x29f   :  { %3514 = vmatmul.msk.f32.gmra.mxu2 %vm746_vm3, %v1871_v21 }
 0x2a0   :  { %v1785_v42 = vpop.f32.mrf.mxu2 }
 0x2a1   :  { %v1786_v52 = vadd.f32 %v5037_v30, %v1785_v42 }
 0x2a2   :  { %3522 = vmatmul.msk.f32.gmra.mxu3 %vm746_vm3, %v1952_v51 }
 0x2a3   :  { %v1872_v37 = vmul.f32 %v1847_v23, %v1786_v52  ;;  %v1953_v20 = vmul.f32 %v1859_v18, %v1786_v52 }
 0x2a7   :  { %3515 = vmatmul.msk.f32.gmra.mxu2 %vm746_vm3, %v1872_v37 }
 0x2a8   :  { %v1788_v19 = vpop.f32.mrf.mxu2 }
 0x2a9   :  { %v1789_v41 = vadd.f32 %v5037_v30, %v1788_v19 }
 0x2aa   :  { %3523 = vmatmul.msk.f32.gmra.mxu3 %vm746_vm3, %v1953_v20 }
 0x2ab   :  { %v1873_v33 = vmul.f32 %v1850_v54, %v1789_v41  ;;  %v1954_v38 = vmul.f32 %v1862_v3, %v1789_v41 }
 0x2af   :  { %3516 = vmatmul.msk.f32.gmra.mxu2 %vm746_vm3, %v1873_v33 }
 0x2b0   :  { %v1791_v22 = vpop.f32.mrf.mxu2 }
 0x2b1   :  { %v1792_v14 = vadd.f32 %v5037_v30, %v1791_v22 }
 0x2b2   :  { %3524 = vmatmul.msk.f32.gmra.mxu3 %vm746_vm3, %v1954_v38 }
 0x2b3   :  { %v1874_v11 = vmul.f32 %v1853_v40, %v1792_v14  ;;  %v1955_v26 = vmul.f32 %v1865_v58, %v1792_v14 }
 0x2b7   :  { %3517 = vmatmul.msk.f32.gmra.mxu2 %vm746_vm3, %v1874_v11 }
 0x2ba   :  { %3525 = vmatmul.msk.f32.gmra.mxu3 %vm746_vm3, %v1955_v26 }
 0x2ed   :  { %v1916_v2 = vpop.f32.mrf.mxu2 }
 0x2ee   :  { %v1940_v48 = vmul.f32 0.5, %v1916_v2 }
 0x2f5   :  { %v1919_v56 = vpop.f32.mrf.mxu2 }
 0x2f6   :  { %v1941_v50 = vmul.f32 0.5, %v1919_v56 }
 0x2fd   :  { %v1922_v46 = vpop.f32.mrf.mxu2 }
 0x2fe   :  { %v1942_v28 = vmul.f32 0.5, %v1922_v46 }
 0x305   :  { %v1997_v17 = vpop.f32.mrf.mxu3  ;;  %v1925_v60 = vpop.f32.mrf.mxu2 }
 0x306   :  { %v2021_v31 = vmul.f32 0.5, %v1997_v17  ;;  %v1943_v7 = vmul.f32 0.5, %v1925_v60 }
 0x308   :  { %v2029_v44 = vmax.f32 %v1940_v48, %v2021_v31 }
 0x30a   :  { %v2037_v0 = vsub.f32 %v1940_v48, %v2029_v44  ;;  %v2061_v23 = vsub.f32 %v2021_v31, %v2029_v44 }
 0x30c   :  { %v2045_v57 = vmul.f32 1.442695, %v2037_v0  ;;  %v2069_v39 = vmul.f32 1.442695, %v2061_v23 }
 0x30d   :  { %v2000_v30 = vpop.f32.mrf.mxu3 }
 0x30e   :  { %3705 = vpow2.f32 %v2045_v57  ;;  %v2022_v16 = vmul.f32 0.5, %v2000_v30 }
 0x30f   :  { %3707 = vpow2.f32 %v2069_v39 }
 0x310   :  { %v2030_v5 = vmax.f32 %v1941_v50, %v2022_v16 }
 0x312   :  { %v2038_v35 = vsub.f32 %v1941_v50, %v2030_v5  ;;  %v2062_v13 = vsub.f32 %v2022_v16, %v2030_v5 }
 0x314   :  { %v3706_v53 = vpop.eup %3705  ;;  %v2047_v54 = vmul.f32 1.442695, %v2038_v35  ;;  %v2071_v25 = vmul.f32 1.442695, %v2062_v13 }
 0x315   :  { %v3708_v1 = vpop.eup %3707  ;;  %v2003_v43 = vpop.f32.mrf.mxu3 }
 0x316   :  { %v2085_v40 = vadd.f32 %v3708_v1, %v3706_v53  ;;  %3709 = vpow2.f32 %v2047_v54  ;;  %v2023_v36 = vmul.f32 0.5, %v2003_v43 }
 0x317   :  { %3711 = vpow2.f32 %v2071_v25 }
 0x318   :  { %3713 = vrcp.f32 %v2085_v40  ;;  %v2031_v34 = vmax.f32 %v1942_v28, %v2023_v36 }
 0x31a   :  { %v2039_v10 = vsub.f32 %v1942_v28, %v2031_v34  ;;  %v2063_v12 = vsub.f32 %v2023_v36, %v2031_v34 }
 0x31c   :  { %v3710_v24 = vpop.eup %3709  ;;  %v2049_v18 = vmul.f32 1.442695, %v2039_v10  ;;  %v2073_v59 = vmul.f32 1.442695, %v2063_v12 }
 0x31d   :  { %v3712_v29 = vpop.eup %3711  ;;  %v2006_v3 = vpop.f32.mrf.mxu3 }
 0x31e   :  { %v3714_v9 = vpop.eup %3713  ;;  %v2086_v58 = vadd.f32 %v3712_v29, %v3710_v24  ;;  %3715 = vpow2.f32 %v2049_v18  ;;  %v2024_v15 = vmul.f32 0.5, %v2006_v3 }
 0x31f   :  { %v2207_v8 = vmul.f32 %v3714_v9, %v3708_v1  ;;  %3717 = vpow2.f32 %v2073_v59  ;;  %v2101_v61 = vmul.f32 %v3714_v9, %v3706_v53  ;;  %v2315_v59 = vld [vmem:[%s5081_s13 + $0x18] sm:$0xff] }
 0x320   :  { %v2032_v21 = vmax.f32 %v1943_v7, %v2024_v15  ;;  %3719 = vrcp.f32 %v2086_v58  ;;  %2356 = vmatpush.msra.mxu0 %v2315_v59 }
 0x321   :  { %3526 = vmatmul.msk.f32.vlgmr.msra.gmra.mxu2 %vm2109_vm0, %v2101_v61  ;;  %3534 = vmatmul.msk.f32.vlgmr.msrb.gmra.mxu3 %vm2109_vm0, %v2207_v8 }
 0x322   :  { %v2040_v51 = vsub.f32 %v1943_v7, %v2032_v21  ;;  %v2064_v42 = vsub.f32 %v2024_v15, %v2032_v21  ;;  %v1928_v38 = vpop.f32.mrf.mxu2  ;;  %v2313_v7 = vld [vmem:[%s5081_s13 + $0x8] sm:$0xff] }
 0x323   :  { %v1944_v14 = vmul.f32 0.5, %v1928_v38 }
 0x324   :  { %v3716_v52 = vpop.eup %3715  ;;  %v2051_v37 = vmul.f32 1.442695, %v2040_v51  ;;  %v2075_v20 = vmul.f32 1.442695, %v2064_v42  ;;  %v2312_v42 = vld [vmem:[%s5081_s13] sm:$0xff] }
 0x325   :  { %v3718_v19 = vpop.eup %3717  ;;  %v2009_v22 = vpop.f32.mrf.mxu3 }
 0x326   :  { %v3720_v41 = vpop.eup %3719  ;;  %v2087_v33 = vadd.f32 %v3718_v19, %v3716_v52  ;;  %3721 = vpow2.f32 %v2051_v37  ;;  %v2025_v11 = vmul.f32 0.5, %v2009_v22 }
 0x327   :  { %3723 = vpow2.f32 %v2075_v20  ;;  %v2102_v26 = vmul.f32 %v3720_v41, %v3710_v24  ;;  %v2208_v49 = vmul.f32 %v3720_v41, %v3712_v29  ;;  %v2314_v29 = vld [vmem:[%s5081_s13 + $0x10] sm:$0xff] }
 0x328   :  { %3725 = vrcp.f32 %v2087_v33  ;;  %v2033_v2 = vmax.f32 %v1944_v14, %v2025_v11  ;;  %2357 = vmatpush.msra.mxu0 %v2314_v29 }
 0x329   :  { %3527 = vmatmul.msk.f32.gmra.mxu2 %vm2109_vm0, %v2102_v26  ;;  %3535 = vmatmul.msk.f32.gmra.mxu3 %vm2109_vm0, %v2208_v49 }
 0x32a   :  { %v2041_v17 = vsub.f32 %v1944_v14, %v2033_v2  ;;  %v2065_v48 = vsub.f32 %v2025_v11, %v2033_v2  ;;  %v1931_v39 = vpop.f32.mrf.mxu2  ;;  %2358 = vmatpush.msra.mxu0 %v2313_v7 }
 0x32b   :  { %v1945_v50 = vmul.f32 0.5, %v1931_v39 }
 0x32c   :  { %v3722_v31 = vpop.eup %3721  ;;  %v2053_v44 = vmul.f32 1.442695, %v2041_v17  ;;  %v2077_v0 = vmul.f32 1.442695, %v2065_v48  ;;  %2359 = vmatpush.msra.mxu0 %v2312_v42 }
 0x32d   :  { %v3724_v56 = vpop.eup %3723  ;;  %v2012_v30 = vpop.f32.mrf.mxu3 }
 0x32e   :  { %v3726_v23 = vpop.eup %3725  ;;  %v2088_v57 = vadd.f32 %v3724_v56, %v3722_v31  ;;  %3727 = vpow2.f32 %v2053_v44  ;;  %v2026_v16 = vmul.f32 0.5, %v2012_v30 }
 0x32f   :  { %v2103_v5 = vmul.f32 %v3726_v23, %v3716_v52  ;;  %3729 = vpow2.f32 %v2077_v0  ;;  %v2209_v46 = vmul.f32 %v3726_v23, %v3718_v19 }
 0x330   :  { %v2034_v35 = vmax.f32 %v1945_v50, %v2026_v16  ;;  %3731 = vrcp.f32 %v2088_v57 }
 0x331   :  { %3528 = vmatmul.msk.f32.gmra.mxu2 %vm2109_vm0, %v2103_v5  ;;  %3536 = vmatmul.msk.f32.gmra.mxu3 %vm2109_vm0, %v2209_v46  ;;  %v2180_v46 = vpop.permute.xlu1 %2179 }
 0x332   :  { %v2042_v13 = vsub.f32 %v1945_v50, %v2034_v35  ;;  %v2066_v53 = vsub.f32 %v2026_v16, %v2034_v35  ;;  %v1934_v28 = vpop.f32.mrf.mxu2  ;;  %v2285_v35 = vpop.permute.xlu2 %2284 }
 0x333   :  { %v1946_v10 = vmul.f32 0.5, %v1934_v28 }
 0x334   :  { %v3728_v54 = vpop.eup %3727  ;;  %v2055_v25 = vmul.f32 1.442695, %v2042_v13  ;;  %v2079_v1 = vmul.f32 1.442695, %v2066_v53 }
 0x335   :  { %v3730_v43 = vpop.eup %3729  ;;  %v2015_v40 = vpop.f32.mrf.mxu3 }
 0x336   :  { %v3732_v36 = vpop.eup %3731  ;;  %v2089_v34 = vadd.f32 %v3730_v43, %v3728_v54  ;;  %3733 = vpow2.f32 %v2055_v25  ;;  %v2027_v12 = vmul.f32 0.5, %v2015_v40 }
 0x337   :  { %3735 = vpow2.f32 %v2079_v1  ;;  %v2104_v60 = vmul.f32 %v3732_v36, %v3722_v31  ;;  %v2210_v24 = vmul.f32 %v3732_v36, %v3724_v56 }
 0x338   :  { %v2035_v18 = vmax.f32 %v1946_v10, %v2027_v12  ;;  %3737 = vrcp.f32 %v2089_v34 }
 0x339   :  { %3529 = vmatmul.msk.f32.gmra.mxu2 %vm2109_vm0, %v2104_v60  ;;  %3537 = vmatmul.msk.f32.gmra.mxu3 %vm2109_vm0, %v2210_v24  ;;  %v2287_v40 = vpop.permute.xlu1 %2286 }
 0x33a   :  { %v2043_v3 = vsub.f32 %v1946_v10, %v2035_v18  ;;  %v2067_v9 = vsub.f32 %v2027_v12, %v2035_v18  ;;  %v1937_v21 = vpop.f32.mrf.mxu2  ;;  %v2184_v60 = vpop.permute.xlu2 %2183 }
 0x33b   :  { %v1947_v20 = vmul.f32 0.5, %v1937_v21 }
 0x33c   :  { %v3734_v58 = vpop.eup %3733  ;;  %v2057_v15 = vmul.f32 1.442695, %v2043_v3  ;;  %v2081_v8 = vmul.f32 1.442695, %v2067_v9 }
 0x33d   :  { %v3736_v61 = vpop.eup %3735  ;;  %v2018_v51 = vpop.f32.mrf.mxu3 }
 0x33e   :  { %v3738_v52 = vpop.eup %3737  ;;  %v2090_v37 = vadd.f32 %v3736_v61, %v3734_v58  ;;  %3739 = vpow2.f32 %v2057_v15  ;;  %v2028_v19 = vmul.f32 0.5, %v2018_v51 }
 0x33f   :  { %3741 = vpow2.f32 %v2081_v8  ;;  %v2105_v41 = vmul.f32 %v3738_v52, %v3728_v54  ;;  %v2211_v33 = vmul.f32 %v3738_v52, %v3730_v43  ;;  %v2182_v43 = vpop.permute.xlu0 %2181 }
 0x340   :  { %v2036_v38 = vmax.f32 %v1947_v20, %v2028_v19  ;;  %3743 = vrcp.f32 %v2090_v37 }
 0x341   :  { %3530 = vmatmul.msk.f32.gmra.mxu2 %vm2109_vm0, %v2105_v41  ;;  %3538 = vmatmul.msk.f32.gmra.mxu3 %vm2109_vm0, %v2211_v33 }
 0x342   :  { %v2044_v22 = vsub.f32 %v1947_v20, %v2036_v38  ;;  %v2068_v14 = vsub.f32 %v2028_v19, %v2036_v38  ;;  %v2291_v7 = vpop.permute.xlu2 %2290 }
 0x344   :  { %v3740_v11 = vpop.eup %3739  ;;  %v2059_v26 = vmul.f32 1.442695, %v2044_v22  ;;  %v2083_v49 = vmul.f32 1.442695, %v2068_v14 }
 0x345   :  { %v3742_v2 = vpop.eup %3741 }
 0x346   :  { %v3744_v17 = vpop.eup %3743  ;;  %v2091_v48 = vadd.f32 %v3742_v2, %v3740_v11  ;;  %3745 = vpow2.f32 %v2059_v26 }
 0x347   :  { %3747 = vpow2.f32 %v2083_v49  ;;  %v2106_v31 = vmul.f32 %v3744_v17, %v3734_v58  ;;  %v2212_v56 = vmul.f32 %v3744_v17, %v3736_v61  ;;  %v2289_v18 = vpop.permute.xlu0 %2288  ;;  %v2186_v58 = vpop.permute.xlu1 %2185 }
 0x348   :  { %3749 = vrcp.f32 %v2091_v48 }
 0x349   :  { %3531 = vmatmul.msk.f32.gmra.mxu2 %vm2109_vm0, %v2106_v31  ;;  %3539 = vmatmul.msk.f32.gmra.mxu3 %vm2109_vm0, %v2212_v56 }
 0x34c   :  { %v3746_v44 = vpop.eup %3745 }
 0x34d   :  { %v3748_v0 = vpop.eup %3747 }
 0x34e   :  { %v3750_v23 = vpop.eup %3749  ;;  %v2092_v57 = vadd.f32 %v3748_v0, %v3746_v44 }
 0x34f   :  { %v2107_v39 = vmul.f32 %v3750_v23, %v3740_v11  ;;  %v2213_v30 = vmul.f32 %v3750_v23, %v3742_v2  ;;  %v3621_v23 = vld [vmem:[%s5100_s17] ss:$0 sm:$0xff] }
 0x350   :  { %3751 = vrcp.f32 %v2092_v57 }
 0x351   :  { %3532 = vmatmul.msk.f32.gmra.mxu2 %vm2109_vm0, %v2107_v39  ;;  %3540 = vmatmul.msk.f32.gmra.mxu3 %vm2109_vm0, %v2213_v30 }
 0x356   :  { %v3752_v50 = vpop.eup %3751 }
 0x357   :  { %v2108_v16 = vmul.f32 %v3752_v50, %v3746_v44  ;;  %v2214_v5 = vmul.f32 %v3752_v50, %v3748_v0 }
 0x359   :  { %3533 = vmatmul.msk.f32.gmra.mxu2 %vm2109_vm0, %v2108_v16  ;;  %3541 = vmatmul.msk.f32.gmra.mxu3 %vm2109_vm0, %v2214_v5 }
 0x3a4   :  { %v2151_v13 = vpop.f32.mrf.mxu2  ;;  %v2256_v53 = vpop.f32.mrf.mxu3 }
 0x3a5   :  { %v2191_v54 = vmul.f32 %v2180_v46, %v2151_v13  ;;  %v2296_v25 = vmul.f32 %v2285_v35, %v2256_v53 }
 0x3a7   :  { %v2304_v1 = vadd.f32 %v2296_v25, %v2191_v54 }
 0x3a9   :  { %3542 = vmatmul.msk.f32.vlgmr.msra.gmra.mxu0 %vm746_vm3, %v2304_v1 }
 0x3ac   :  { %v2154_v28 = vpop.f32.mrf.mxu2  ;;  %v2259_v34 = vpop.f32.mrf.mxu3 }
 0x3ad   :  { %v2192_v36 = vmul.f32 %v2182_v43, %v2154_v28  ;;  %v2297_v10 = vmul.f32 %v2287_v40, %v2259_v34 }
 0x3af   :  { %v2305_v12 = vadd.f32 %v2297_v10, %v2192_v36 }
 0x3b1   :  { %3543 = vmatmul.msk.f32.gmra.mxu0 %vm746_vm3, %v2305_v12 }
 0x3b4   :  { %v2157_v24 = vpop.f32.mrf.mxu2  ;;  %v2262_v29 = vpop.f32.mrf.mxu3 }
 0x3b5   :  { %v2193_v59 = vmul.f32 %v2184_v60, %v2157_v24  ;;  %v2298_v3 = vmul.f32 %v2289_v18, %v2262_v29 }
 0x3b7   :  { %v2306_v9 = vadd.f32 %v2298_v3, %v2193_v59 }
 0x3b9   :  { %3544 = vmatmul.msk.f32.gmra.mxu0 %vm746_vm3, %v2306_v9 }
 0x3bc   :  { %v2160_v15 = vpop.f32.mrf.mxu2  ;;  %v2265_v8 = vpop.f32.mrf.mxu3 }
 0x3bd   :  { %v2194_v61 = vmul.f32 %v2186_v58, %v2160_v15  ;;  %v2299_v21 = vmul.f32 %v2291_v7, %v2265_v8 }
 0x3bf   :  { %v2307_v51 = vadd.f32 %v2299_v21, %v2194_v61 }
 0x3c1   :  { %3545 = vmatmul.msk.f32.gmra.mxu0 %vm746_vm3, %v2307_v51 }
 0x3c4   :  { %v2163_v42 = vpop.f32.mrf.mxu2  ;;  %v2268_v52 = vpop.f32.mrf.mxu3 }
 0x3c5   :  { %v2195_v37 = vmul.f32 %v2180_v46, %v2163_v42  ;;  %v2300_v20 = vmul.f32 %v2285_v35, %v2268_v52 }
 0x3c7   :  { %v2308_v19 = vadd.f32 %v2300_v20, %v2195_v37 }
 0x3c9   :  { %3546 = vmatmul.msk.f32.gmra.mxu0 %vm746_vm3, %v2308_v19 }
 0x3cc   :  { %v2166_v41 = vpop.f32.mrf.mxu2  ;;  %v2271_v33 = vpop.f32.mrf.mxu3 }
 0x3cd   :  { %v2196_v38 = vmul.f32 %v2182_v43, %v2166_v41  ;;  %v2301_v22 = vmul.f32 %v2287_v40, %v2271_v33  ;;  %v2596_v33 = vld [vmem:[%s5147_s25 + $0x18] sm:$0xff] }
 0x3ce   :  { %2637 = vmatpush.msrb.mxu1 %v2596_v33 }
 0x3cf   :  { %v2309_v14 = vadd.f32 %v2301_v22, %v2196_v38 }
 0x3d1   :  { %3547 = vmatmul.msk.f32.gmra.mxu0 %vm746_vm3, %v2309_v14 }
 0x3d4   :  { %v2169_v11 = vpop.f32.mrf.mxu2  ;;  %v2274_v26 = vpop.f32.mrf.mxu3 }
 0x3d5   :  { %v2197_v49 = vmul.f32 %v2184_v60, %v2169_v11  ;;  %v2302_v2 = vmul.f32 %v2289_v18, %v2274_v26 }
 0x3d7   :  { %v2310_v17 = vadd.f32 %v2302_v2, %v2197_v49 }
 0x3d9   :  { %3548 = vmatmul.msk.f32.gmra.mxu0 %vm746_vm3, %v2310_v17 }
 0x3dc   :  { %v2172_v48 = vpop.f32.mrf.mxu2  ;;  %v2277_v31 = vpop.f32.mrf.mxu3 }
 0x3dd   :  { %v2198_v56 = vmul.f32 %v2186_v58, %v2172_v48  ;;  %v2303_v44 = vmul.f32 %v2291_v7, %v2277_v31 }
 0x3df   :  { %v2311_v0 = vadd.f32 %v2303_v44, %v2198_v56 }
 0x3e1   :  { %3549 = vmatmul.msk.f32.gmra.mxu0 %vm746_vm3, %v2311_v0 }
 0x426   :  { %v2361_v57 = vpop.f32.mrf.mxu0 }
 0x427   :  { %v2362_v39 = vadd.f32 %v3621_v23, %v2361_v57 }
 0x429   :  { %v2387_v30 = vadd.f32 %v2362_v39, %v4944_v27 }
 0x42b   :  { %v2395_v50 = vsel %vm746_vm3, %v2387_v30, 0.0 }
 0x42c   :  { %2396 = vadd.xlane.f32.xlu0 %v2395_v50 }
 0x42e   :  { %v2364_v16 = vpop.f32.mrf.mxu0 }
 0x42f   :  { %v2365_v5 = vadd.f32 %v3621_v23, %v2364_v16 }
 0x431   :  { %v2388_v46 = vadd.f32 %v2365_v5, %v4953_v45  ;;  %v2595_v5 = vld [vmem:[%s5147_s25 + $0x10] sm:$0xff] }
 0x432   :  { %2638 = vmatpush.msrb.mxu1 %v2595_v5 }
 0x433   :  { %v2398_v35 = vsel %vm746_vm3, %v2388_v46, 0.0 }
 0x434   :  { %2399 = vadd.xlane.f32.xlu1 %v2398_v35  ;;  %v2593_v35 = vld [vmem:[%s5147_s25] sm:$0xff] }
 0x436   :  { %v2367_v13 = vpop.f32.mrf.mxu0 }
 0x437   :  { %v2368_v53 = vadd.f32 %v3621_v23, %v2367_v13 }
 0x439   :  { %v2389_v54 = vadd.f32 %v2368_v53, %v4977_v47 }
 0x43b   :  { %v2401_v25 = vsel %vm746_vm3, %v2389_v54, 0.0 }
 0x43c   :  { %2402 = vadd.xlane.f32.xlu2 %v2401_v25 }
 0x43e   :  { %v2370_v1 = vpop.f32.mrf.mxu0 }
 0x43f   :  { %v2371_v43 = vadd.f32 %v3621_v23, %v2370_v1 }
 0x441   :  { %v2390_v27 = vadd.f32 %v2371_v43, %v4992_v4 }
 0x443   :  { %v2404_v28 = vsel %vm746_vm3, %v2390_v27, 0.0 }
 0x444   :  { %2405 = vadd.xlane.f32.xlu2 %v2404_v28 }
 0x446   :  { %v2373_v40 = vpop.f32.mrf.mxu0 }
 0x447   :  { %v2374_v36 = vadd.f32 %v3621_v23, %v2373_v40 }
 0x449   :  { %v2391_v45 = vadd.f32 %v2374_v36, %v5011_v55 }
 0x44b   :  { %v2407_v34 = vsel %vm746_vm3, %v2391_v45, 0.0 }
 0x44c   :  { %2408 = vadd.xlane.f32.xlu0 %v2407_v34 }
 0x44e   :  { %v2376_v10 = vpop.f32.mrf.mxu0 }
 0x44f   :  { %v2377_v12 = vadd.f32 %v3621_v23, %v2376_v10 }
 0x451   :  { %v2392_v47 = vadd.f32 %v2377_v12, %v5013_v63 }
 0x453   :  { %v2410_v60 = vsel %vm746_vm3, %v2392_v47, 0.0 }
 0x454   :  { %2411 = vadd.xlane.f32.xlu1 %v2410_v60 }
 0x456   :  { %v2379_v24 = vpop.f32.mrf.mxu0 }
 0x457   :  { %v2380_v18 = vadd.f32 %v3621_v23, %v2379_v24 }
 0x459   :  { %v2393_v4 = vadd.f32 %v2380_v18, %v5021_v62 }
 0x45b   :  { %v2413_v59 = vsel %vm746_vm3, %v2393_v4, 0.0 }
 0x45c   :  { %2414 = vadd.xlane.f32.xlu0 %v2413_v59 }
 0x45e   :  { %v2382_v9 = vpop.f32.mrf.mxu0 }
 0x45f   :  { %v2383_v63 = vadd.f32 %v3621_v23, %v2382_v9  ;;  %v5198_v9 = vld [vmem:[%s5141_s21] ss:$0 sm:$0xff] }
 0x461   :  { %v2394_v62 = vadd.f32 %v2383_v63, %v5029_v32 }
 0x463   :  { %v2416_v51 = vsel %vm746_vm3, %v2394_v62, 0.0 }
 0x49f   :  { %v2397_v29 = vpop.xlane.xlu0 %2396 }
 0x4a0   :  { %v2419_v55 = vmul.f32 %v2397_v29, %v4507_v6 }
 0x4a2   :  { %v5126_v3 = vsub.f32 %v2387_v30, %v2419_v55 }
 0x4a4   :  { %v2435_v7 = vmul.f32 %v5126_v3, %v5126_v3 }
 0x4a6   :  { %v2443_v58 = vsel %vm746_vm3, %v2435_v7, 0.0 }
 0x4a7   :  { %2444 = vadd.xlane.f32.xlu2 %v2443_v58  ;;  %v2400_v15 = vpop.xlane.xlu1 %2399 }
 0x4a8   :  { %v2420_v8 = vmul.f32 %v2400_v15, %v4507_v6  ;;  %v5207_v15 = vld [vmem:[%s5152_s29] ss:$0 sm:$0xff] }
 0x4aa   :  { %v5133_v61 = vsub.f32 %v2388_v46, %v2420_v8  ;;  %v2594_v46 = vld [vmem:[%s5147_s25 + $0x8] sm:$0xff] }
 0x4ab   :  { %2639 = vmatpush.msrb.mxu1 %v2594_v46 }
 0x4ac   :  { %v2436_v21 = vmul.f32 %v5133_v61, %v5133_v61 }
 0x4ad   :  { %2640 = vmatpush.msrb.mxu1 %v2593_v35 }
 0x4ae   :  { %v2446_v42 = vsel %vm746_vm3, %v2436_v21, 0.0 }
 0x4af   :  { %2417 = vadd.xlane.f32.xlu2 %v2416_v51  ;;  %2447 = vadd.xlane.f32.xlu1 %v2446_v42  ;;  %v2403_v32 = vpop.xlane.xlu2 %2402 }
 0x4b0   :  { %v2421_v52 = vmul.f32 %v2403_v32, %v4507_v6 }
 0x4b2   :  { %v5155_v37 = vsub.f32 %v2389_v54, %v2421_v52 }
 0x4b4   :  { %v2437_v20 = vmul.f32 %v5155_v37, %v5155_v37 }
 0x4b6   :  { %v2449_v19 = vsel %vm746_vm3, %v2437_v20, 0.0 }
 0x4b7   :  { %2450 = vadd.xlane.f32.xlu0 %v2449_v19  ;;  %v2406_v41 = vpop.xlane.xlu2 %2405 }
 0x4b8   :  { %v2422_v38 = vmul.f32 %v2406_v41, %v4507_v6 }
 0x4ba   :  { %v5162_v22 = vsub.f32 %v2390_v27, %v2422_v38 }
 0x4bc   :  { %v2438_v14 = vmul.f32 %v5162_v22, %v5162_v22 }
 0x4be   :  { %v2452_v11 = vsel %vm746_vm3, %v2438_v14, 0.0 }
 0x4bf   :  { %v2409_v26 = vpop.xlane.xlu0 %2408  ;;  %2453 = vadd.xlane.f32.xlu1 %v2452_v11 }
 0x4c0   :  { %v2423_v49 = vmul.f32 %v2409_v26, %v4507_v6 }
 0x4c2   :  { %v5168_v2 = vsub.f32 %v2391_v45, %v2423_v49 }
 0x4c4   :  { %v2439_v17 = vmul.f32 %v5168_v2, %v5168_v2 }
 0x4c6   :  { %v2455_v48 = vsel %vm746_vm3, %v2439_v17, 0.0 }
 0x4c7   :  { %v2412_v31 = vpop.xlane.xlu1 %2411  ;;  %2456 = vadd.xlane.f32.xlu2 %v2455_v48 }
 0x4c8   :  { %v2424_v56 = vmul.f32 %v2412_v31, %v4507_v6 }
 0x4ca   :  { %v5174_v44 = vsub.f32 %v2392_v47, %v2424_v56 }
 0x4cc   :  { %v2440_v0 = vmul.f32 %v5174_v44, %v5174_v44 }
 0x4ce   :  { %v2458_v23 = vsel %vm746_vm3, %v2440_v0, 0.0 }
 0x4cf   :  { %v2415_v57 = vpop.xlane.xlu0 %2414  ;;  %2459 = vadd.xlane.f32.xlu0 %v2458_v23 }
 0x4d0   :  { %v2425_v39 = vmul.f32 %v2415_v57, %v4507_v6 }
 0x4d2   :  { %v5180_v30 = vsub.f32 %v2393_v4, %v2425_v39 }
 0x4d4   :  { %v2441_v50 = vmul.f32 %v5180_v30, %v5180_v30 }
 0x4d6   :  { %v2461_v16 = vsel %vm746_vm3, %v2441_v50, 0.0 }
 0x4d7   :  { %2462 = vadd.xlane.f32.xlu1 %v2461_v16 }
 0x51a   :  { %v2445_v13 = vpop.xlane.xlu2 %2444 }
 0x51b   :  { %v2467_v53 = vmul.f32 %v2445_v13, %v4507_v6 }
 0x51d   :  { %v2475_v54 = vadd.f32 1e-05, %v2467_v53 }
 0x51f   :  { %3753 = vrsqrt.f32 %v2475_v54  ;;  %vm2489_vm2 = vweird.f32 %v2475_v54 }
 0x522   :  { %v2418_v25 = vpop.xlane.xlu2 %2417  ;;  %v2448_v1 = vpop.xlane.xlu1 %2447 }
 0x523   :  { %v2426_v43 = vmul.f32 %v2418_v25, %v4507_v6  ;;  %v2468_v27 = vmul.f32 %v2448_v1, %v4507_v6 }
 0x525   :  { %v3754_v28 = vpop.eup %3753  ;;  %v5191_v40 = vsub.f32 %v2394_v62, %v2426_v43  ;;  %v2476_v45 = vadd.f32 1e-05, %v2468_v27 }
 0x526   :  { %v2484_v36 = vmul.f32 %v3754_v28, %v2475_v54  ;;  %vm2490_vm1 = vweird.f32 %v3754_v28 }
 0x527   :  { %v2442_v34 = vmul.f32 %v5191_v40, %v5191_v40  ;;  %3755 = vrsqrt.f32 %v2476_v45  ;;  %vm2491_vm4 = vmor %vm2489_vm2, %vm2490_vm1  ;;  %vm2499_vm6 = vweird.f32 %v2476_v45 }
 0x528   :  { %v2485_v10 = vmul.f32 %v3754_v28, %v2484_v36 }
 0x529   :  { %v2464_v12 = vsel %vm746_vm3, %v2442_v34, 0.0 }
 0x52a   :  { %v2486_v47 = vmul.f32 0.5, %v2485_v10  ;;  %2465 = vadd.xlane.f32.xlu2 %v2464_v12  ;;  %v2451_v60 = vpop.xlane.xlu0 %2450 }
 0x52b   :  { %v2469_v18 = vmul.f32 %v2451_v60, %v4507_v6 }
 0x52c   :  { %v2487_v24 = vsub.f32 1.5, %v2486_v47 }
 0x52d   :  { %v3756_v4 = vpop.eup %3755  ;;  %v2477_v29 = vadd.f32 1e-05, %v2469_v18 }
 0x52e   :  { %v2488_v59 = vmul.f32 %v3754_v28, %v2487_v24  ;;  %v2494_v55 = vmul.f32 %v3756_v4, %v2476_v45  ;;  %vm2500_vm5 = vweird.f32 %v3756_v4 }
 0x52f   :  { %3757 = vrsqrt.f32 %v2477_v29  ;;  %vm2501_vm7 = vmor %vm2499_vm6, %vm2500_vm5  ;;  %vm2509_vm9 = vweird.f32 %v2477_v29 }
 0x530   :  { %v2492_v7 = vsel %vm2491_vm4, %v3754_v28, %v2488_v59  ;;  %v2495_v58 = vmul.f32 %v3756_v4, %v2494_v55 }
 0x531   :  { %v2563_v63 = vmul.f32 %v2492_v7, %v5126_v3 }
 0x532   :  { %v2496_v8 = vmul.f32 0.5, %v2495_v58  ;;  %v2454_v62 = vpop.xlane.xlu1 %2453 }
 0x533   :  { %v2574_v21 = vmul.f32 %v5198_v9, %v2563_v63  ;;  %v2470_v51 = vmul.f32 %v2454_v62, %v4507_v6 }
 0x534   :  { %v2497_v42 = vsub.f32 1.5, %v2496_v8 }
 0x535   :  { %v5212_v32 = vadd.f32 %v5207_v15, %v2574_v21  ;;  %v3758_v52 = vpop.eup %3757  ;;  %v2478_v20 = vadd.f32 1e-05, %v2470_v51 }
 0x536   :  { %v2498_v19 = vmul.f32 %v3756_v4, %v2497_v42  ;;  %v2504_v41 = vmul.f32 %v3758_v52, %v2477_v29  ;;  %vm2510_vm8 = vweird.f32 %v3758_v52 }
 0x537   :  { %3550 = vmatmul.msk.f32.vlgmr.msrb.gmra.mxu1 %vm746_vm3, %v5212_v32  ;;  %3759 = vrsqrt.f32 %v2478_v20  ;;  %vm2511_vm10 = vmor %vm2509_vm9, %vm2510_vm8  ;;  %vm2519_vm12 = vweird.f32 %v2478_v20 }
 0x538   :  { %v2502_v3 = vsel %vm2501_vm7, %v3756_v4, %v2498_v19  ;;  %v2505_v33 = vmul.f32 %v3758_v52, %v2504_v41 }
 0x539   :  { %v2564_v38 = vmul.f32 %v2502_v3, %v5133_v61 }
 0x53a   :  { %v2506_v14 = vmul.f32 0.5, %v2505_v33  ;;  %v2457_v11 = vpop.xlane.xlu2 %2456 }
 0x53b   :  { %v2471_v26 = vmul.f32 %v2457_v11, %v4507_v6  ;;  %v2575_v49 = vmul.f32 %v5198_v9, %v2564_v38 }
 0x53c   :  { %v2507_v17 = vsub.f32 1.5, %v2506_v14 }
 0x53d   :  { %v3760_v48 = vpop.eup %3759  ;;  %v2479_v31 = vadd.f32 1e-05, %v2471_v26  ;;  %v5220_v56 = vadd.f32 %v5207_v15, %v2575_v49 }
 0x53e   :  { %v2508_v0 = vmul.f32 %v3758_v52, %v2507_v17  ;;  %v2514_v23 = vmul.f32 %v3760_v48, %v2478_v20  ;;  %vm2520_vm11 = vweird.f32 %v3760_v48 }
 0x53f   :  { %3761 = vrsqrt.f32 %v2479_v31  ;;  %3551 = vmatmul.msk.f32.gmra.mxu1 %vm746_vm3, %v5220_v56  ;;  %vm2521_vm13 = vmor %vm2519_vm12, %vm2520_vm11  ;;  %vm2529_vm15 = vweird.f32 %v2479_v31 }
 0x540   :  { %v2512_v61 = vsel %vm2511_vm10, %v3758_v52, %v2508_v0  ;;  %v2515_v57 = vmul.f32 %v3760_v48, %v2514_v23  ;;  %v5263_v23 = vld [vmem:[%s5203_s3] ss:$0 sm:$0xff] }
 0x541   :  { %v2565_v39 = vmul.f32 %v2512_v61, %v5155_v37 }
 0x542   :  { %v2516_v50 = vmul.f32 0.5, %v2515_v57  ;;  %v2460_v16 = vpop.xlane.xlu0 %2459 }
 0x543   :  { %v2472_v5 = vmul.f32 %v2460_v16, %v4507_v6  ;;  %v2576_v46 = vmul.f32 %v5198_v9, %v2565_v39 }
 0x544   :  { %v2517_v35 = vsub.f32 1.5, %v2516_v50 }
 0x545   :  { %v3762_v13 = vpop.eup %3761  ;;  %v2480_v53 = vadd.f32 1e-05, %v2472_v5  ;;  %v5228_v54 = vadd.f32 %v5207_v15, %v2576_v46 }
 0x546   :  { %v2518_v25 = vmul.f32 %v3760_v48, %v2517_v35  ;;  %v2524_v1 = vmul.f32 %v3762_v13, %v2479_v31  ;;  %vm2530_vm14 = vweird.f32 %v3762_v13 }
 0x547   :  { %3763 = vrsqrt.f32 %v2480_v53  ;;  %3552 = vmatmul.msk.f32.gmra.mxu1 %vm746_vm3, %v5228_v54  ;;  %vm2531_vm0 = vmor %vm2529_vm15, %vm2530_vm14  ;;  %vm2539_vm2 = vweird.f32 %v2480_v53 }
 0x548   :  { %v2522_v37 = vsel %vm2521_vm13, %v3760_v48, %v2518_v25  ;;  %v2525_v43 = vmul.f32 %v3762_v13, %v2524_v1 }
 0x549   :  { %v2566_v27 = vmul.f32 %v2522_v37, %v5162_v22 }
 0x54a   :  { %v2526_v28 = vmul.f32 0.5, %v2525_v43  ;;  %v2463_v36 = vpop.xlane.xlu1 %2462 }
 0x54b   :  { %v2473_v45 = vmul.f32 %v2463_v36, %v4507_v6  ;;  %v2577_v34 = vmul.f32 %v5198_v9, %v2566_v27 }
 0x54c   :  { %v2527_v10 = vsub.f32 1.5, %v2526_v28 }
 0x54d   :  { %v3764_v12 = vpop.eup %3763  ;;  %v2481_v47 = vadd.f32 1e-05, %v2473_v45  ;;  %v5236_v60 = vadd.f32 %v5207_v15, %v2577_v34  ;;  %v2989_v45 = vld [vmem:[%s3453_s6 + $0x18] sm:$0xff] }
 0x54e   :  { %v2528_v24 = vmul.f32 %v3762_v13, %v2527_v10  ;;  %v2534_v18 = vmul.f32 %v3764_v12, %v2480_v53  ;;  %vm2540_vm1 = vweird.f32 %v3764_v12  ;;  %3030 = vmatpush.msrb.mxu2 %v2989_v45 }
 0x54f   :  { %3765 = vrsqrt.f32 %v2481_v47  ;;  %3553 = vmatmul.msk.f32.gmra.mxu1 %vm746_vm3, %v5236_v60  ;;  %vm2541_vm4 = vmor %vm2539_vm2, %vm2540_vm1  ;;  %vm2549_vm6 = vweird.f32 %v2481_v47 }
 0x550   :  { %v2532_v22 = vsel %vm2531_vm0, %v3762_v13, %v2528_v24  ;;  %v2535_v4 = vmul.f32 %v3764_v12, %v2534_v18 }
 0x551   :  { %v2567_v59 = vmul.f32 %v2532_v22, %v5168_v2 }
 0x552   :  { %v2536_v29 = vmul.f32 0.5, %v2535_v4  ;;  %v2987_v4 = vld [vmem:[%s3453_s6 + $0x8] sm:$0xff] }
 0x553   :  { %v2578_v55 = vmul.f32 %v5198_v9, %v2567_v59 }
 0x554   :  { %v2537_v7 = vsub.f32 1.5, %v2536_v29 }
 0x555   :  { %v3766_v63 = vpop.eup %3765  ;;  %v5243_v58 = vadd.f32 %v5207_v15, %v2578_v55 }
 0x556   :  { %v2538_v8 = vmul.f32 %v3764_v12, %v2537_v7  ;;  %v2544_v62 = vmul.f32 %v3766_v63, %v2481_v47  ;;  %vm2550_vm5 = vweird.f32 %v3766_v63  ;;  %v2988_v47 = vld [vmem:[%s3453_s6 + $0x10] sm:$0xff] }
 0x557   :  { %3554 = vmatmul.msk.f32.gmra.mxu1 %vm746_vm3, %v5243_v58  ;;  %vm2551_vm7 = vmor %vm2549_vm6, %vm2550_vm5  ;;  %3031 = vmatpush.msrb.mxu2 %v2988_v47 }
 0x558   :  { %v2542_v21 = vsel %vm2541_vm4, %v3764_v12, %v2538_v8  ;;  %v2545_v51 = vmul.f32 %v3766_v63, %v2544_v62 }
 0x559   :  { %v2568_v2 = vmul.f32 %v2542_v21, %v5174_v44  ;;  %3032 = vmatpush.msrb.mxu2 %v2987_v4 }
 0x55a   :  { %v2546_v42 = vmul.f32 0.5, %v2545_v51 }
 0x55b   :  { %v2579_v52 = vmul.f32 %v5198_v9, %v2568_v2 }
 0x55c   :  { %v2547_v20 = vsub.f32 1.5, %v2546_v42 }
 0x55d   :  { %v5250_v19 = vadd.f32 %v5207_v15, %v2579_v52 }
 0x55e   :  { %v2548_v41 = vmul.f32 %v3766_v63, %v2547_v20 }
 0x55f   :  { %3555 = vmatmul.msk.f32.gmra.mxu1 %vm746_vm3, %v5250_v19 }
 0x560   :  { %v2552_v3 = vsel %vm2551_vm7, %v3766_v63, %v2548_v41  ;;  %v2986_v63 = vld [vmem:[%s3453_s6] sm:$0xff] }
 0x561   :  { %v2569_v33 = vmul.f32 %v2552_v3, %v5180_v30  ;;  %3033 = vmatpush.msrb.mxu2 %v2986_v63 }
 0x563   :  { %v2580_v44 = vmul.f32 %v5198_v9, %v2569_v33 }
 0x565   :  { %v5257_v38 = vadd.f32 %v5207_v15, %v2580_v44 }
 0x567   :  { %3556 = vmatmul.msk.f32.gmra.mxu1 %vm746_vm3, %v5257_v38 }
 0x59d   :  { %v2466_v14 = vpop.xlane.xlu2 %2465 }
 0x59e   :  { %v2474_v11 = vmul.f32 %v2466_v14, %v4507_v6 }
 0x5a0   :  { %v2482_v26 = vadd.f32 1e-05, %v2474_v11 }
 0x5a2   :  { %3767 = vrsqrt.f32 %v2482_v26  ;;  %vm2559_vm9 = vweird.f32 %v2482_v26 }
 0x5a8   :  { %v3768_v49 = vpop.eup %3767 }
 0x5a9   :  { %v2554_v17 = vmul.f32 %v3768_v49, %v2482_v26  ;;  %vm2560_vm8 = vweird.f32 %v3768_v49 }
 0x5aa   :  { %vm2561_vm10 = vmor %vm2559_vm9, %vm2560_vm8 }
 0x5ab   :  { %v2555_v48 = vmul.f32 %v3768_v49, %v2554_v17 }
 0x5ad   :  { %v2556_v31 = vmul.f32 0.5, %v2555_v48 }
 0x5af   :  { %v2557_v0 = vsub.f32 1.5, %v2556_v31 }
 0x5b1   :  { %v2558_v30 = vmul.f32 %v3768_v49, %v2557_v0 }
 0x5b3   :  { %v2562_v61 = vsel %vm2561_vm10, %v3768_v49, %v2558_v30 }
 0x5b4   :  { %v2642_v57 = vpop.f32.mrf.mxu1  ;;  %v2570_v39 = vmul.f32 %v2562_v61, %v5191_v40 }
 0x5b5   :  { %v5267_v50 = vadd.f32 %v5263_v23, %v2642_v57 }
 0x5b6   :  { %v2581_v16 = vmul.f32 %v5198_v9, %v2570_v39 }
 0x5b7   :  { %v5271_v5 = vmul.f32 0.70710677, %v5267_v50 }
 0x5b8   :  { %v5274_v46 = vadd.f32 %v5207_v15, %v2581_v16 }
 0x5b9   :  { %v2698_v35 = vand.u32 2147483647, %v5271_v5  ;;  %vm2682_vm4 = vcmp.ge.f32.partialorder %v5271_v5, 0.0 }
 0x5ba   :  { %3557 = vmatmul.msk.f32.gmra.mxu1 %vm746_vm3, %v5274_v46 }
 0x5bb   :  { %v2706_v13 = vmul.f32 0.3275911, %v2698_v35  ;;  %v2914_v2 = vsub.f32 0.0, %v2698_v35 }
 0x5bc   :  { %v2645_v25 = vpop.f32.mrf.mxu1 }
 0x5bd   :  { %v2714_v53 = vadd.f32 1.0, %v2706_v13  ;;  %v5280_v40 = vadd.f32 %v5263_v23, %v2645_v25  ;;  %v2922_v44 = vmul.f32 %v2914_v2, %v2698_v35 }
 0x5bf   :  { %3769 = vrcp.f32 %v2714_v53  ;;  %v5286_v9 = vmul.f32 0.70710677, %v5280_v40  ;;  %v2733_v10 = vand.u32 2147483648, %v2714_v53  ;;  %v2731_v18 = vand.u32 2147483647, %v2714_v53 }
 0x5c0   :  { %vm2727_vm12 = vweird.f32 %v2714_v53  ;;  %v2930_v39 = vmul.f32 1.442695, %v2922_v44 }
 0x5c1   :  { %v5289_v15 = vand.u32 2147483647, %v5286_v9  ;;  %v2734_v29 = vor.u32 1.1754944e-38, %v2733_v10  ;;  %vm2732_vm14 = vcmp.eq.f32.partialorder %v2731_v18, 8.507059e+37  ;;  %vm2683_vm5 = vcmp.ge.f32.partialorder %v5286_v9, 0.0 }
 0x5c3   :  { %v2707_v1 = vmul.f32 0.3275911, %v5289_v15  ;;  %v2915_v45 = vsub.f32 0.0, %v5289_v15 }
 0x5c4   :  { %v2648_v43 = vpop.f32.mrf.mxu1 }
 0x5c5   :  { %v3770_v37 = vpop.eup %3769  ;;  %v5292_v28 = vadd.f32 1.0, %v2707_v1  ;;  %v5295_v36 = vadd.f32 %v5263_v23, %v2648_v43 }
 0x5c6   :  { %v2723_v27 = vmul.f32 %v3770_v37, %v2714_v53  ;;  %vm2728_vm11 = vweird.f32 %v3770_v37 }
 0x5c7   :  { %3771 = vrcp.f32 %v5292_v28  ;;  %v5299_v12 = vmul.f32 0.70710677, %v5295_v36  ;;  %vm2729_vm13 = vmor %vm2727_vm12, %vm2728_vm11  ;;  %v2748_v49 = vand.u32 2147483648, %v5292_v28  ;;  %vm2742_vm0 = vweird.f32 %v5292_v28 }
 0x5c8   :  { %v2724_v34 = vsub.f32 1.0, %v2723_v27  ;;  %v2746_v61 = vand.u32 2147483647, %v5292_v28 }
 0x5c9   :  { %v5302_v22 = vand.u32 2147483647, %v5299_v12  ;;  %v2749_v1 = vor.u32 1.1754944e-38, %v2748_v49  ;;  %vm2684_vm11 = vcmp.ge.f32.partialorder %v5299_v12, 0.0 }
 0x5ca   :  { %v2725_v24 = vmul.f32 %v3770_v37, %v2724_v34  ;;  %vm2747_vm2 = vcmp.eq.f32.partialorder %v2746_v61, 8.507059e+37 }
 0x5cb   :  { %v2708_v55 = vmul.f32 0.3275911, %v5302_v22 }
 0x5cc   :  { %v2726_v59 = vadd.f32 %v3770_v37, %v2725_v24  ;;  %v2651_v7 = vpop.f32.mrf.mxu1 }
 0x5cd   :  { %v3772_v8 = vpop.eup %3771  ;;  %v5306_v21 = vadd.f32 %v5263_v23, %v2651_v7  ;;  %v5309_v52 = vadd.f32 1.0, %v2708_v55 }
 0x5ce   :  { %v2730_v62 = vsel %vm2729_vm13, %v3770_v37, %v2726_v59  ;;  %v2738_v42 = vmul.f32 %v3772_v8, %v5292_v28  ;;  %vm2743_vm15 = vweird.f32 %v3772_v8  ;;  %v5336_v28 = vmul.f32 0.5, %v5267_v50 }
 0x5cf   :  { %v2735_v51 = vsel %vm2732_vm14, %v2734_v29, %v2730_v62  ;;  %v5312_v41 = vmul.f32 0.70710677, %v5306_v21  ;;  %3773 = vrcp.f32 %v5309_v52  ;;  %vm2744_vm1 = vmor %vm2742_vm0, %vm2743_vm15  ;;  %v2763_v18 = vand.u32 2147483648, %v5309_v52 }
 0x5d0   :  { %v2842_v20 = vmul.f32 1.0614054, %v2735_v51  ;;  %v2739_v3 = vsub.f32 1.0, %v2738_v42  ;;  %v2761_v50 = vand.u32 2147483647, %v5309_v52  ;;  %v2916_v62 = vsub.f32 0.0, %v5302_v22 }
 0x5d1   :  { %v5316_v11 = vand.u32 2147483647, %v5312_v41  ;;  %vm2757_vm7 = vweird.f32 %v5309_v52 }
 0x5d2   :  { %v2850_v33 = vadd.f32 -1.4531521, %v2842_v20  ;;  %v2740_v14 = vmul.f32 %v3772_v8, %v2739_v3  ;;  %vm2762_vm9 = vcmp.eq.f32.partialorder %v2761_v50, 8.507059e+37 }
 0x5d3   :  { %v2709_v17 = vmul.f32 0.3275911, %v5316_v11  ;;  %v2917_v44 = vsub.f32 0.0, %v5316_v11 }
 0x5d4   :  { %v2858_v26 = vmul.f32 %v2850_v33, %v2735_v51  ;;  %v2654_v48 = vpop.f32.mrf.mxu1  ;;  %v2741_v31 = vadd.f32 %v3772_v8, %v2740_v14 }
 0x5d5   :  { %v5322_v30 = vadd.f32 %v5263_v23, %v2654_v48  ;;  %v3774_v57 = vpop.eup %3773  ;;  %v5325_v16 = vadd.f32 1.0, %v2709_v17 }
 0x5d6   :  { %v2866_v0 = vadd.f32 1.4214138, %v2858_v26  ;;  %v2753_v13 = vmul.f32 %v3774_v57, %v5309_v52  ;;  %v2745_v25 = vsel %vm2744_vm1, %v3772_v8, %v2741_v31  ;;  %vm2758_vm6 = vweird.f32 %v3774_v57 }
 0x5d7   :  { %v5329_v53 = vmul.f32 0.70710677, %v5322_v30  ;;  %3775 = vrcp.f32 %v5325_v16  ;;  %v5339_v34 = vsel %vm2747_vm2, %v2749_v1, %v2745_v25  ;;  %v2923_v8 = vmul.f32 %v2915_v45, %v5289_v15  ;;  %vm2759_vm8 = vmor %vm2757_vm7, %vm2758_vm6 }
 0x5d8   :  { %v2874_v35 = vmul.f32 %v2866_v0, %v2735_v51  ;;  %v2754_v43 = vsub.f32 1.0, %v2753_v13  ;;  %3777 = vpow2.f32 %v2930_v39  ;;  %v2843_v59 = vmul.f32 1.0614054, %v5339_v34 }
 0x5d9   :  { %v5333_v27 = vand.u32 2147483647, %v5329_v53  ;;  %v2764_v15 = vor.u32 1.1754944e-38, %v2763_v18  ;;  %v3857_v52 = vmov -1.0   ;;  %v5369_v31 = vmul.f32 0.5, %v5280_v40 }
 0x5da   :  { %v2882_v37 = vadd.f32 -0.28449672, %v2874_v35  ;;  %v2755_v47 = vmul.f32 %v3774_v57, %v2754_v43  ;;  %v2851_v2 = vadd.f32 -1.4531521, %v2843_v59  ;;  %v2690_v48 = vsel %vm2682_vm4, 1.0, %v3857_v52 }
 0x5db   :  { %v2710_v24 = vmul.f32 0.3275911, %v5333_v27  ;;  %v5379_v35 = vsel %vm2683_vm5, 1.0, %v3857_v52  ;;  %v2924_v25 = vmul.f32 %v2916_v62, %v5302_v22  ;;  %v2778_v50 = vand.u32 2147483648, %v5325_v16 }
 0x5dc   :  { %v2890_v10 = vmul.f32 %v2882_v37, %v2735_v51  ;;  %v2657_v4 = vpop.f32.mrf.mxu1  ;;  %v2756_v42 = vadd.f32 %v3774_v57, %v2755_v47  ;;  %vm2772_vm12 = vweird.f32 %v5325_v16 }
 0x5dd   :  { %v5347_v55 = vadd.f32 1.0, %v2710_v24  ;;  %v5350_v7 = vadd.f32 %v5263_v23, %v2657_v4  ;;  %v5352_v63 = vpop.eup %3775  ;;  %v2776_v4 = vand.u32 2147483647, %v5325_v16  ;;  %v2779_v12 = vor.u32 1.1754944e-38, %v2778_v50 }
 0x5de   :  { %v2898_v29 = vadd.f32 0.2548296, %v2890_v10  ;;  %v2768_v3 = vmul.f32 %v5352_v63, %v5325_v16  ;;  %v3778_v33 = vpop.eup %3777  ;;  %v2760_v17 = vsel %vm2759_vm8, %v3774_v57, %v2756_v42  ;;  %v2932_v57 = vmul.f32 1.442695, %v2923_v8 }
 0x5df   :  { %3779 = vrcp.f32 %v5347_v55  ;;  %v5362_v14 = vmul.f32 0.70710677, %v5350_v7  ;;  %v5374_v61 = vsel %vm2762_vm9, %v2764_v15, %v2760_v17  ;;  %v2925_v10 = vmul.f32 %v2917_v44, %v5316_v11 }
 0x5e0   :  { %v2906_v20 = vmul.f32 %v2898_v29, %v2735_v51  ;;  %v2769_v49 = vsub.f32 1.0, %v2768_v3  ;;  %v2859_v51 = vmul.f32 %v2851_v2, %v5339_v34  ;;  %v2844_v37 = vmul.f32 1.0614054, %v5374_v61 }
 0x5e1   :  { %v5372_v0 = vand.u32 2147483647, %v5362_v14  ;;  %vm2773_vm10 = vweird.f32 %v5352_v63  ;;  %v2934_v42 = vmul.f32 1.442695, %v2924_v25  ;;  %v5412_v44 = vmul.f32 0.5, %v5295_v36 }
 0x5e2   :  { %v2946_v26 = vmul.f32 %v3778_v33, %v2906_v20  ;;  %v2867_v13 = vadd.f32 1.4214138, %v2859_v51  ;;  %v2770_v5 = vmul.f32 %v5352_v63, %v2769_v49  ;;  %v2852_v18 = vadd.f32 -1.4531521, %v2844_v37  ;;  %vm2774_vm13 = vmor %vm2772_vm12, %vm2773_vm10 }
 0x5e3   :  { %v2711_v40 = vmul.f32 0.3275911, %v5372_v0  ;;  %v2936_v20 = vmul.f32 1.442695, %v2925_v10  ;;  %vm2777_vm14 = vcmp.eq.f32.partialorder %v2776_v4, 8.507059e+37  ;;  %vm2787_vm0 = vweird.f32 %v5347_v55 }
 0x5e4   :  { %v2954_v39 = vsub.f32 1.0, %v2946_v26  ;;  %v2660_v1 = vpop.f32.mrf.mxu1  ;;  %v2875_v47 = vmul.f32 %v2867_v13, %v5339_v34  ;;  %v2771_v62 = vadd.f32 %v5352_v63, %v2770_v5  ;;  %v5418_v26 = vsel %vm2684_vm11, 1.0, %v3857_v52 }
 0x5e5   :  { %v5385_v43 = vpop.eup %3779  ;;  %v5389_v9 = vadd.f32 %v5263_v23, %v2660_v1  ;;  %v5394_v24 = vadd.f32 1.0, %v2711_v40  ;;  %v2793_v1 = vand.u32 2147483648, %v5347_v55  ;;  %v2918_v37 = vsub.f32 0.0, %v5333_v27 }
 0x5e6   :  { %v2962_v45 = vmul.f32 %v2954_v39, %v2690_v48  ;;  %v2783_v22 = vmul.f32 %v5385_v43, %v5347_v55  ;;  %v2883_v11 = vadd.f32 -0.28449672, %v2875_v47  ;;  %v2775_v49 = vsel %vm2774_vm13, %v5352_v63, %v2771_v62 }
 0x5e7   :  { %v5399_v29 = vmul.f32 0.70710677, %v5389_v9  ;;  %3781 = vrcp.f32 %v5394_v24  ;;  %v5422_v17 = vsel %vm2777_vm14, %v2779_v12, %v2775_v49  ;;  %vm2788_vm15 = vweird.f32 %v5385_v43 }
 0x5e8   :  { %v2970_v59 = vadd.f32 1.0, %v2962_v45  ;;  %v2784_v8 = vsub.f32 1.0, %v2783_v22  ;;  %3783 = vpow2.f32 %v2932_v57  ;;  %v2891_v15 = vmul.f32 %v2883_v11, %v5339_v34  ;;  %vm5444_vm2 = vmor %vm2787_vm0, %vm2788_vm15 }
 0x5e9   :  { %v5409_v33 = vand.u32 2147483647, %v5399_v29  ;;  %3785 = vpow2.f32 %v2934_v42  ;;  %v2845_v57 = vmul.f32 1.0614054, %v5422_v17  ;;  %v2791_v22 = vand.u32 2147483647, %v5347_v55 }
 0x5ea   :  { %v2978_v2 = vmul.f32 %v2970_v59, %v5336_v28  ;;  %v2785_v3 = vmul.f32 %v5385_v43, %v2784_v8  ;;  %v2860_v28 = vmul.f32 %v2852_v18, %v5374_v61  ;;  %v2899_v51 = vadd.f32 0.2548296, %v2891_v15 }
 0x5eb   :  { %v2712_v16 = vmul.f32 0.3275911, %v5409_v33  ;;  %3787 = vpow2.f32 %v2936_v20  ;;  %v2808_v18 = vand.u32 2147483648, %v5394_v24  ;;  %v2853_v4 = vadd.f32 -1.4531521, %v2845_v57 }
 0x5ec   :  { %3558 = vmatmul.msk.f32.vlgmr.msrb.gmra.mxu2 %vm746_vm3, %v2978_v2  ;;  %v2868_v36 = vadd.f32 1.4214138, %v2860_v28  ;;  %v2786_v63 = vadd.f32 %v5385_v43, %v2785_v3  ;;  %v2907_v5 = vmul.f32 %v2899_v51, %v5339_v34  ;;  %v2806_v34 = vand.u32 2147483647, %v5394_v24 }
 0x5ed   :  { %v3782_v48 = vpop.eup %3781  ;;  %v5429_v39 = vadd.f32 1.0, %v2712_v16  ;;  %vm2802_vm4 = vweird.f32 %v5394_v24  ;;  %v2919_v42 = vsub.f32 0.0, %v5372_v0  ;;  %v2861_v20 = vmul.f32 %v2853_v4, %v5422_v17 }
 0x5ee   :  { %v3784_v13 = vpop.eup %3783  ;;  %v2798_v25 = vmul.f32 %v3782_v48, %v5394_v24  ;;  %v2876_v40 = vmul.f32 %v2868_v36, %v5374_v61  ;;  %vm2803_vm1 = vweird.f32 %v3782_v48  ;;  %v2790_v2 = vsel %vm5444_vm2, %v5385_v43, %v2786_v63 }
 0x5ef   :  { %3789 = vrcp.f32 %v5429_v39  ;;  %v2947_v10 = vmul.f32 %v3784_v13, %v2907_v5  ;;  %v3786_v50 = vpop.eup %3785  ;;  %v2794_v3 = vor.u32 1.1754944e-38, %v2793_v1  ;;  %vm2792_vm5 = vcmp.eq.f32.partialorder %v2791_v22, 8.507059e+37  ;;  %vm2804_vm6 = vmor %vm2802_vm4, %vm2803_vm1 }
 0x5f0   :  { %v2799_v45 = vsub.f32 1.0, %v2798_v25  ;;  %v2884_v47 = vadd.f32 -0.28449672, %v2876_v40  ;;  %v2926_v49 = vmul.f32 %v2918_v37, %v5333_v27  ;;  %v2809_v51 = vor.u32 1.1754944e-38, %v2808_v18 }
 0x5f1   :  { %v2955_v8 = vsub.f32 1.0, %v2947_v10  ;;  %v3788_v55 = vpop.eup %3787  ;;  %v2869_v43 = vadd.f32 1.4214138, %v2861_v20  ;;  %v5458_v36 = vsel %vm2792_vm5, %v2794_v3, %v2790_v2  ;;  %vm2807_vm7 = vcmp.eq.f32.partialorder %v2806_v34, 8.507059e+37 }
 0x5f2   :  { %v2800_v11 = vmul.f32 %v3782_v48, %v2799_v45  ;;  %v2892_v62 = vmul.f32 %v2884_v47, %v5374_v61  ;;  %v2846_v5 = vmul.f32 1.0614054, %v5458_v36  ;;  %v2927_v40 = vmul.f32 %v2919_v42, %v5372_v0 }
 0x5f3   :  { %v2963_v28 = vmul.f32 %v2955_v8, %v5379_v35  ;;  %v2877_v25 = vmul.f32 %v2869_v43, %v5422_v17  ;;  %v2938_v18 = vmul.f32 1.442695, %v2926_v49  ;;  %vm2817_vm9 = vweird.f32 %v5429_v39 }
 0x5f4   :  { %v2801_v15 = vadd.f32 %v3782_v48, %v2800_v11  ;;  %v2900_v12 = vadd.f32 0.2548296, %v2892_v62  ;;  %v2854_v47 = vadd.f32 -1.4531521, %v2846_v5  ;;  %v2940_v11 = vmul.f32 1.442695, %v2927_v40 }
 0x5f5   :  { %v3790_v16 = vpop.eup %3789  ;;  %v2971_v63 = vadd.f32 1.0, %v2963_v28  ;;  %v2885_v10 = vadd.f32 -0.28449672, %v2877_v25  ;;  %vm2685_vm12 = vcmp.ge.f32.partialorder %v5312_v41, 0.0  ;;  %3791 = vpow2.f32 %v2938_v18 }
 0x5f6   :  { %v2805_v24 = vsel %vm2804_vm6, %v3782_v48, %v2801_v15  ;;  %v2813_v57 = vmul.f32 %v3790_v16, %v5429_v39  ;;  %v2908_v35 = vmul.f32 %v2900_v12, %v5374_v61  ;;  %v2823_v48 = vand.u32 2147483648, %v5429_v39 }
 0x5f7   :  { %v5461_v13 = vsel %vm2807_vm7, %v2809_v51, %v2805_v24  ;;  %v2979_v37 = vmul.f32 %v2971_v63, %v5369_v31  ;;  %vm2818_vm8 = vweird.f32 %v3790_v16  ;;  %v2821_v61 = vand.u32 2147483647, %v5429_v39 }
 0x5f8   :  { %v2847_v27 = vmul.f32 1.0614054, %v5461_v13  ;;  %v2814_v1 = vsub.f32 1.0, %v2813_v57  ;;  %v2948_v45 = vmul.f32 %v3786_v50, %v2908_v35  ;;  %v2893_v59 = vmul.f32 %v2885_v10, %v5422_v17  ;;  %vm2819_vm10 = vmor %vm2817_vm9, %vm2818_vm8 }
 0x5f9   :  { %3559 = vmatmul.msk.f32.gmra.mxu2 %vm746_vm3, %v2979_v37  ;;  %v2862_v0 = vmul.f32 %v2854_v47, %v5458_v36  ;;  %v2824_v50 = vor.u32 1.1754944e-38, %v2823_v48  ;;  %vm2822_vm11 = vcmp.eq.f32.partialorder %v2821_v61, 8.507059e+37  ;;  %v2920_v15 = vsub.f32 0.0, %v5409_v33 }
 0x5fa   :  { %v2855_v22 = vadd.f32 -1.4531521, %v2847_v27  ;;  %v2815_v34 = vmul.f32 %v3790_v16, %v2814_v1  ;;  %v2956_v4 = vsub.f32 1.0, %v2948_v45  ;;  %v2901_v2 = vadd.f32 0.2548296, %v2893_v59 }
 0x5fb   :  { %v2870_v42 = vadd.f32 1.4214138, %v2862_v0  ;;  %3793 = vpow2.f32 %v2940_v11  ;;  %v2928_v35 = vmul.f32 %v2920_v15, %v5409_v33  ;;  %v2693_v5 = vsel %vm2685_vm12, 1.0, %v3857_v52  ;;  %v3792_v10 = vpop.eup %3791 }
 0x5fc   :  { %v2863_v31 = vmul.f32 %v2855_v22, %v5461_v13  ;;  %v2816_v8 = vadd.f32 %v3790_v16, %v2815_v34  ;;  %v2964_v62 = vmul.f32 %v2956_v4, %v5418_v26  ;;  %v2909_v49 = vmul.f32 %v2901_v2, %v5422_v17 }
 0x5fd   :  { %v2878_v51 = vmul.f32 %v2870_v42, %v5458_v36  ;;  %v2669_v37 = vmul.f32 0.5, %v5306_v21  ;;  %v2942_v48 = vmul.f32 1.442695, %v2928_v35  ;;  %vm2686_vm13 = vcmp.ge.f32.partialorder %v5329_v53, 0.0 }
 0x5fe   :  { %v2871_v20 = vadd.f32 1.4214138, %v2863_v31  ;;  %v2820_v3 = vsel %vm2819_vm10, %v3790_v16, %v2816_v8  ;;  %v2972_v12 = vadd.f32 1.0, %v2964_v62  ;;  %v2949_v24 = vmul.f32 %v3788_v55, %v2909_v49 }
 0x5ff   :  { %v2825_v28 = vsel %vm2822_vm11, %v2824_v50, %v2820_v3  ;;  %v2886_v57 = vadd.f32 -0.28449672, %v2878_v51  ;;  %vm2687_vm14 = vcmp.ge.f32.partialorder %v5362_v14, 0.0  ;;  %3795 = vpow2.f32 %v2942_v48 }
 0x600   :  { %v2879_v43 = vmul.f32 %v2871_v20, %v5461_v13  ;;  %v2848_v39 = vmul.f32 1.0614054, %v2825_v28  ;;  %v2980_v26 = vmul.f32 %v2972_v12, %v5412_v44  ;;  %v2957_v17 = vsub.f32 1.0, %v2949_v24 }
 0x601   :  { %v2894_v25 = vmul.f32 %v2886_v57, %v5458_v36  ;;  %v3794_v34 = vpop.eup %3793  ;;  %v2694_v0 = vsel %vm2686_vm13, 1.0, %v3857_v52  ;;  %v2670_v53 = vmul.f32 0.5, %v5322_v30  ;;  %vm2688_vm15 = vcmp.ge.f32.partialorder %v5399_v29, 0.0 }
 0x602   :  { %v2887_v16 = vadd.f32 -0.28449672, %v2879_v43  ;;  %v2856_v63 = vadd.f32 -1.4531521, %v2848_v39  ;;  %3560 = vmatmul.msk.f32.gmra.mxu2 %vm746_vm3, %v2980_v26  ;;  %v2965_v40 = vmul.f32 %v2957_v17, %v2693_v5  ;;  %v2671_v12 = vmul.f32 0.5, %v5350_v7 }
 0x603   :  { %v2902_v44 = vadd.f32 0.2548296, %v2894_v25  ;;  %v2696_v49 = vsel %vm2688_vm15, 1.0, %v3857_v52  ;;  %v2672_v30 = vmul.f32 0.5, %v5389_v9 }
 0x604   :  { %v2895_v27 = vmul.f32 %v2887_v16, %v5461_v13  ;;  %v2864_v41 = vmul.f32 %v2856_v63, %v2825_v28  ;;  %v2973_v45 = vadd.f32 1.0, %v2965_v40 }
 0x605   :  { %v2910_v33 = vmul.f32 %v2902_v44, %v5458_v36  ;;  %v3796_v42 = vpop.eup %3795 }
 0x606   :  { %v2903_v55 = vadd.f32 0.2548296, %v2895_v27  ;;  %v2872_v1 = vadd.f32 1.4214138, %v2864_v41  ;;  %v2981_v61 = vmul.f32 %v2973_v45, %v2669_v37 }
 0x607   :  { %v2950_v18 = vmul.f32 %v3792_v10, %v2910_v33 }
 0x608   :  { %v2911_v47 = vmul.f32 %v2903_v55, %v5461_v13  ;;  %v2880_v22 = vmul.f32 %v2872_v1, %v2825_v28  ;;  %v2695_v13 = vsel %vm2687_vm14, 1.0, %v3857_v52 }
 0x609   :  { %v2958_v21 = vsub.f32 1.0, %v2950_v18 }
 0x60a   :  { %v2951_v4 = vmul.f32 %v3794_v34, %v2911_v47  ;;  %v2888_v59 = vadd.f32 -0.28449672, %v2880_v22  ;;  %3561 = vmatmul.msk.f32.gmra.mxu2 %vm746_vm3, %v2981_v61 }
 0x60b   :  { %v2966_v11 = vmul.f32 %v2958_v21, %v2694_v0 }
 0x60c   :  { %v2959_v36 = vsub.f32 1.0, %v2951_v4  ;;  %v2896_v31 = vmul.f32 %v2888_v59, %v2825_v28 }
 0x60d   :  { %v2974_v62 = vadd.f32 1.0, %v2966_v11  ;;  %v3625_v11 = vld [vmem:[%s5427_s10] ss:$0 sm:$0xff] }
 0x60e   :  { %v2904_v8 = vadd.f32 0.2548296, %v2896_v31  ;;  %v2967_v50 = vmul.f32 %v2959_v36, %v2695_v13 }
 0x60f   :  { %v2982_v20 = vmul.f32 %v2974_v62, %v2670_v53 }
 0x610   :  { %v2912_v2 = vmul.f32 %v2904_v8, %v2825_v28  ;;  %v2975_v3 = vadd.f32 1.0, %v2967_v50 }
 0x612   :  { %v2952_v14 = vmul.f32 %v3796_v42, %v2912_v2  ;;  %3562 = vmatmul.msk.f32.gmra.mxu2 %vm746_vm3, %v2982_v20  ;;  %v2983_v51 = vmul.f32 %v2975_v3, %v2671_v12 }
 0x614   :  { %v2960_v15 = vsub.f32 1.0, %v2952_v14 }
 0x616   :  { %v2968_v43 = vmul.f32 %v2960_v15, %v2696_v49 }
 0x618   :  { %v2976_v39 = vadd.f32 1.0, %v2968_v43 }
 0x61a   :  { %3563 = vmatmul.msk.f32.gmra.mxu2 %vm746_vm3, %v2983_v51  ;;  %v2984_v28 = vmul.f32 %v2976_v39, %v2672_v30 }
 0x622   :  { %3564 = vmatmul.msk.f32.gmra.mxu2 %vm746_vm3, %v2984_v28 }
 0x637   :  { %v2663_v26 = vpop.f32.mrf.mxu1 }
 0x638   :  { %v2664_v29 = vadd.f32 %v5263_v23, %v2663_v26 }
 0x63a   :  { %v2681_v24 = vmul.f32 0.70710677, %v2664_v29  ;;  %v2673_v36 = vmul.f32 0.5, %v2664_v29 }
 0x63c   :  { %v2705_v57 = vand.u32 2147483647, %v2681_v24  ;;  %vm2689_vm5 = vcmp.ge.f32.partialorder %v2681_v24, 0.0 }
 0x63d   :  { %v2697_v21 = vsel %vm2689_vm5, 1.0, %v3857_v52 }
 0x63e   :  { %v2713_v16 = vmul.f32 0.3275911, %v2705_v57  ;;  %v2921_v23 = vsub.f32 0.0, %v2705_v57 }
 0x640   :  { %v2721_v63 = vadd.f32 1.0, %v2713_v16  ;;  %v2929_v37 = vmul.f32 %v2921_v23, %v2705_v57 }
 0x642   :  { %3797 = vrcp.f32 %v2721_v63  ;;  %v2838_v25 = vand.u32 2147483648, %v2721_v63  ;;  %v2836_v27 = vand.u32 2147483647, %v2721_v63  ;;  %vm2832_vm1 = vweird.f32 %v2721_v63 }
 0x643   :  { %v2944_v33 = vmul.f32 1.442695, %v2929_v37 }
 0x644   :  { %v2839_v9 = vor.u32 1.1754944e-38, %v2838_v25  ;;  %vm2837_vm4 = vcmp.eq.f32.partialorder %v2836_v27, 8.507059e+37 }
 0x645   :  { %3799 = vpow2.f32 %v2944_v33 }
 0x648   :  { %v3798_v7 = vpop.eup %3797 }
 0x649   :  { %v2828_v35 = vmul.f32 %v3798_v7, %v2721_v63  ;;  %vm2833_vm0 = vweird.f32 %v3798_v7 }
 0x64a   :  { %vm2834_vm2 = vmor %vm2832_vm1, %vm2833_vm0 }
 0x64b   :  { %v2829_v17 = vsub.f32 1.0, %v2828_v35  ;;  %v3800_v18 = vpop.eup %3799 }
 0x64d   :  { %v2830_v5 = vmul.f32 %v3798_v7, %v2829_v17 }
 0x64f   :  { %v2831_v41 = vadd.f32 %v3798_v7, %v2830_v5 }
 0x651   :  { %v2835_v40 = vsel %vm2834_vm2, %v3798_v7, %v2831_v41 }
 0x652   :  { %v2840_v44 = vsel %vm2837_vm4, %v2839_v9, %v2835_v40 }
 0x653   :  { %v2849_v55 = vmul.f32 1.0614054, %v2840_v44 }
 0x655   :  { %v2857_v1 = vadd.f32 -1.4531521, %v2849_v55 }
 0x657   :  { %v2865_v48 = vmul.f32 %v2857_v1, %v2840_v44 }
 0x659   :  { %v2873_v45 = vadd.f32 1.4214138, %v2865_v48 }
 0x65b   :  { %v2881_v10 = vmul.f32 %v2873_v45, %v2840_v44 }
 0x65d   :  { %v2889_v47 = vadd.f32 -0.28449672, %v2881_v10 }
 0x65f   :  { %v2897_v22 = vmul.f32 %v2889_v47, %v2840_v44 }
 0x661   :  { %v2905_v34 = vadd.f32 0.2548296, %v2897_v22 }
 0x663   :  { %v2913_v61 = vmul.f32 %v2905_v34, %v2840_v44 }
 0x665   :  { %v2953_v4 = vmul.f32 %v3800_v18, %v2913_v61 }
 0x667   :  { %v2961_v59 = vsub.f32 1.0, %v2953_v4 }
 0x669   :  { %v2969_v0 = vmul.f32 %v2961_v59, %v2697_v21 }
 0x66b   :  { %v2977_v31 = vadd.f32 1.0, %v2969_v0 }
 0x66d   :  { %v2985_v13 = vmul.f32 %v2977_v31, %v2673_v36 }
 0x66f   :  { %v3035_v8 = vpop.f32.mrf.mxu2  ;;  %3565 = vmatmul.msk.f32.gmra.mxu2 %vm746_vm3, %v2985_v13 }
 0x670   :  { %v3036_v53 = vadd.f32 %v3625_v11, %v3035_v8 }
 0x672   :  { %v3059_v50 = vadd.f32 %v3036_v53, %v5212_v32 }
 0x674   :  { %v3067_v62 = vsel %vm746_vm3, %v3059_v50, 0.0 }
 0x675   :  { %3068 = vadd.xlane.f32.xlu0 %v3067_v62 }
 0x67c   :  { %v3038_v2 = vpop.f32.mrf.mxu2 }
 0x67d   :  { %v3039_v42 = vadd.f32 %v3625_v11, %v3038_v2 }
 0x67f   :  { %v3060_v20 = vadd.f32 %v3039_v42, %v5220_v56 }
 0x681   :  { %v3070_v14 = vsel %vm746_vm3, %v3060_v20, 0.0 }
 0x682   :  { %3071 = vadd.xlane.f32.xlu1 %v3070_v14 }
 0x685   :  { %v3041_v3 = vpop.f32.mrf.mxu2 }
 0x686   :  { %v3042_v15 = vadd.f32 %v3625_v11, %v3041_v3 }
 0x688   :  { %v3061_v12 = vadd.f32 %v3042_v15, %v5228_v54 }
 0x68a   :  { %v3073_v49 = vsel %vm746_vm3, %v3061_v12, 0.0 }
 0x68b   :  { %3074 = vadd.xlane.f32.xlu1 %v3073_v49  ;;  %v3289_v49 = vld [vmem:[%s5580_s19 + $0x10] sm:$0xff] }
 0x68d   :  { %v3044_v51 = vpop.f32.mrf.mxu2 }
 0x68e   :  { %v3045_v29 = vadd.f32 %v3625_v11, %v3044_v51 }
 0x690   :  { %v3062_v16 = vadd.f32 %v3045_v29, %v5236_v60 }
 0x692   :  { %v3076_v7 = vsel %vm746_vm3, %v3062_v16, 0.0 }
 0x695   :  { %v3047_v43 = vpop.f32.mrf.mxu2 }
 0x696   :  { %v3048_v32 = vadd.f32 %v3625_v11, %v3047_v43 }
 0x698   :  { %v3063_v39 = vadd.f32 %v3048_v32, %v5243_v58 }
 0x69a   :  { %v3079_v30 = vsel %vm746_vm3, %v3063_v39, 0.0 }
 0x69b   :  { %3080 = vadd.xlane.f32.xlu2 %v3079_v30 }
 0x69d   :  { %v3050_v28 = vpop.f32.mrf.mxu2 }
 0x69e   :  { %v3051_v56 = vadd.f32 %v3625_v11, %v3050_v28 }
 0x6a0   :  { %v3064_v26 = vadd.f32 %v3051_v56, %v5250_v19 }
 0x6a2   :  { %v3082_v24 = vsel %vm746_vm3, %v3064_v26, 0.0 }
 0x6a3   :  { %3083 = vadd.xlane.f32.xlu0 %v3082_v24 }
 0x6a5   :  { %v3053_v54 = vpop.f32.mrf.mxu2 }
 0x6a6   :  { %v3054_v57 = vadd.f32 %v3625_v11, %v3053_v54 }
 0x6a8   :  { %v3065_v63 = vadd.f32 %v3054_v57, %v5257_v38 }
 0x6aa   :  { %v3085_v58 = vsel %vm746_vm3, %v3065_v63, 0.0 }
 0x6ab   :  { %3077 = vadd.xlane.f32.xlu0 %v3076_v7  ;;  %3086 = vadd.xlane.f32.xlu2 %v3085_v58 }
 0x6e8   :  { %v3069_v35 = vpop.xlane.xlu0 %3068 }
 0x6e9   :  { %v3091_v17 = vmul.f32 %v3069_v35, %v4507_v6 }
 0x6eb   :  { %v5523_v19 = vsub.f32 %v3059_v50, %v3091_v17 }
 0x6ed   :  { %v3107_v25 = vmul.f32 %v5523_v19, %v5523_v19 }
 0x6ef   :  { %v3115_v5 = vsel %vm746_vm3, %v3107_v25, 0.0 }
 0x6f0   :  { %3116 = vadd.xlane.f32.xlu2 %v3115_v5 }
 0x6f2   :  { %v3056_v60 = vpop.f32.mrf.mxu2 }
 0x6f3   :  { %v3057_v27 = vadd.f32 %v3625_v11, %v3056_v60 }
 0x6f5   :  { %v3066_v38 = vadd.f32 %v3057_v27, %v5274_v46  ;;  %v3072_v9 = vpop.xlane.xlu1 %3071 }
 0x6f6   :  { %v3092_v40 = vmul.f32 %v3072_v9, %v4507_v6 }
 0x6f7   :  { %v3088_v41 = vsel %vm746_vm3, %v3066_v38, 0.0 }
 0x6f8   :  { %3089 = vadd.xlane.f32.xlu1 %v3088_v41  ;;  %v5531_v44 = vsub.f32 %v3060_v20, %v3092_v40 }
 0x6fa   :  { %v3108_v23 = vmul.f32 %v5531_v44, %v5531_v44 }
 0x6fc   :  { %v3118_v55 = vsel %vm746_vm3, %v3108_v23, 0.0 }
 0x6fd   :  { %3119 = vadd.xlane.f32.xlu0 %v3118_v55 }
 0x6fe   :  { %v3075_v1 = vpop.xlane.xlu1 %3074 }
 0x6ff   :  { %v3093_v37 = vmul.f32 %v3075_v1, %v4507_v6 }
 0x701   :  { %v5537_v48 = vsub.f32 %v3061_v12, %v3093_v37  ;;  %v3290_v12 = vld [vmem:[%s5580_s19 + $0x18] sm:$0xff] }
 0x702   :  { %3313 = vmatpush.msra.mxu3 %v3290_v12 }
 0x703   :  { %v3109_v46 = vmul.f32 %v5537_v48, %v5537_v48 }
 0x704   :  { %3314 = vmatpush.msra.mxu3 %v3289_v49 }
 0x705   :  { %v3121_v45 = vsel %vm746_vm3, %v3109_v46, 0.0 }
 0x706   :  { %3122 = vadd.xlane.f32.xlu0 %v3121_v45 }
 0x70e   :  { %v3081_v33 = vpop.xlane.xlu2 %3080 }
 0x70f   :  { %v3095_v10 = vmul.f32 %v3081_v33, %v4507_v6 }
 0x711   :  { %v5543_v47 = vsub.f32 %v3063_v39, %v3095_v10 }
 0x713   :  { %v3111_v22 = vmul.f32 %v5543_v47, %v5543_v47 }
 0x715   :  { %v3127_v34 = vsel %vm746_vm3, %v3111_v22, 0.0 }
 0x716   :  { %v3084_v61 = vpop.xlane.xlu0 %3083  ;;  %3128 = vadd.xlane.f32.xlu1 %v3127_v34 }
 0x717   :  { %v3096_v18 = vmul.f32 %v3084_v61, %v4507_v6 }
 0x719   :  { %v5549_v4 = vsub.f32 %v3064_v26, %v3096_v18 }
 0x71b   :  { %v3112_v59 = vmul.f32 %v5549_v4, %v5549_v4 }
 0x71d   :  { %v3130_v21 = vsel %vm746_vm3, %v3112_v59, 0.0 }
 0x71e   :  { %v3078_v0 = vpop.xlane.xlu0 %3077  ;;  %3131 = vadd.xlane.f32.xlu2 %v3130_v21  ;;  %v3087_v36 = vpop.xlane.xlu2 %3086 }
 0x71f   :  { %v3094_v31 = vmul.f32 %v3078_v0, %v4507_v6  ;;  %v3097_v11 = vmul.f32 %v3087_v36, %v4507_v6 }
 0x721   :  { %v5556_v13 = vsub.f32 %v3062_v16, %v3094_v31  ;;  %v5558_v8 = vsub.f32 %v3065_v63, %v3097_v11 }
 0x723   :  { %v3110_v53 = vmul.f32 %v5556_v13, %v5556_v13  ;;  %v3113_v50 = vmul.f32 %v5558_v8, %v5558_v8 }
 0x725   :  { %v3124_v62 = vsel %vm746_vm3, %v3110_v53, 0.0  ;;  %v3133_v2 = vsel %vm746_vm3, %v3113_v50, 0.0 }
 0x726   :  { %3125 = vadd.xlane.f32.xlu2 %v3124_v62  ;;  %3134 = vadd.xlane.f32.xlu1 %v3133_v2 }
 0x763   :  { %v3117_v51 = vpop.xlane.xlu2 %3116 }
 0x764   :  { %v3139_v28 = vmul.f32 %v3117_v51, %v4507_v6 }
 0x766   :  { %v3147_v54 = vadd.f32 1e-05, %v3139_v28 }
 0x768   :  { %vm3161_vm11 = vweird.f32 %v3147_v54 }
 0x76b   :  { %v3090_v42 = vpop.xlane.xlu1 %3089 }
 0x76c   :  { %v3098_v20 = vmul.f32 %v3090_v42, %v4507_v6 }
 0x76e   :  { %v5567_v14 = vsub.f32 %v3066_v38, %v3098_v20 }
 0x770   :  { %v3114_v3 = vmul.f32 %v5567_v14, %v5567_v14  ;;  %v3120_v43 = vpop.xlane.xlu0 %3119 }
 0x771   :  { %v3140_v39 = vmul.f32 %v3120_v43, %v4507_v6 }
 0x772   :  { %v3136_v15 = vsel %vm746_vm3, %v3114_v3, 0.0 }
 0x773   :  { %3137 = vadd.xlane.f32.xlu0 %v3136_v15  ;;  %v3148_v29 = vadd.f32 1e-05, %v3140_v39 }
 0x775   :  { %3801 = vrsqrt.f32 %v3148_v29  ;;  %vm3171_vm8 = vweird.f32 %v3148_v29 }
 0x776   :  { %3803 = vrsqrt.f32 %v3147_v54 }
 0x779   :  { %v3123_v30 = vpop.xlane.xlu0 %3122 }
 0x77a   :  { %v3141_v26 = vmul.f32 %v3123_v30, %v4507_v6 }
 0x77b   :  { %v3802_v7 = vpop.eup %3801 }
 0x77c   :  { %v3149_v16 = vadd.f32 1e-05, %v3141_v26  ;;  %v3804_v17 = vpop.eup %3803  ;;  %v3166_v60 = vmul.f32 %v3802_v7, %v3148_v29  ;;  %vm3172_vm6 = vweird.f32 %v3802_v7 }
 0x77d   :  { %v3156_v9 = vmul.f32 %v3804_v17, %v3147_v54  ;;  %vm3162_vm7 = vweird.f32 %v3804_v17  ;;  %vm5616_vm9 = vmor %vm3171_vm8, %vm3172_vm6 }
 0x77e   :  { %3805 = vrsqrt.f32 %v3149_v16  ;;  %v3167_v55 = vmul.f32 %v3802_v7, %v3166_v60  ;;  %vm3181_vm12 = vweird.f32 %v3149_v16  ;;  %vm3163_vm13 = vmor %vm3161_vm11, %vm3162_vm7 }
 0x77f   :  { %v3157_v46 = vmul.f32 %v3804_v17, %v3156_v9 }
 0x780   :  { %v3168_v33 = vmul.f32 0.5, %v3167_v55 }
 0x781   :  { %v3158_v22 = vmul.f32 0.5, %v3157_v46 }
 0x782   :  { %v3169_v18 = vsub.f32 1.5, %v3168_v33 }
 0x783   :  { %v3159_v36 = vsub.f32 1.5, %v3158_v22 }
 0x784   :  { %v3806_v5 = vpop.eup %3805  ;;  %v3170_v53 = vmul.f32 %v3802_v7, %v3169_v18 }
 0x785   :  { %v3176_v40 = vmul.f32 %v3806_v5, %v3149_v16  ;;  %v3160_v42 = vmul.f32 %v3804_v17, %v3159_v36  ;;  %vm3182_vm10 = vweird.f32 %v3806_v5 }
 0x786   :  { %v3174_v12 = vsel %vm5616_vm9, %v3802_v7, %v3170_v53  ;;  %vm3183_vm15 = vmor %vm3181_vm12, %vm3182_vm10  ;;  %v5630_v7 = vld [vmem:[%s5141_s21] ss:$0 sm:$0xff] }
 0x787   :  { %v3177_v45 = vmul.f32 %v3806_v5, %v3176_v40  ;;  %v3236_v28 = vmul.f32 %v3174_v12, %v5531_v44 }
 0x789   :  { %v3129_v57 = vpop.xlane.xlu1 %3128  ;;  %v3178_v34 = vmul.f32 0.5, %v3177_v45 }
 0x78a   :  { %v3143_v25 = vmul.f32 %v3129_v57, %v4507_v6 }
 0x78b   :  { %v3179_v31 = vsub.f32 1.5, %v3178_v34 }
 0x78c   :  { %v5596_v23 = vadd.f32 1e-05, %v3143_v25  ;;  %v3288_v25 = vld [vmem:[%s5580_s19 + $0x8] sm:$0xff] }
 0x78d   :  { %v3180_v3 = vmul.f32 %v3806_v5, %v3179_v31  ;;  %3315 = vmatpush.msra.mxu3 %v3288_v25 }
 0x78e   :  { %vm3201_vm7 = vweird.f32 %v5596_v23 }
 0x78f   :  { %v3184_v39 = vsel %vm3183_vm15, %v3806_v5, %v3180_v3  ;;  %v3287_v5 = vld [vmem:[%s5580_s19] sm:$0xff]  ;;  %vm3297_vm15 = vcmask 1041409  }
 0x790   :  { %v3237_v54 = vmul.f32 %v3184_v39, %v5537_v48  ;;  %3316 = vmatpush.msra.mxu3 %v3287_v5 }
 0x791   :  { %v3132_v32 = vpop.xlane.xlu2 %3131 }
 0x792   :  { %v3144_v35 = vmul.f32 %v3132_v32, %v4507_v6  ;;  %v3164_v32 = vsel %vm3163_vm13, %v3804_v17, %v3160_v42 }
 0x794   :  { %v5594_v41 = vadd.f32 1e-05, %v3144_v35 }
 0x796   :  { %vm3211_vm5 = vweird.f32 %v5594_v41 }
 0x799   :  { %v3126_v56 = vpop.xlane.xlu2 %3125  ;;  %v3135_v58 = vpop.xlane.xlu1 %3134 }
 0x79a   :  { %v3142_v24 = vmul.f32 %v3126_v56, %v4507_v6  ;;  %v3145_v27 = vmul.f32 %v3135_v58, %v4507_v6  ;;  %v3244_v58 = vmul.f32 %v5630_v7, %v3236_v28 }
 0x79c   :  { %v5588_v63 = vadd.f32 1e-05, %v3142_v24  ;;  %v5598_v1 = vadd.f32 1e-05, %v3145_v27  ;;  %v3235_v24 = vmul.f32 %v3164_v32, %v5523_v19  ;;  %v3245_v19 = vmul.f32 %v5630_v7, %v3237_v54 }
 0x79e   :  { %3807 = vrsqrt.f32 %v5588_v63  ;;  %vm3191_vm0 = vweird.f32 %v5588_v63  ;;  %v3243_v60 = vmul.f32 %v5630_v7, %v3235_v24  ;;  %vm3221_vm10 = vweird.f32 %v5598_v1 }
 0x79f   :  { %3809 = vrsqrt.f32 %v5594_v41 }
 0x7a0   :  { %3811 = vrsqrt.f32 %v5596_v23 }
 0x7a1   :  { %3813 = vrsqrt.f32 %v5598_v1 }
 0x7a4   :  { %v3808_v38 = vpop.eup %3807 }
 0x7a5   :  { %v3186_v37 = vmul.f32 %v3808_v38, %v5588_v63  ;;  %v5604_v61 = vpop.eup %3809  ;;  %vm3192_vm14 = vweird.f32 %v3808_v38 }
 0x7a6   :  { %v5606_v59 = vpop.eup %3811  ;;  %v3206_v11 = vmul.f32 %v5604_v61, %v5594_v41  ;;  %vm3193_vm1 = vmor %vm3191_vm0, %vm3192_vm14  ;;  %vm3212_vm2 = vweird.f32 %v5604_v61  ;;  %vm3323_vm0 = vcmask 254976  }
 0x7a7   :  { %v3187_v10 = vmul.f32 %v3808_v38, %v3186_v37  ;;  %v5608_v0 = vpop.eup %3813  ;;  %v3196_v50 = vmul.f32 %v5606_v59, %v5596_v23  ;;  %vm3202_vm4 = vweird.f32 %v5606_v59  ;;  %vm3213_vm8 = vmor %vm3211_vm5, %vm3212_vm2 }
 0x7a8   :  { %v3216_v62 = vmul.f32 %v5608_v0, %v5598_v1  ;;  %v3207_v15 = vmul.f32 %v5604_v61, %v3206_v11  ;;  %vm3222_vm6 = vweird.f32 %v5608_v0  ;;  %vm3203_vm9 = vmor %vm3201_vm7, %vm3202_vm4 }
 0x7a9   :  { %v3188_v21 = vmul.f32 0.5, %v3187_v10  ;;  %v3197_v49 = vmul.f32 %v5606_v59, %v3196_v50  ;;  %vm3223_vm11 = vmor %vm3221_vm10, %vm3222_vm6 }
 0x7aa   :  { %v3217_v51 = vmul.f32 %v5608_v0, %v3216_v62  ;;  %v3208_v30 = vmul.f32 0.5, %v3207_v15 }
 0x7ab   :  { %v3189_v2 = vsub.f32 1.5, %v3188_v21  ;;  %v3198_v56 = vmul.f32 0.5, %v3197_v49 }
 0x7ac   :  { %v3218_v26 = vmul.f32 0.5, %v3217_v51  ;;  %v3209_v57 = vsub.f32 1.5, %v3208_v30 }
 0x7ad   :  { %v3190_v43 = vmul.f32 %v3808_v38, %v3189_v2  ;;  %v3199_v35 = vsub.f32 1.5, %v3198_v56 }
 0x7ae   :  { %v3219_v17 = vsub.f32 1.5, %v3218_v26  ;;  %v3210_v27 = vmul.f32 %v5604_v61, %v3209_v57 }
 0x7af   :  { %v3194_v29 = vsel %vm3193_vm1, %v3808_v38, %v3190_v43  ;;  %v3828_v38 = vld [vmem:[%s5152_s29] ss:$0 sm:$0xff]  ;;  %v3200_v40 = vmul.f32 %v5606_v59, %v3199_v35 }
 0x7b0   :  { %v3238_v63 = vmul.f32 %v3194_v29, %v5556_v13  ;;  %v3252_v9 = vadd.f32 %v3828_v38, %v3244_v58  ;;  %v3220_v55 = vmul.f32 %v5608_v0, %v3219_v17  ;;  %v3251_v37 = vadd.f32 %v3828_v38, %v3243_v60 }
 0x7b1   :  { %v3253_v46 = vadd.f32 %v3828_v38, %v3245_v19  ;;  %v3214_v45 = vsel %vm3213_vm8, %v5604_v61, %v3210_v27  ;;  %v3204_v41 = vsel %vm3203_vm9, %v5606_v59, %v3200_v40  ;;  %v3626_v19 = vld [vmem:[%s5575_s15] ss:$0 sm:$0xff] }
 0x7b2   :  { %v3246_v13 = vmul.f32 %v5630_v7, %v3238_v63  ;;  %v3260_v33 = vsel %vm746_vm3, %v3252_v9, 0.0  ;;  %v3224_v22 = vsel %vm3223_vm11, %v5608_v0, %v3220_v55  ;;  %v3259_v18 = vsel %vm746_vm3, %v3251_v37, 0.0 }
 0x7b3   :  { %v3262_v21 = vsel %vm746_vm3, %v3253_v46, 0.0  ;;  %v3240_v23 = vmul.f32 %v3214_v45, %v5549_v4  ;;  %v3261_v36 = vadd.f32 %v3260_v33, %v3259_v18  ;;  %v3239_v61 = vmul.f32 %v3204_v41, %v5543_v47 }
 0x7b4   :  { %v3254_v10 = vadd.f32 %v3828_v38, %v3246_v13  ;;  %v3241_v1 = vmul.f32 %v3224_v22, %v5558_v8  ;;  %vm3426_vm11 = vcmask 1024  }
 0x7b5   :  { %v3263_v53 = vadd.f32 %v3262_v21, %v3261_v36  ;;  %v3248_v59 = vmul.f32 %v5630_v7, %v3240_v23  ;;  %v3247_v2 = vmul.f32 %v5630_v7, %v3239_v61  ;;  %v3627_v23 = vld [vmem:[%s3457_s23] ss:$0 sm:$0xff] }
 0x7b6   :  { %v3264_v11 = vsel %vm746_vm3, %v3254_v10, 0.0  ;;  %v3249_v42 = vmul.f32 %v5630_v7, %v3241_v1  ;;  %v3628_v61 = vld [vmem:[%s3458_s27] ss:$0 sm:$0xff] }
 0x7b7   :  { %v3265_v0 = vadd.f32 %v3264_v11, %v3263_v53  ;;  %v3256_v4 = vadd.f32 %v3828_v38, %v3248_v59  ;;  %v3255_v47 = vadd.f32 %v3828_v38, %v3247_v2 }
 0x7b8   :  { %v3257_v8 = vadd.f32 %v3828_v38, %v3249_v42 }
 0x7b9   :  { %v3266_v3 = vrot.slane %v3265_v0, 4  ;;  %v3273_v49 = vsel %vm746_vm3, %v3256_v4, 0.0  ;;  %v3272_v32 = vsel %vm746_vm3, %v3255_v47, 0.0 }
 0x7ba   :  { %v3275_v39 = vsel %vm746_vm3, %v3257_v8, 0.0  ;;  %v3274_v28 = vadd.f32 %v3273_v49, %v3272_v32  ;;  %v66_v49 = vstv %s3460_s12 }
 0x7bb   :  { %v3267_v43 = vadd.f32 %v3266_v3, %v3265_v0  ;;  %67 = vst [vmem:[#allocation4] sm:$0x1] %v66_v49 }
 0x7bc   :  { %v3276_v26 = vadd.f32 %v3275_v39, %v3274_v28 }
 0x7bd   :  { %v3268_v29 = vrot.slane %v3267_v43, 2 }
 0x7e6   :  { %v3138_v16 = vpop.xlane.xlu0 %3137 }
 0x7e7   :  { %v3146_v44 = vmul.f32 %v3138_v16, %v4507_v6  ;;  %v3269_v16 = vadd.f32 %v3268_v29, %v3267_v43 }
 0x7e9   :  { %v3154_v48 = vadd.f32 1e-05, %v3146_v44  ;;  %v3270_v63 = vrot.slane %v3269_v16, 1 }
 0x7eb   :  { %3815 = vrsqrt.f32 %v3154_v48  ;;  %vm3231_vm13 = vweird.f32 %v3154_v48  ;;  %v3271_v35 = vadd.f32 %v3270_v63, %v3269_v16 }
 0x7f1   :  { %v3816_v34 = vpop.eup %3815 }
 0x7f2   :  { %v3226_v31 = vmul.f32 %v3816_v34, %v3154_v48  ;;  %vm3232_vm12 = vweird.f32 %v3816_v34 }
 0x7f3   :  { %vm3233_vm14 = vmor %vm3231_vm13, %vm3232_vm12 }
 0x7f4   :  { %v3227_v50 = vmul.f32 %v3816_v34, %v3226_v31 }
 0x7f6   :  { %v3228_v62 = vmul.f32 0.5, %v3227_v50 }
 0x7f8   :  { %v3229_v20 = vsub.f32 1.5, %v3228_v62 }
 0x7fa   :  { %v3230_v15 = vmul.f32 %v3816_v34, %v3229_v20 }
 0x7fc   :  { %v3234_v12 = vsel %vm3233_vm14, %v3816_v34, %v3230_v15 }
 0x7fd   :  { %v3242_v51 = vmul.f32 %v3234_v12, %v5567_v14 }
 0x7ff   :  { %v3250_v30 = vmul.f32 %v5630_v7, %v3242_v51  ;;  %v3285_v7 = vmul.f32 %v3271_v35, %v4507_v6 }
 0x801   :  { %v3258_v56 = vadd.f32 %v3828_v38, %v3250_v30 }
 0x803   :  { %v3277_v24 = vsel %vm746_vm3, %v3258_v56, 0.0 }
 0x804   :  { %v3278_v54 = vadd.f32 %v3277_v24, %v3276_v26 }
 0x806   :  { %v3279_v57 = vrot.slane %v3278_v54, 4 }
 0x808   :  { %v3280_v58 = vadd.f32 %v3279_v57, %v3278_v54 }
 0x80a   :  { %v3281_v14 = vrot.slane %v3280_v58, 2 }
 0x80c   :  { %v3282_v44 = vadd.f32 %v3281_v14, %v3280_v58 }
 0x80e   :  { %v3283_v17 = vrot.slane %v3282_v44, 1 }
 0x810   :  { %v3284_v25 = vadd.f32 %v3283_v17, %v3282_v44  ;;  %v3629_v17 = vld [vmem:[%s5685_s1] ss:$0 sm:$0xff] }
 0x812   :  { %v3286_v5 = vmul.f32 %v3284_v25, %v4507_v6 }
 0x814   :  { %v3298_v60 = vsel %vm3297_vm15, %v3286_v5, %v3285_v7 }
 0x815   :  { %3566 = vmatmul.msk.f32.vlgmr.msra.gmra.mxu3 %vm746_vm3, %v3298_v60  ;;  %v3630_v60 = vld [vmem:[#allocation4] ss:$0 sm:$0xff] }
 0x898   :  { %v3318_v48 = vpop.f32.mrf.mxu3 }
 0x899   :  { %v3319_v27 = vadd.f32 %v3626_v19, %v3318_v48 }
 0x89b   :  { %v3324_v38 = vsel %vm3323_vm0, %v3319_v27, 0.0 }
 0x89c   :  { %3325 = vadd.xlane.f32.xlu1 %v3324_v38 }
 0x90f   :  { %v3326_v9 = vpop.xlane.xlu1 %3325 }
 0x910   :  { %v3327_v13 = vmul.f32 %v3326_v9, %v4507_v6 }
 0x912   :  { %v3328_v40 = vsub.f32 %v3319_v27, %v3327_v13 }
 0x914   :  { %v3329_v55 = vmul.f32 %v3328_v40, %v3328_v40 }
 0x916   :  { %v3330_v37 = vsel %vm3323_vm0, %v3329_v55, 0.0 }
 0x917   :  { %3331 = vadd.xlane.f32.xlu2 %v3330_v37 }
 0x98a   :  { %v3332_v46 = vpop.xlane.xlu2 %3331 }
 0x98b   :  { %v3333_v45 = vmul.f32 %v3332_v46, %v4507_v6 }
 0x98d   :  { %v3334_v33 = vadd.f32 1e-05, %v3333_v45 }
 0x98f   :  { %3817 = vrsqrt.f32 %v3334_v33  ;;  %vm3341_vm1 = vweird.f32 %v3334_v33 }
 0x995   :  { %v3818_v10 = vpop.eup %3817 }
 0x996   :  { %v3336_v41 = vmul.f32 %v3818_v10, %v3334_v33  ;;  %vm3342_vm3 = vweird.f32 %v3818_v10 }
 0x997   :  { %vm3343_vm2 = vmor %vm3341_vm1, %vm3342_vm3 }
 0x998   :  { %v3337_v22 = vmul.f32 %v3818_v10, %v3336_v41 }
 0x99a   :  { %v3338_v34 = vmul.f32 0.5, %v3337_v22 }
 0x99c   :  { %v3339_v18 = vsub.f32 1.5, %v3338_v34 }
 0x99e   :  { %v3340_v21 = vmul.f32 %v3818_v10, %v3339_v18 }
 0x9a0   :  { %v3344_v36 = vsel %vm3343_vm2, %v3818_v10, %v3340_v21 }
 0x9a1   :  { %v3345_v31 = vmul.f32 %v3344_v36, %v3328_v40 }
 0x9a3   :  { %v3349_v1 = vmul.f32 %v3627_v23, %v3345_v31 }
 0x9a5   :  { %v3353_v11 = vadd.f32 %v3628_v61, %v3349_v1 }
 0x9a7   :  { %v3355_v53 = vmul.f32 0.70710677, %v3353_v11  ;;  %v3354_v44 = vmul.f32 0.5, %v3353_v11 }
 0x9a9   :  { %v3358_v50 = vand.u32 2147483647, %v3355_v53  ;;  %vm3356_vm8 = vcmp.ge.f32.partialorder %v3355_v53, 0.0 }
 0x9aa   :  { %v3357_v63 = vsel %vm3356_vm8, 1.0, %v3857_v52 }
 0x9ab   :  { %v3359_v6 = vmul.f32 0.3275911, %v3358_v50  ;;  %v3385_v12 = vsub.f32 0.0, %v3358_v50 }
 0x9ad   :  { %v3360_v59 = vadd.f32 1.0, %v3359_v6  ;;  %v3386_v32 = vmul.f32 %v3385_v12, %v3358_v50 }
 0x9af   :  { %3819 = vrcp.f32 %v3360_v59  ;;  %v3372_v42 = vand.u32 2147483648, %v3360_v59  ;;  %v3370_v4 = vand.u32 2147483647, %v3360_v59  ;;  %vm3366_vm5 = vweird.f32 %v3360_v59 }
 0x9b0   :  { %v3387_v28 = vmul.f32 1.442695, %v3386_v32 }
 0x9b1   :  { %v3373_v15 = vor.u32 1.1754944e-38, %v3372_v42  ;;  %vm3371_vm7 = vcmp.eq.f32.partialorder %v3370_v4, 8.507059e+37 }
 0x9b2   :  { %3821 = vpow2.f32 %v3387_v28 }
 0x9b5   :  { %v3820_v0 = vpop.eup %3819 }
 0x9b6   :  { %v3362_v62 = vmul.f32 %v3820_v0, %v3360_v59  ;;  %vm3367_vm4 = vweird.f32 %v3820_v0 }
 0x9b7   :  { %vm3368_vm6 = vmor %vm3366_vm5, %vm3367_vm4 }
 0x9b8   :  { %v3363_v2 = vsub.f32 1.0, %v3362_v62  ;;  %v3822_v57 = vpop.eup %3821 }
 0x9ba   :  { %v3364_v20 = vmul.f32 %v3820_v0, %v3363_v2 }
 0x9bc   :  { %v3365_v3 = vadd.f32 %v3820_v0, %v3364_v20 }
 0x9be   :  { %v3369_v47 = vsel %vm3368_vm6, %v3820_v0, %v3365_v3 }
 0x9bf   :  { %v3374_v8 = vsel %vm3371_vm7, %v3373_v15, %v3369_v47 }
 0x9c0   :  { %v3376_v51 = vmul.f32 1.0614054, %v3374_v8 }
 0x9c2   :  { %v3377_v43 = vadd.f32 -1.4531521, %v3376_v51 }
 0x9c4   :  { %v3378_v39 = vmul.f32 %v3377_v43, %v3374_v8 }
 0x9c6   :  { %v3379_v30 = vadd.f32 1.4214138, %v3378_v39 }
 0x9c8   :  { %v3380_v56 = vmul.f32 %v3379_v30, %v3374_v8 }
 0x9ca   :  { %v3381_v26 = vadd.f32 -0.28449672, %v3380_v56 }
 0x9cc   :  { %v3382_v29 = vmul.f32 %v3381_v26, %v3374_v8 }
 0x9ce   :  { %v3383_v24 = vadd.f32 0.2548296, %v3382_v29 }
 0x9d0   :  { %v3384_v54 = vmul.f32 %v3383_v24, %v3374_v8 }
 0x9d2   :  { %v3389_v16 = vmul.f32 %v3822_v57, %v3384_v54 }
 0x9d4   :  { %v3390_v58 = vsub.f32 1.0, %v3389_v16 }
 0x9d6   :  { %v3391_v14 = vmul.f32 %v3390_v58, %v3357_v63 }
 0x9d8   :  { %v3392_v35 = vadd.f32 1.0, %v3391_v14 }
 0x9da   :  { %v3393_v25 = vmul.f32 %v3392_v35, %v3354_v44 }
 0x9dc   :  { %v3398_v7 = vmul.f32 %v3629_v17, %v3393_v25 }
 0x9de   :  { %v3399_v5 = vsel %vm3323_vm0, %v3398_v7, 0.0 }
 0x9df   :  { %3400 = vadd.xlane.f32.xlu0 %v3399_v5 }
 0xa52   :  { %v3401_v19 = vpop.xlane.xlu0 %3400 }
 0xa53   :  { %v3406_v48 = vadd.f32 %v3630_v60, %v3401_v19 }
 0xa55   :  { %v3407_v27 = vsub.f32 0.0, %v3406_v48 }
 0xa57   :  { %v3408_v38 = vmul.f32 1.442695, %v3407_v27 }
 0xa59   :  { %3823 = vpow2.f32 %v3408_v38 }
 0xa5f   :  { %v3824_v9 = vpop.eup %3823 }
 0xa60   :  { %v3410_v13 = vadd.f32 1.0, %v3824_v9 }
 0xa62   :  { %3825 = vrcp.f32 %v3410_v13  ;;  %v3422_v37 = vand.u32 2147483648, %v3410_v13  ;;  %v3420_v45 = vand.u32 2147483647, %v3410_v13  ;;  %vm3416_vm10 = vweird.f32 %v3410_v13 }
 0xa64   :  { %v3423_v10 = vor.u32 1.1754944e-38, %v3422_v37  ;;  %vm3421_vm13 = vcmp.eq.f32.partialorder %v3420_v45, 8.507059e+37 }
 0xa68   :  { %v3826_v40 = vpop.eup %3825 }
 0xa69   :  { %v3412_v52 = vmul.f32 %v3826_v40, %v3410_v13  ;;  %vm3417_vm9 = vweird.f32 %v3826_v40 }
 0xa6a   :  { %vm3418_vm12 = vmor %vm3416_vm10, %vm3417_vm9 }
 0xa6b   :  { %v3413_v55 = vsub.f32 1.0, %v3412_v52 }
 0xa6d   :  { %v3414_v46 = vmul.f32 %v3826_v40, %v3413_v55 }
 0xa6f   :  { %v3415_v33 = vadd.f32 %v3826_v40, %v3414_v46 }
 0xa71   :  { %v3419_v41 = vsel %vm3418_vm12, %v3826_v40, %v3415_v33 }
 0xa72   :  { %v3424_v22 = vsel %vm3421_vm13, %v3423_v10, %v3419_v41 }
 0xa73   :  { %3427 = vst.msk [vmem:[%s3461_s8] sm:$0x3] %vm3426_vm11, %v3424_v22 }

</bundles_post_ra>
